<compile_context>
chip_gen: v6e
topology: v6e:2x2x1
jax: 0.10.0
libtpu: 0.0.40
codegen_flags: <defaults>
</compile_context>

<pallas_src>
import math
from functools import partial

import jax
import jax.numpy as jnp
from jax import lax
from jax.experimental import pallas as pl
from jax.experimental.pallas import tpu as pltpu

STAGE_NUM = 3


def _emau_kernel(x_ref, w1_ref, b1_ref, mu0t_ref, w2_ref, bnb_ref, o_ref,
                 *, bt, stage_num):
    # x_ref  : (Bt, C, N)  Bt batch elements; channels on sublanes, N on lanes
    # w1_ref : (C, C)      conv1 1x1 weight (c_out, c_in)
    # b1_ref : (C, 1)      conv1 bias (column)
    # mu0t_ref: (K, C)     initial bases, transposed
    # w2_ref : (C, C)      conv2 1x1 weight with BN scale pre-folded (f32)
    # bnb_ref: (C, 1)      folded BatchNorm bias (column)
    # o_ref  : (Bt, C, N)
    w1 = w1_ref[...].astype(jnp.bfloat16)
    w2 = w2_ref[...].astype(jnp.bfloat16)
    b1 = b1_ref[...]                                            # (C, 1) f32
    bnb = bnb_ref[...]                                          # (C, 1) f32
    mu0_t = mu0t_ref[...]                                       # (K, C) f32

    # conv1 (1x1) per element: xe[c_o, n] = sum_ci w1[c_o, ci] x[ci, n] + b1.
    # xe stays resident in vregs as bf16 (no VMEM staging scratch at this size;
    # TODO(synk): for C*N of a few hundred KiB+, stage xe in a bf16 VMEM scratch).
    xe = [
        (jnp.dot(w1, x_ref[bi].astype(jnp.bfloat16),
                 preferred_element_type=jnp.float32) + b1).astype(jnp.bfloat16)
        for bi in range(bt)
    ]

    mu_t = [mu0_t] * bt                                         # per-element (K, C)
    z = [None] * bt                                             # per-element (K, N)

    # EM iterations.  stage_num and bt are static -> fully unrolled; the bt
    # chains inside one stage are independent, so the scheduler interleaves
    # one element's MXU dots with another's EUP/VALU/XLU softmax work.
    for _ in range(stage_num):
        for bi in range(bt):
            # E step: logits[k, n] = sum_c mu[c, k] * xe[c, n]  (plain dot)
            logits = jnp.dot(mu_t[bi].astype(jnp.bfloat16), xe[bi],
                             preferred_element_type=jnp.float32)   # (K, N) f32
            # softmax over K (axis 0); EUP exp + approx reciprocal
            logits = logits - jnp.max(logits, axis=0, keepdims=True)
            e = jnp.exp(logits)
            z[bi] = e * pl.reciprocal(jnp.sum(e, axis=0, keepdims=True),
                                      approx=True)
            # normalize responsibilities over the spatial dim N (axis 1)
            z_n = z[bi] * pl.reciprocal(
                1e-6 + jnp.sum(z[bi], axis=1, keepdims=True), approx=True)
            # M step: mu_t[k, c] = sum_n z_[k, n] * xe[c, n]  (N-vs-N contraction)
            m = lax.dot_general(z_n.astype(jnp.bfloat16), xe[bi],
                                dimension_numbers=(((1,), (1,)), ((), ())),
                                preferred_element_type=jnp.float32)  # (K, C) f32
            # l2-normalize each basis over channels; matches the reference
            # formula mu / (1e-6 + ||mu||) (sqrt + approx reciprocal on EUP).
            norm = jnp.sqrt(jnp.sum(m * m, axis=1, keepdims=True))
            mu_t[bi] = m * pl.reciprocal(1e-6 + norm, approx=True)

    # reconstruction + conv2 (BN scale already folded into w2) + BN bias +
    # residual + ReLU, per element.  Each store is a full (C, N) slab with
    # N a multiple of 128 -> unmasked lane-dense vst.
    for bi in range(bt):
        mu_ck = mu_t[bi].T                                      # (C, K), tiny transpose
        xr = jnp.dot(mu_ck.astype(jnp.bfloat16), z[bi].astype(jnp.bfloat16),
                     preferred_element_type=jnp.float32)        # (C, N) f32
        xr = jnp.maximum(xr, 0.0)                               # ReLU
        y = jnp.dot(w2, xr.astype(jnp.bfloat16),
                    preferred_element_type=jnp.float32) + bnb   # conv2 + folded BN
        o_ref[bi] = jnp.maximum(y + x_ref[bi], 0.0)             # residual + ReLU


def emau_forward(x_nchw, w1, b1, mu0, w2, bn_scale, bn_bias,
                 *, batch_block=None, stage_num=STAGE_NUM):
    """EMAU forward.  x_nchw: (B, C, H, W) float32."""
    b, c, h, w = x_nchw.shape
    n = h * w
    k = mu0.shape[1]

    # Batch elements per grid step.  Keep >= 2 grid steps when B >= 2 so the
    # "parallel" batch axis can shard across both v7x TensorCores, while still
    # packing >= 2 elements per step (when B allows) so their EM chains
    # interleave on single-TC v5e/v6e.
    if batch_block is None:
        bt = b // 2 if (b >= 2 and b % 2 == 0) else 1
    else:
        bt = batch_block
    assert b % bt == 0, f"batch {b} must be divisible by batch_block {bt}"
    steps = b // bt

    # NCHW -> (B, C, N): a pure reshape, no transpose (lane-dense last dim N).
    x = x_nchw.reshape(b, c, n)
    mu0_t = mu0.T                          # (K, C), transposed once on the host
    b1_c = b1.reshape(c, 1)
    # Fold the eval-mode BN scale into the conv2 weight, in f32, on the host
    # (before the in-kernel bf16 cast) so numerics are unchanged.
    w2_f = (bn_scale[:, None] * w2).astype(jnp.float32)
    bnb_c = bn_bias.reshape(c, 1)

    # VMEM budget derived from the actual block sizes (double-buffered I/O
    # blocks + broadcast operands), clamped to a cross-generation-safe window.
    # For production EMANet sizes: v5e/v6e -> raise toward ~96-100 MiB;
    # v7x (64 MiB physical) -> tile N / stage I/O in bf16 / pl.Buffered(1).
    blk_bytes = bt * c * n * 4                                  # one f32 I/O block
    const_bytes = (2 * c * c + k * c + 2 * c * 128) * 4         # weights + padded cols
    needed = 2 * (2 * blk_bytes) + 2 * const_bytes
    vmem_limit = int(min(max(2 * needed, 32 * 1024 * 1024), 64 * 1024 * 1024))

    kernel = partial(_emau_kernel, bt=bt, stage_num=stage_num)

    out = pl.pallas_call(
        kernel,
        out_shape=jax.ShapeDtypeStruct((b, c, n), jnp.float32),
        grid_spec=pltpu.PrefetchScalarGridSpec(
            num_scalar_prefetch=0,
            grid=(steps,),
            in_specs=[
                pl.BlockSpec((bt, c, n), lambda i: (i, 0, 0)),   # x (Bt elements/step)
                pl.BlockSpec((c, c), lambda i: (0, 0)),          # w1
                pl.BlockSpec((c, 1), lambda i: (0, 0)),          # b1
                pl.BlockSpec((k, c), lambda i: (0, 0)),          # mu0^T
                pl.BlockSpec((c, c), lambda i: (0, 0)),          # w2 (BN scale folded)
                pl.BlockSpec((c, 1), lambda i: (0, 0)),          # BN bias
            ],
            out_specs=pl.BlockSpec((bt, c, n), lambda i: (i, 0, 0)),
        ),
        compiler_params=pltpu.CompilerParams(
            # Batch-group axis is parallel -> shards across the 2 TCs on v7x;
            # a serial (short) loop on single-TC v5e/v6e.
            dimension_semantics=("parallel",),
            vmem_limit_bytes=vmem_limit,
        ),
    )(x, w1, b1_c, mu0_t, w2_f, bnb_c)

    # (B, C, N) -> NCHW: pure reshape.
    return out.reshape(b, c, h, w)


def emau_reference(x, w1, b1, mu0, w2, bn_scale, bn_bias, stage_num=STAGE_NUM):
    """Pure-JAX f32 reference mirroring the PyTorch EMAU forward (NCHW)."""
    idn = x
    b, c, h, w = x.shape
    xc = jnp.einsum('oc,bchw->bohw', w1, x) + b1.reshape(1, c, 1, 1)
    xf = xc.reshape(b, c, h * w)
    mu = jnp.broadcast_to(mu0[None], (b,) + mu0.shape)
    z = None
    for _ in range(stage_num):
        z = jnp.einsum('bcn,bck->bnk', xf, mu)
        z = jax.nn.softmax(z, axis=2)
        z_ = z / (1e-6 + z.sum(axis=1, keepdims=True))
        mu = jnp.einsum('bcn,bnk->bck', xf, z_)
        mu = mu / (1e-6 + jnp.linalg.norm(mu, axis=1, keepdims=True))
    xo = jnp.einsum('bck,bnk->bcn', mu, z).reshape(b, c, h, w)
    xo = jax.nn.relu(xo)
    xo = jnp.einsum('oc,bchw->bohw', w2, xo)
    xo = xo * bn_scale.reshape(1, c, 1, 1) + bn_bias.reshape(1, c, 1, 1)
    return jax.nn.relu(xo + idn)


def init_params(key, c, k):
    """Deterministic parameter init mirroring EMAU.__init__ shapes/statistics."""
    k_mu, k_w1, k_b1, k_w2 = jax.random.split(key, 4)
    # mu: Normal(0, sqrt(2/k)), then l2-normalized over the channel dim
    mu0 = jax.random.normal(k_mu, (c, k), jnp.float32) * math.sqrt(2.0 / k)
    mu0 = mu0 / (1e-6 + jnp.linalg.norm(mu0, axis=0, keepdims=True))
    # conv1: 1x1, c->c, weight Normal(0, sqrt(2/c)), bias ~ small uniform
    w1 = jax.random.normal(k_w1, (c, c), jnp.float32) * math.sqrt(2.0 / c)
    b1 = (jax.random.uniform(k_b1, (c,), jnp.float32) - 0.5) / math.sqrt(c)
    # conv2: 1x1, c->c, no bias, weight Normal(0, sqrt(2/c))
    w2 = jax.random.normal(k_w2, (c, c), jnp.float32) * math.sqrt(2.0 / c)
    # BatchNorm2d eval-mode fold: gamma=1, beta=0, running_mean=0, running_var=1
    eps = 1e-5
    bn_scale = jnp.full((c,), 1.0 / math.sqrt(1.0 + eps), jnp.float32)
    bn_bias = jnp.zeros((c,), jnp.float32)
    return w1, b1, mu0, w2, bn_scale, bn_bias


if __name__ == "__main__":
    # Small but representative: B=4 -> 2 grid steps (v7x megacore) with 2
    # interleaved batch elements per step (v5e/v6e latency hiding).
    B, C, H, W, K = 4, 64, 16, 16, 32

    key = jax.random.PRNGKey(0)
    k_x, k_p = jax.random.split(key)
    x = jax.random.normal(k_x, (B, C, H, W), jnp.float32)
    params = init_params(k_p, C, K)

    out = emau_forward(x, *params)
    out = jax.block_until_ready(out)

    ref = emau_reference(x, *params)
    assert out.shape == (B, C, H, W)
    assert bool(jnp.all(jnp.isfinite(out)))
    # bf16 MXU operands with f32 accumulation -> ~1e-2 level agreement with the
    # pure-f32 reference; documented tolerance 2e-2.
    assert bool(jnp.allclose(out, ref, atol=2e-2, rtol=2e-2)), (
        f"max abs err {float(jnp.max(jnp.abs(out - ref)))}")

    print("KERNEL_OK")
</pallas_src>

<mosaic_0001>
module attributes {stable_mosaic.version = 11 : i64} {
  func.func @_emau_kernel(%arg0: i32, %arg1: memref<2x64x256xf32, #tpu.memory_space<vmem>>, %arg2: memref<64x64xf32, #tpu.memory_space<vmem>>, %arg3: memref<64x1xf32, #tpu.memory_space<vmem>>, %arg4: memref<32x64xf32, #tpu.memory_space<vmem>>, %arg5: memref<64x64xf32, #tpu.memory_space<vmem>>, %arg6: memref<64x1xf32, #tpu.memory_space<vmem>>, %arg7: memref<2x64x256xf32, #tpu.memory_space<vmem>>) attributes {dimension_semantics = [#tpu.dimension_semantics<parallel>], iteration_bounds = array<i64: 2>, scalar_prefetch = 0 : i64, scratch_operands = 0 : i64, tpu.core_type = #tpu.core_type<tc>, window_params = [{transform_indices = @transform_0, window_bounds = array<i64: 2, 64, 256>}, {pipeline_mode = #tpu.pipeline_mode<synchronous>, transform_indices = @transform_1, window_bounds = array<i64: 64, 64>}, {pipeline_mode = #tpu.pipeline_mode<synchronous>, transform_indices = @transform_2, window_bounds = array<i64: 64, 1>}, {pipeline_mode = #tpu.pipeline_mode<synchronous>, transform_indices = @transform_3, window_bounds = array<i64: 32, 64>}, {pipeline_mode = #tpu.pipeline_mode<synchronous>, transform_indices = @transform_4, window_bounds = array<i64: 64, 64>}, {pipeline_mode = #tpu.pipeline_mode<synchronous>, transform_indices = @transform_5, window_bounds = array<i64: 64, 1>}, {transform_indices = @transform_6, window_bounds = array<i64: 2, 64, 256>}]} {
    %c0 = arith.constant 0 : index
    %c0_0 = arith.constant 0 : index
    %0 = vector.load %arg2[%c0, %c0_0] : memref<64x64xf32, #tpu.memory_space<vmem>>, vector<64x64xf32>
    %1 = arith.truncf %0 : vector<64x64xf32> to vector<64x64xbf16>
    %c0_1 = arith.constant 0 : index
    %c0_2 = arith.constant 0 : index
    %2 = vector.load %arg5[%c0_1, %c0_2] : memref<64x64xf32, #tpu.memory_space<vmem>>, vector<64x64xf32>
    %3 = arith.truncf %2 : vector<64x64xf32> to vector<64x64xbf16>
    %c0_3 = arith.constant 0 : index
    %c0_4 = arith.constant 0 : index
    %4 = vector.load %arg3[%c0_3, %c0_4] : memref<64x1xf32, #tpu.memory_space<vmem>>, vector<64x1xf32>
    %c0_5 = arith.constant 0 : index
    %c0_6 = arith.constant 0 : index
    %5 = vector.load %arg6[%c0_5, %c0_6] : memref<64x1xf32, #tpu.memory_space<vmem>>, vector<64x1xf32>
    %c0_7 = arith.constant 0 : index
    %c0_8 = arith.constant 0 : index
    %6 = vector.load %arg4[%c0_7, %c0_8] : memref<32x64xf32, #tpu.memory_space<vmem>>, vector<32x64xf32>
    %c0_9 = arith.constant 0 : index
    %c0_10 = arith.constant 0 : index
    %c0_11 = arith.constant 0 : index
    %7 = vector.load %arg1[%c0_9, %c0_10, %c0_11] : memref<2x64x256xf32, #tpu.memory_space<vmem>>, vector<1x64x256xf32>
    %8 = vector.shape_cast %7 : vector<1x64x256xf32> to vector<64x256xf32>
    %9 = arith.truncf %8 : vector<64x256xf32> to vector<64x256xbf16>
    %cst = arith.constant dense<0.000000e+00> : vector<64x256xf32>
    %10 = tpu.matmul %1, %9, %cst {dimension_numbers = #tpu.dot_dimension_numbers<[1], [0], [0], [1], [0, 0, 1, 1], [], []>} : vector<64x64xbf16>, vector<64x256xbf16>, vector<64x256xf32> -> vector<64x256xf32>
    %11 = vector.broadcast %4 : vector<64x1xf32> to vector<64x256xf32>
    %12 = arith.addf %10, %11 : vector<64x256xf32>
    %13 = arith.truncf %12 : vector<64x256xf32> to vector<64x256xbf16>
    %c1 = arith.constant 1 : index
    %c0_12 = arith.constant 0 : index
    %c0_13 = arith.constant 0 : index
    %14 = vector.load %arg1[%c1, %c0_12, %c0_13] : memref<2x64x256xf32, #tpu.memory_space<vmem>>, vector<1x64x256xf32>
    %15 = vector.shape_cast %14 : vector<1x64x256xf32> to vector<64x256xf32>
    %16 = arith.truncf %15 : vector<64x256xf32> to vector<64x256xbf16>
    %cst_14 = arith.constant dense<0.000000e+00> : vector<64x256xf32>
    %17 = tpu.matmul %1, %16, %cst_14 {dimension_numbers = #tpu.dot_dimension_numbers<[1], [0], [0], [1], [0, 0, 1, 1], [], []>} : vector<64x64xbf16>, vector<64x256xbf16>, vector<64x256xf32> -> vector<64x256xf32>
    %18 = vector.broadcast %4 : vector<64x1xf32> to vector<64x256xf32>
    %19 = arith.addf %17, %18 : vector<64x256xf32>
    %20 = arith.truncf %19 : vector<64x256xf32> to vector<64x256xbf16>
    %21 = arith.truncf %6 : vector<32x64xf32> to vector<32x64xbf16>
    %cst_15 = arith.constant dense<0.000000e+00> : vector<32x256xf32>
    %22 = tpu.matmul %21, %13, %cst_15 {dimension_numbers = #tpu.dot_dimension_numbers<[1], [0], [0], [1], [0, 0, 1, 1], [], []>} : vector<32x64xbf16>, vector<64x256xbf16>, vector<32x256xf32> -> vector<32x256xf32>
    %cst_16 = arith.constant dense<0xFF800000> : vector<256xf32>
    %23 = vector.multi_reduction <maximumf>, %22, %cst_16 [0] : vector<32x256xf32> to vector<256xf32>
    %24 = vector.shape_cast %23 : vector<256xf32> to vector<1x256xf32>
    %25 = vector.broadcast %24 : vector<1x256xf32> to vector<32x256xf32>
    %26 = arith.subf %22, %25 : vector<32x256xf32>
    %27 = math.exp %26 : vector<32x256xf32>
    %cst_17 = arith.constant dense<0.000000e+00> : vector<256xf32>
    %28 = vector.multi_reduction <add>, %27, %cst_17 [0] : vector<32x256xf32> to vector<256xf32>
    %29 = vector.shape_cast %28 : vector<256xf32> to vector<1x256xf32>
    %30 = tpu.reciprocal %29 {approx = true} : vector<1x256xf32> -> vector<1x256xf32>
    %31 = vector.broadcast %30 : vector<1x256xf32> to vector<32x256xf32>
    %32 = arith.mulf %27, %31 : vector<32x256xf32>
    %cst_18 = arith.constant dense<0.000000e+00> : vector<32xf32>
    %33 = vector.multi_reduction <add>, %32, %cst_18 [1] : vector<32x256xf32> to vector<32xf32>
    %34 = vector.shape_cast %33 : vector<32xf32> to vector<32x1xf32>
    %cst_19 = arith.constant 9.99999997E-7 : f32
    %35 = vector.broadcast %cst_19 : f32 to vector<32x1xf32>
    %36 = arith.addf %35, %34 : vector<32x1xf32>
    %37 = tpu.reciprocal %36 {approx = true} : vector<32x1xf32> -> vector<32x1xf32>
    %38 = vector.broadcast %37 : vector<32x1xf32> to vector<32x256xf32>
    %39 = arith.mulf %32, %38 : vector<32x256xf32>
    %40 = arith.truncf %39 : vector<32x256xf32> to vector<32x256xbf16>
    %cst_20 = arith.constant dense<0.000000e+00> : vector<32x64xf32>
    %41 = tpu.matmul %40, %13, %cst_20 {dimension_numbers = #tpu.dot_dimension_numbers<[1], [1], [0], [0], [0, 0, 1, 0], [], []>} : vector<32x256xbf16>, vector<64x256xbf16>, vector<32x64xf32> -> vector<32x64xf32>
    %42 = arith.mulf %41, %41 : vector<32x64xf32>
    %cst_21 = arith.constant dense<0.000000e+00> : vector<32xf32>
    %43 = vector.multi_reduction <add>, %42, %cst_21 [1] : vector<32x64xf32> to vector<32xf32>
    %44 = vector.shape_cast %43 : vector<32xf32> to vector<32x1xf32>
    %45 = math.sqrt %44 : vector<32x1xf32>
    %cst_22 = arith.constant 9.99999997E-7 : f32
    %46 = vector.broadcast %cst_22 : f32 to vector<32x1xf32>
    %47 = arith.addf %46, %45 : vector<32x1xf32>
    %48 = tpu.reciprocal %47 {approx = true} : vector<32x1xf32> -> vector<32x1xf32>
    %49 = vector.broadcast %48 : vector<32x1xf32> to vector<32x64xf32>
    %50 = arith.mulf %41, %49 : vector<32x64xf32>
    %51 = arith.truncf %6 : vector<32x64xf32> to vector<32x64xbf16>
    %cst_23 = arith.constant dense<0.000000e+00> : vector<32x256xf32>
    %52 = tpu.matmul %51, %20, %cst_23 {dimension_numbers = #tpu.dot_dimension_numbers<[1], [0], [0], [1], [0, 0, 1, 1], [], []>} : vector<32x64xbf16>, vector<64x256xbf16>, vector<32x256xf32> -> vector<32x256xf32>
    %cst_24 = arith.constant dense<0xFF800000> : vector<256xf32>
    %53 = vector.multi_reduction <maximumf>, %52, %cst_24 [0] : vector<32x256xf32> to vector<256xf32>
    %54 = vector.shape_cast %53 : vector<256xf32> to vector<1x256xf32>
    %55 = vector.broadcast %54 : vector<1x256xf32> to vector<32x256xf32>
    %56 = arith.subf %52, %55 : vector<32x256xf32>
    %57 = math.exp %56 : vector<32x256xf32>
    %cst_25 = arith.constant dense<0.000000e+00> : vector<256xf32>
    %58 = vector.multi_reduction <add>, %57, %cst_25 [0] : vector<32x256xf32> to vector<256xf32>
    %59 = vector.shape_cast %58 : vector<256xf32> to vector<1x256xf32>
    %60 = tpu.reciprocal %59 {approx = true} : vector<1x256xf32> -> vector<1x256xf32>
    %61 = vector.broadcast %60 : vector<1x256xf32> to vector<32x256xf32>
    %62 = arith.mulf %57, %61 : vector<32x256xf32>
    %cst_26 = arith.constant dense<0.000000e+00> : vector<32xf32>
    %63 = vector.multi_reduction <add>, %62, %cst_26 [1] : vector<32x256xf32> to vector<32xf32>
    %64 = vector.shape_cast %63 : vector<32xf32> to vector<32x1xf32>
    %cst_27 = arith.constant 9.99999997E-7 : f32
    %65 = vector.broadcast %cst_27 : f32 to vector<32x1xf32>
    %66 = arith.addf %65, %64 : vector<32x1xf32>
    %67 = tpu.reciprocal %66 {approx = true} : vector<32x1xf32> -> vector<32x1xf32>
    %68 = vector.broadcast %67 : vector<32x1xf32> to vector<32x256xf32>
    %69 = arith.mulf %62, %68 : vector<32x256xf32>
    %70 = arith.truncf %69 : vector<32x256xf32> to vector<32x256xbf16>
    %cst_28 = arith.constant dense<0.000000e+00> : vector<32x64xf32>
    %71 = tpu.matmul %70, %20, %cst_28 {dimension_numbers = #tpu.dot_dimension_numbers<[1], [1], [0], [0], [0, 0, 1, 0], [], []>} : vector<32x256xbf16>, vector<64x256xbf16>, vector<32x64xf32> -> vector<32x64xf32>
    %72 = arith.mulf %71, %71 : vector<32x64xf32>
    %cst_29 = arith.constant dense<0.000000e+00> : vector<32xf32>
    %73 = vector.multi_reduction <add>, %72, %cst_29 [1] : vector<32x64xf32> to vector<32xf32>
    %74 = vector.shape_cast %73 : vector<32xf32> to vector<32x1xf32>
    %75 = math.sqrt %74 : vector<32x1xf32>
    %cst_30 = arith.constant 9.99999997E-7 : f32
    %76 = vector.broadcast %cst_30 : f32 to vector<32x1xf32>
    %77 = arith.addf %76, %75 : vector<32x1xf32>
    %78 = tpu.reciprocal %77 {approx = true} : vector<32x1xf32> -> vector<32x1xf32>
    %79 = vector.broadcast %78 : vector<32x1xf32> to vector<32x64xf32>
    %80 = arith.mulf %71, %79 : vector<32x64xf32>
    %81 = arith.truncf %50 : vector<32x64xf32> to vector<32x64xbf16>
    %cst_31 = arith.constant dense<0.000000e+00> : vector<32x256xf32>
    %82 = tpu.matmul %81, %13, %cst_31 {dimension_numbers = #tpu.dot_dimension_numbers<[1], [0], [0], [1], [0, 0, 1, 1], [], []>} : vector<32x64xbf16>, vector<64x256xbf16>, vector<32x256xf32> -> vector<32x256xf32>
    %cst_32 = arith.constant dense<0xFF800000> : vector<256xf32>
    %83 = vector.multi_reduction <maximumf>, %82, %cst_32 [0] : vector<32x256xf32> to vector<256xf32>
    %84 = vector.shape_cast %83 : vector<256xf32> to vector<1x256xf32>
    %85 = vector.broadcast %84 : vector<1x256xf32> to vector<32x256xf32>
    %86 = arith.subf %82, %85 : vector<32x256xf32>
    %87 = math.exp %86 : vector<32x256xf32>
    %cst_33 = arith.constant dense<0.000000e+00> : vector<256xf32>
    %88 = vector.multi_reduction <add>, %87, %cst_33 [0] : vector<32x256xf32> to vector<256xf32>
    %89 = vector.shape_cast %88 : vector<256xf32> to vector<1x256xf32>
    %90 = tpu.reciprocal %89 {approx = true} : vector<1x256xf32> -> vector<1x256xf32>
    %91 = vector.broadcast %90 : vector<1x256xf32> to vector<32x256xf32>
    %92 = arith.mulf %87, %91 : vector<32x256xf32>
    %cst_34 = arith.constant dense<0.000000e+00> : vector<32xf32>
    %93 = vector.multi_reduction <add>, %92, %cst_34 [1] : vector<32x256xf32> to vector<32xf32>
    %94 = vector.shape_cast %93 : vector<32xf32> to vector<32x1xf32>
    %cst_35 = arith.constant 9.99999997E-7 : f32
    %95 = vector.broadcast %cst_35 : f32 to vector<32x1xf32>
    %96 = arith.addf %95, %94 : vector<32x1xf32>
    %97 = tpu.reciprocal %96 {approx = true} : vector<32x1xf32> -> vector<32x1xf32>
    %98 = vector.broadcast %97 : vector<32x1xf32> to vector<32x256xf32>
    %99 = arith.mulf %92, %98 : vector<32x256xf32>
    %100 = arith.truncf %99 : vector<32x256xf32> to vector<32x256xbf16>
    %cst_36 = arith.constant dense<0.000000e+00> : vector<32x64xf32>
    %101 = tpu.matmul %100, %13, %cst_36 {dimension_numbers = #tpu.dot_dimension_numbers<[1], [1], [0], [0], [0, 0, 1, 0], [], []>} : vector<32x256xbf16>, vector<64x256xbf16>, vector<32x64xf32> -> vector<32x64xf32>
    %102 = arith.mulf %101, %101 : vector<32x64xf32>
    %cst_37 = arith.constant dense<0.000000e+00> : vector<32xf32>
    %103 = vector.multi_reduction <add>, %102, %cst_37 [1] : vector<32x64xf32> to vector<32xf32>
    %104 = vector.shape_cast %103 : vector<32xf32> to vector<32x1xf32>
    %105 = math.sqrt %104 : vector<32x1xf32>
    %cst_38 = arith.constant 9.99999997E-7 : f32
    %106 = vector.broadcast %cst_38 : f32 to vector<32x1xf32>
    %107 = arith.addf %106, %105 : vector<32x1xf32>
    %108 = tpu.reciprocal %107 {approx = true} : vector<32x1xf32> -> vector<32x1xf32>
    %109 = vector.broadcast %108 : vector<32x1xf32> to vector<32x64xf32>
    %110 = arith.mulf %101, %109 : vector<32x64xf32>
    %111 = arith.truncf %80 : vector<32x64xf32> to vector<32x64xbf16>
    %cst_39 = arith.constant dense<0.000000e+00> : vector<32x256xf32>
    %112 = tpu.matmul %111, %20, %cst_39 {dimension_numbers = #tpu.dot_dimension_numbers<[1], [0], [0], [1], [0, 0, 1, 1], [], []>} : vector<32x64xbf16>, vector<64x256xbf16>, vector<32x256xf32> -> vector<32x256xf32>
    %cst_40 = arith.constant dense<0xFF800000> : vector<256xf32>
    %113 = vector.multi_reduction <maximumf>, %112, %cst_40 [0] : vector<32x256xf32> to vector<256xf32>
    %114 = vector.shape_cast %113 : vector<256xf32> to vector<1x256xf32>
    %115 = vector.broadcast %114 : vector<1x256xf32> to vector<32x256xf32>
    %116 = arith.subf %112, %115 : vector<32x256xf32>
    %117 = math.exp %116 : vector<32x256xf32>
    %cst_41 = arith.constant dense<0.000000e+00> : vector<256xf32>
    %118 = vector.multi_reduction <add>, %117, %cst_41 [0] : vector<32x256xf32> to vector<256xf32>
    %119 = vector.shape_cast %118 : vector<256xf32> to vector<1x256xf32>
    %120 = tpu.reciprocal %119 {approx = true} : vector<1x256xf32> -> vector<1x256xf32>
    %121 = vector.broadcast %120 : vector<1x256xf32> to vector<32x256xf32>
    %122 = arith.mulf %117, %121 : vector<32x256xf32>
    %cst_42 = arith.constant dense<0.000000e+00> : vector<32xf32>
    %123 = vector.multi_reduction <add>, %122, %cst_42 [1] : vector<32x256xf32> to vector<32xf32>
    %124 = vector.shape_cast %123 : vector<32xf32> to vector<32x1xf32>
    %cst_43 = arith.constant 9.99999997E-7 : f32
    %125 = vector.broadcast %cst_43 : f32 to vector<32x1xf32>
    %126 = arith.addf %125, %124 : vector<32x1xf32>
    %127 = tpu.reciprocal %126 {approx = true} : vector<32x1xf32> -> vector<32x1xf32>
    %128 = vector.broadcast %127 : vector<32x1xf32> to vector<32x256xf32>
    %129 = arith.mulf %122, %128 : vector<32x256xf32>
    %130 = arith.truncf %129 : vector<32x256xf32> to vector<32x256xbf16>
    %cst_44 = arith.constant dense<0.000000e+00> : vector<32x64xf32>
    %131 = tpu.matmul %130, %20, %cst_44 {dimension_numbers = #tpu.dot_dimension_numbers<[1], [1], [0], [0], [0, 0, 1, 0], [], []>} : vector<32x256xbf16>, vector<64x256xbf16>, vector<32x64xf32> -> vector<32x64xf32>
    %132 = arith.mulf %131, %131 : vector<32x64xf32>
    %cst_45 = arith.constant dense<0.000000e+00> : vector<32xf32>
    %133 = vector.multi_reduction <add>, %132, %cst_45 [1] : vector<32x64xf32> to vector<32xf32>
    %134 = vector.shape_cast %133 : vector<32xf32> to vector<32x1xf32>
    %135 = math.sqrt %134 : vector<32x1xf32>
    %cst_46 = arith.constant 9.99999997E-7 : f32
    %136 = vector.broadcast %cst_46 : f32 to vector<32x1xf32>
    %137 = arith.addf %136, %135 : vector<32x1xf32>
    %138 = tpu.reciprocal %137 {approx = true} : vector<32x1xf32> -> vector<32x1xf32>
    %139 = vector.broadcast %138 : vector<32x1xf32> to vector<32x64xf32>
    %140 = arith.mulf %131, %139 : vector<32x64xf32>
    %141 = arith.truncf %110 : vector<32x64xf32> to vector<32x64xbf16>
    %cst_47 = arith.constant dense<0.000000e+00> : vector<32x256xf32>
    %142 = tpu.matmul %141, %13, %cst_47 {dimension_numbers = #tpu.dot_dimension_numbers<[1], [0], [0], [1], [0, 0, 1, 1], [], []>} : vector<32x64xbf16>, vector<64x256xbf16>, vector<32x256xf32> -> vector<32x256xf32>
    %cst_48 = arith.constant dense<0xFF800000> : vector<256xf32>
    %143 = vector.multi_reduction <maximumf>, %142, %cst_48 [0] : vector<32x256xf32> to vector<256xf32>
    %144 = vector.shape_cast %143 : vector<256xf32> to vector<1x256xf32>
    %145 = vector.broadcast %144 : vector<1x256xf32> to vector<32x256xf32>
    %146 = arith.subf %142, %145 : vector<32x256xf32>
    %147 = math.exp %146 : vector<32x256xf32>
    %cst_49 = arith.constant dense<0.000000e+00> : vector<256xf32>
    %148 = vector.multi_reduction <add>, %147, %cst_49 [0] : vector<32x256xf32> to vector<256xf32>
    %149 = vector.shape_cast %148 : vector<256xf32> to vector<1x256xf32>
    %150 = tpu.reciprocal %149 {approx = true} : vector<1x256xf32> -> vector<1x256xf32>
    %151 = vector.broadcast %150 : vector<1x256xf32> to vector<32x256xf32>
    %152 = arith.mulf %147, %151 : vector<32x256xf32>
    %cst_50 = arith.constant dense<0.000000e+00> : vector<32xf32>
    %153 = vector.multi_reduction <add>, %152, %cst_50 [1] : vector<32x256xf32> to vector<32xf32>
    %154 = vector.shape_cast %153 : vector<32xf32> to vector<32x1xf32>
    %cst_51 = arith.constant 9.99999997E-7 : f32
    %155 = vector.broadcast %cst_51 : f32 to vector<32x1xf32>
    %156 = arith.addf %155, %154 : vector<32x1xf32>
    %157 = tpu.reciprocal %156 {approx = true} : vector<32x1xf32> -> vector<32x1xf32>
    %158 = vector.broadcast %157 : vector<32x1xf32> to vector<32x256xf32>
    %159 = arith.mulf %152, %158 : vector<32x256xf32>
    %160 = arith.truncf %159 : vector<32x256xf32> to vector<32x256xbf16>
    %cst_52 = arith.constant dense<0.000000e+00> : vector<32x64xf32>
    %161 = tpu.matmul %160, %13, %cst_52 {dimension_numbers = #tpu.dot_dimension_numbers<[1], [1], [0], [0], [0, 0, 1, 0], [], []>} : vector<32x256xbf16>, vector<64x256xbf16>, vector<32x64xf32> -> vector<32x64xf32>
    %162 = arith.mulf %161, %161 : vector<32x64xf32>
    %cst_53 = arith.constant dense<0.000000e+00> : vector<32xf32>
    %163 = vector.multi_reduction <add>, %162, %cst_53 [1] : vector<32x64xf32> to vector<32xf32>
    %164 = vector.shape_cast %163 : vector<32xf32> to vector<32x1xf32>
    %165 = math.sqrt %164 : vector<32x1xf32>
    %cst_54 = arith.constant 9.99999997E-7 : f32
    %166 = vector.broadcast %cst_54 : f32 to vector<32x1xf32>
    %167 = arith.addf %166, %165 : vector<32x1xf32>
    %168 = tpu.reciprocal %167 {approx = true} : vector<32x1xf32> -> vector<32x1xf32>
    %169 = vector.broadcast %168 : vector<32x1xf32> to vector<32x64xf32>
    %170 = arith.mulf %161, %169 : vector<32x64xf32>
    %171 = arith.truncf %140 : vector<32x64xf32> to vector<32x64xbf16>
    %cst_55 = arith.constant dense<0.000000e+00> : vector<32x256xf32>
    %172 = tpu.matmul %171, %20, %cst_55 {dimension_numbers = #tpu.dot_dimension_numbers<[1], [0], [0], [1], [0, 0, 1, 1], [], []>} : vector<32x64xbf16>, vector<64x256xbf16>, vector<32x256xf32> -> vector<32x256xf32>
    %cst_56 = arith.constant dense<0xFF800000> : vector<256xf32>
    %173 = vector.multi_reduction <maximumf>, %172, %cst_56 [0] : vector<32x256xf32> to vector<256xf32>
    %174 = vector.shape_cast %173 : vector<256xf32> to vector<1x256xf32>
    %175 = vector.broadcast %174 : vector<1x256xf32> to vector<32x256xf32>
    %176 = arith.subf %172, %175 : vector<32x256xf32>
    %177 = math.exp %176 : vector<32x256xf32>
    %cst_57 = arith.constant dense<0.000000e+00> : vector<256xf32>
    %178 = vector.multi_reduction <add>, %177, %cst_57 [0] : vector<32x256xf32> to vector<256xf32>
    %179 = vector.shape_cast %178 : vector<256xf32> to vector<1x256xf32>
    %180 = tpu.reciprocal %179 {approx = true} : vector<1x256xf32> -> vector<1x256xf32>
    %181 = vector.broadcast %180 : vector<1x256xf32> to vector<32x256xf32>
    %182 = arith.mulf %177, %181 : vector<32x256xf32>
    %cst_58 = arith.constant dense<0.000000e+00> : vector<32xf32>
    %183 = vector.multi_reduction <add>, %182, %cst_58 [1] : vector<32x256xf32> to vector<32xf32>
    %184 = vector.shape_cast %183 : vector<32xf32> to vector<32x1xf32>
    %cst_59 = arith.constant 9.99999997E-7 : f32
    %185 = vector.broadcast %cst_59 : f32 to vector<32x1xf32>
    %186 = arith.addf %185, %184 : vector<32x1xf32>
    %187 = tpu.reciprocal %186 {approx = true} : vector<32x1xf32> -> vector<32x1xf32>
    %188 = vector.broadcast %187 : vector<32x1xf32> to vector<32x256xf32>
    %189 = arith.mulf %182, %188 : vector<32x256xf32>
    %190 = arith.truncf %189 : vector<32x256xf32> to vector<32x256xbf16>
    %cst_60 = arith.constant dense<0.000000e+00> : vector<32x64xf32>
    %191 = tpu.matmul %190, %20, %cst_60 {dimension_numbers = #tpu.dot_dimension_numbers<[1], [1], [0], [0], [0, 0, 1, 0], [], []>} : vector<32x256xbf16>, vector<64x256xbf16>, vector<32x64xf32> -> vector<32x64xf32>
    %192 = arith.mulf %191, %191 : vector<32x64xf32>
    %cst_61 = arith.constant dense<0.000000e+00> : vector<32xf32>
    %193 = vector.multi_reduction <add>, %192, %cst_61 [1] : vector<32x64xf32> to vector<32xf32>
    %194 = vector.shape_cast %193 : vector<32xf32> to vector<32x1xf32>
    %195 = math.sqrt %194 : vector<32x1xf32>
    %cst_62 = arith.constant 9.99999997E-7 : f32
    %196 = vector.broadcast %cst_62 : f32 to vector<32x1xf32>
    %197 = arith.addf %196, %195 : vector<32x1xf32>
    %198 = tpu.reciprocal %197 {approx = true} : vector<32x1xf32> -> vector<32x1xf32>
    %199 = vector.broadcast %198 : vector<32x1xf32> to vector<32x64xf32>
    %200 = arith.mulf %191, %199 : vector<32x64xf32>
    %201 = tpu.transpose %170, [1, 0] : vector<32x64xf32> -> vector<64x32xf32>
    %202 = arith.truncf %201 : vector<64x32xf32> to vector<64x32xbf16>
    %203 = arith.truncf %152 : vector<32x256xf32> to vector<32x256xbf16>
    %cst_63 = arith.constant dense<0.000000e+00> : vector<64x256xf32>
    %204 = tpu.matmul %202, %203, %cst_63 {dimension_numbers = #tpu.dot_dimension_numbers<[1], [0], [0], [1], [0, 0, 1, 1], [], []>} : vector<64x32xbf16>, vector<32x256xbf16>, vector<64x256xf32> -> vector<64x256xf32>
    %cst_64 = arith.constant 0.000000e+00 : f32
    %205 = vector.broadcast %cst_64 : f32 to vector<64x256xf32>
    %206 = arith.maximumf %204, %205 : vector<64x256xf32>
    %207 = arith.truncf %206 : vector<64x256xf32> to vector<64x256xbf16>
    %cst_65 = arith.constant dense<0.000000e+00> : vector<64x256xf32>
    %208 = tpu.matmul %3, %207, %cst_65 {dimension_numbers = #tpu.dot_dimension_numbers<[1], [0], [0], [1], [0, 0, 1, 1], [], []>} : vector<64x64xbf16>, vector<64x256xbf16>, vector<64x256xf32> -> vector<64x256xf32>
    %209 = vector.broadcast %5 : vector<64x1xf32> to vector<64x256xf32>
    %210 = arith.addf %208, %209 : vector<64x256xf32>
    %c0_66 = arith.constant 0 : index
    %c0_67 = arith.constant 0 : index
    %c0_68 = arith.constant 0 : index
    %211 = vector.load %arg1[%c0_66, %c0_67, %c0_68] : memref<2x64x256xf32, #tpu.memory_space<vmem>>, vector<1x64x256xf32>
    %212 = vector.shape_cast %211 : vector<1x64x256xf32> to vector<64x256xf32>
    %213 = arith.addf %210, %212 : vector<64x256xf32>
    %cst_69 = arith.constant 0.000000e+00 : f32
    %214 = vector.broadcast %cst_69 : f32 to vector<64x256xf32>
    %215 = arith.maximumf %213, %214 : vector<64x256xf32>
    %c0_70 = arith.constant 0 : index
    %c0_71 = arith.constant 0 : index
    %c0_72 = arith.constant 0 : index
    %216 = vector.load %arg7[%c0_70, %c0_71, %c0_72] : memref<2x64x256xf32, #tpu.memory_space<vmem>>, vector<1x64x256xf32>
    %217 = vector.shape_cast %216 : vector<1x64x256xf32> to vector<64x256xf32>
    %218 = vector.shape_cast %215 : vector<64x256xf32> to vector<1x64x256xf32>
    tpu.vector_store %arg7[%c0_70, %c0_71, %c0_72], %218 {strides = array<i32>} : memref<2x64x256xf32, #tpu.memory_space<vmem>>, vector<1x64x256xf32>,
    %219 = tpu.transpose %200, [1, 0] : vector<32x64xf32> -> vector<64x32xf32>
    %220 = arith.truncf %219 : vector<64x32xf32> to vector<64x32xbf16>
    %221 = arith.truncf %182 : vector<32x256xf32> to vector<32x256xbf16>
    %cst_73 = arith.constant dense<0.000000e+00> : vector<64x256xf32>
    %222 = tpu.matmul %220, %221, %cst_73 {dimension_numbers = #tpu.dot_dimension_numbers<[1], [0], [0], [1], [0, 0, 1, 1], [], []>} : vector<64x32xbf16>, vector<32x256xbf16>, vector<64x256xf32> -> vector<64x256xf32>
    %cst_74 = arith.constant 0.000000e+00 : f32
    %223 = vector.broadcast %cst_74 : f32 to vector<64x256xf32>
    %224 = arith.maximumf %222, %223 : vector<64x256xf32>
    %225 = arith.truncf %224 : vector<64x256xf32> to vector<64x256xbf16>
    %cst_75 = arith.constant dense<0.000000e+00> : vector<64x256xf32>
    %226 = tpu.matmul %3, %225, %cst_75 {dimension_numbers = #tpu.dot_dimension_numbers<[1], [0], [0], [1], [0, 0, 1, 1], [], []>} : vector<64x64xbf16>, vector<64x256xbf16>, vector<64x256xf32> -> vector<64x256xf32>
    %227 = vector.broadcast %5 : vector<64x1xf32> to vector<64x256xf32>
    %228 = arith.addf %226, %227 : vector<64x256xf32>
    %c1_76 = arith.constant 1 : index
    %c0_77 = arith.constant 0 : index
    %c0_78 = arith.constant 0 : index
    %229 = vector.load %arg1[%c1_76, %c0_77, %c0_78] : memref<2x64x256xf32, #tpu.memory_space<vmem>>, vector<1x64x256xf32>
    %230 = vector.shape_cast %229 : vector<1x64x256xf32> to vector<64x256xf32>
    %231 = arith.addf %228, %230 : vector<64x256xf32>
    %cst_79 = arith.constant 0.000000e+00 : f32
    %232 = vector.broadcast %cst_79 : f32 to vector<64x256xf32>
    %233 = arith.maximumf %231, %232 : vector<64x256xf32>
    %c1_80 = arith.constant 1 : index
    %c0_81 = arith.constant 0 : index
    %c0_82 = arith.constant 0 : index
    %234 = vector.load %arg7[%c1_80, %c0_81, %c0_82] : memref<2x64x256xf32, #tpu.memory_space<vmem>>, vector<1x64x256xf32>
    %235 = vector.shape_cast %234 : vector<1x64x256xf32> to vector<64x256xf32>
    %236 = vector.shape_cast %233 : vector<64x256xf32> to vector<1x64x256xf32>
    tpu.vector_store %arg7[%c1_80, %c0_81, %c0_82], %236 {strides = array<i32>} : memref<2x64x256xf32, #tpu.memory_space<vmem>>, vector<1x64x256xf32>,
    return
  }
  func.func @transform_0(%arg0: i32) -> (i32, i32, i32) {
    %c0_i32 = arith.constant 0 : i32
    %c0_i32_0 = arith.constant 0 : i32
    %c0_i32_1 = arith.constant 0 : i32
    return %arg0, %c0_i32, %c0_i32_0 : i32, i32, i32
  }
  func.func @transform_1(%arg0: i32) -> (i32, i32) {
    %c0_i32 = arith.constant 0 : i32
    %c0_i32_0 = arith.constant 0 : i32
    %c0_i32_1 = arith.constant 0 : i32
    return %c0_i32, %c0_i32_0 : i32, i32
  }
  func.func @transform_2(%arg0: i32) -> (i32, i32) {
    %c0_i32 = arith.constant 0 : i32
    %c0_i32_0 = arith.constant 0 : i32
    %c0_i32_1 = arith.constant 0 : i32
    return %c0_i32, %c0_i32_0 : i32, i32
  }
  func.func @transform_3(%arg0: i32) -> (i32, i32) {
    %c0_i32 = arith.constant 0 : i32
    %c0_i32_0 = arith.constant 0 : i32
    %c0_i32_1 = arith.constant 0 : i32
    return %c0_i32, %c0_i32_0 : i32, i32
  }
  func.func @transform_4(%arg0: i32) -> (i32, i32) {
    %c0_i32 = arith.constant 0 : i32
    %c0_i32_0 = arith.constant 0 : i32
    %c0_i32_1 = arith.constant 0 : i32
    return %c0_i32, %c0_i32_0 : i32, i32
  }
  func.func @transform_5(%arg0: i32) -> (i32, i32) {
    %c0_i32 = arith.constant 0 : i32
    %c0_i32_0 = arith.constant 0 : i32
    %c0_i32_1 = arith.constant 0 : i32
    return %c0_i32, %c0_i32_0 : i32, i32
  }
  func.func @transform_6(%arg0: i32) -> (i32, i32, i32) {
    %c0_i32 = arith.constant 0 : i32
    %c0_i32_0 = arith.constant 0 : i32
    %c0_i32_1 = arith.constant 0 : i32
    return %arg0, %c0_i32, %c0_i32_0 : i32, i32, i32
  }
}

</mosaic_0001>

<bundles_post_ra>
// kernel: tpu_custom_call.1
= control target key start
LH: loop header
LB: loop body
LE: loop exit
PB: predicated region body
PF: predicated region fallthrough
CT: control target
= control target key end

     0   :  { %11 = vsyncpa [#allocation3], 0  ;;  %s4711_s0 = inlined_call_operand.hbm [shape: f32[4,64,256], index: 0, kind: input, shape index: {}]   ;;  %s4712_s1 = inlined_call_operand.vmem [shape: f32[64,64], index: 1, kind: input, shape index: {}]   ;;  %s4713_s2 = inlined_call_operand.vmem [shape: f32[64,1], index: 2, kind: input, shape index: {}]   ;;  %s4714_s3 = inlined_call_operand.hbm [shape: f32[32,64], index: 3, kind: input, shape index: {}]   ;;  %s4715_s4 = inlined_call_operand.vmem [shape: f32[64,64], index: 4, kind: input, shape index: {}]   ;;  %s4716_s5 = inlined_call_operand.vmem [shape: f32[64,1], index: 5, kind: input, shape index: {}]   ;;  %s4717_s6 = inlined_call_operand.hbm [shape: f32[4,64,256], index: 6, kind: output, shape index: {}]  }
   0x1   :  { %13 = vsyncpa [#allocation3 + $0x1], 0 }
   0x2   :  { %14 = vsyncpa [#allocation6], 0 }
   0x3   :  { %15 = vsyncpa [#allocation4], 0 }
   0x4   :  { %17 = vsyncpa [#allocation4 + $0x1], 0  ;;  %s3535_s21 = smov 0   ;;  %s3537_s22 = smov 0  }
   0x5   :  { %s3539_s23 = smov 0   ;;  %s3541_s24 = smov 0  }
   0x6 LB: > { %s3556_s25 = sadd.s32 4294967295, %s3488_s24   ;;  %s2905_s26 = sadd.s32 4294967294, %s3488_s24   ;;  %s3488_s24 = sphi %s3541_s24, %s4739_s24   ;;  %s3484_s23 = sphi %s3539_s23, %s4738_s23   ;;  %s3480_s22 = sphi %s3537_s22, %s4737_s22   ;;  %s3476_s21 = sphi %s3535_s21, %s4736_s21  }
   0x7   : > { %p43_p0 = scmp.ne.s32.totalorder %s3480_s22, %s3476_s21  ;;  %p4718_p1 = scmp.eq.s32.totalorder %s3556_s25, 0 }
   0x8   : > { %p178_p3 = scmp.eq.s32.totalorder %s2905_s26, 1  ;;  %p2906_p5 = scmp.ge.s32.totalorder %s3488_s24, 1 }
   0x9   : > { %p3565_p4 = por %p4718_p1, %p43_p0  ;;  %p185_p7 = scmp.lt.s32.totalorder %s3488_s24, 3 }
   0xa   : > { %p3570_p6 = por %p178_p3, %p43_p0  ;;  %s3490_s30 = smov [#allocation5]  }
   0xb   : > { %s4722_s27 = scalar_select %p3565_p4, 1, 0 }
   0xc   : > { %s4723_s28 = scalar_select %p3570_p6, 1, 0 }
   0xd   : > { %p3575_p8 = pnand %p2906_p5, %p185_p7  ;;  %s203_s7 = sshll.u32 %s3490_s30, 4  ;;  %s204_s7 = int_to_ptr.vmem [resolvable:$true] %s203_s7 }
   0xe   : > { %s3589_s9 = sadd.s32 1, %s3488_s24   ;;  %s30_s10 = sadd.s32 1, %s3484_s23 }
   0xf   : > { %s4724_s29 = scalar_select %p3575_p8, 1, 0 }
  0x10   : > { %p3027_p9 = pneg %p3575_p8  ;;  %s27_s11 = ssub.s32 %s3488_s24, %s3589_s9 }
  0x11   : > { %s3377_s12 = scalar_lea.vmem %s204_s7, 512  ;;  %p3385_p5 = scmp.lt.s32.totalorder %s204_s7, %s204_s7 }
  0x12   : > { %p3584_p11 = pnand %p3027_p9, %p4718_p1  ;;  %p3378_p13 = scmp.ne.s32.totalorder %s204_s7, %s3377_s12 }
  0x13   : > { %p3386_p7 = scmp.lt.s32.totalorder %s3377_s12, %s3377_s12 }
  0x14   : > { %p3368_p12 = pneg %p3584_p11 }
  0x15   : > { %p3387_p10 = por %p3386_p7, %p3385_p5 }
  0x16   : > { %p3380_p0 = pnand %p3378_p13, %p3368_p12 }
  0x18   : > { %p3381_p3 = pneg %p3380_p0 }
  0x1a   : > { %p3388_p2 = pnand %p3387_p10, %p3381_p3 }
  0x1c   : > { %3391 = shalt.err (!%p3388_p2)
}
  0x1d   : > { %s3491_s13 = smov 128   ;;  %s3492_s14 = smov 8  }
  0x1e   : > { %3030 = dma.hbm_to_vmem [thread:$0]  (!%p3584_p11), %s4714_s3, 512, %s204_s7, [#allocation6], %s3491_s13, %s3491_s13, %s3492_s14  }
  0x1f   : > { %p28_p9 = scmp.eq.s32.totalorder %s27_s11, 0  ;;  %p37_p12 = scmp.ne.s32.totalorder %s3484_s23, %s3480_s22 }
  0x20   : > { %p38_p10 = scmp.eq.s32.totalorder %s3488_s24, 0  ;;  %p3040_p2 = scmp.lt.s32.totalorder %s3488_s24, 2 }
  0x21   : > { %s3606_s17 = scalar_select %p28_p9, %s3484_s23, %s30_s10  }
  0x22   : > { %p39_p13 = por %p38_p10, %p37_p12  ;;  %p4726_p0 = scmp.eq.s32.totalorder %s3556_s25, 1 }
  0x23   : > { %s223_s19 = sand.u32 1, %s3484_s23   ;;  %s3008_s20 = sshll.u32 %s3488_s24, 12 }
  0x24   : > { %p3610_p3 = por %p4726_p0, %p37_p12  ;;  %s2909_s26 = sshll.u32 %s223_s19, 8 }
  0x25   : > { %s3619_s12 = scalar_lea.hbm %s4711_s0, %s3008_s20  ;;  %s227_s7 = scalar_lea.vmem [#allocation2], %s2909_s26 }
  0x26   : > { %s4727_s18 = scalar_select %p3610_p3, 1, 0 }
  0x27   : > { %s235_s10 = sshll.u32 %s227_s7, 4  ;;  %p3621_p11 = pnand %p3040_p2, %p39_p13  ;;  %s3625_s10 = int_to_ptr.vmem [resolvable:$true] %s235_s10 }
  0x28   : > { %s3627_s13 = scalar_lea.sflag [#allocation3], %s223_s19  ;;  %s3392_s14 = scalar_lea.hbm %s3619_s12, 4096 }
  0x29   : > { %p3393_p5 = scmp.ne.s32.totalorder %s3619_s12, %s3392_s14  ;;  %p3394_p7 = pneg %p3621_p11 }
  0x2a   : > { %s3397_s20 = scalar_lea.hbm %s4711_s0, 8192  ;;  %p3398_p10 = scmp.lt.s32.totalorder %s3619_s12, %s4711_s0 }
  0x2b   : > { %p3395_p9 = pnand %p3394_p7, %p3393_p5  ;;  %p3399_p2 = scmp.lt.s32.totalorder %s3397_s20, %s3392_s14 }
  0x2d   : > { %p3396_p12 = pneg %p3395_p9  ;;  %p3400_p13 = por %p3399_p2, %p3398_p10 }
  0x2f   : > { %p3401_p0 = pnand %p3400_p13, %p3396_p12 }
  0x31   : > { %3404 = shalt.err (!%p3401_p0)
}
  0x32   : > { %s3405_s19 = scalar_lea.vmem %s3625_s10, 4096  ;;  %s3493_s8 = smov [#allocation2]  }
  0x33   : > { %p3406_p1 = scmp.ne.s32.totalorder %s3625_s10, %s3405_s19  ;;  %s3410_s7 = sshll.u32 %s3493_s8, 4  ;;  %s3411_s7 = int_to_ptr.vmem [resolvable:$false] %s3410_s7 }
  0x34   : > { %s3412_s15 = scalar_lea.vmem %s3411_s7, 8192  ;;  %p3413_p9 = scmp.lt.s32.totalorder %s3625_s10, %s3411_s7 }
  0x35   : > { %p3408_p6 = pnand %p3406_p1, %p3394_p7  ;;  %p3414_p3 = scmp.lt.s32.totalorder %s3412_s15, %s3405_s19 }
  0x37   : > { %p3409_p5 = pneg %p3408_p6  ;;  %p3415_p4 = por %p3414_p3, %p3413_p9 }
  0x39   : > { %p3416_p8 = pnand %p3415_p4, %p3409_p5 }
  0x3b   : > { %3419 = shalt.err (!%p3416_p8)
}
  0x3c   : > { %s3494_s14 = smov 256   ;;  %s3495_s16 = smov 16  }
  0x3d   : > { %3034 = dma.hbm_to_vmem [thread:$0]  (!%p3621_p11), %s3619_s12, 4096, %s3625_s10, %s3627_s13, %s3494_s14, %s3494_s14, %s3495_s16  }
  0x3e   : > { %p4729_p1 = scmp.ne.s32.totalorder %s4724_s29, 0 }
  0x3f   : > { %s3651_s20 = sand.u32 (!%p4729_p1), 1, %s3480_s22   ;;  %p4730_p4 = scmp.ne.s32.totalorder (!%p4729_p1), %s4722_s27, 0 }
  0x40   : > { %247 = sbr.rel (%p4729_p1) target bundleno = 3647 (0xe3f), region = 44  ;;  %s2914_s26 = sshll.u32 (!%p4729_p1), %s3651_s20, 8 }
  0x41   : > { %s250_s30 = scalar_lea.sflag (!%p4729_p1), [#allocation3], %s3651_s20  ;;  %s3657_s19 = scalar_lea.vmem (!%p4729_p1), [#allocation2], %s2914_s26 }
  0x45   : > { %3463 = dma.done.wait (%p4730_p4), %s250_s30, 4096  }
  0x46   : > { %3465 = vsyncadd (%p4730_p4), %s250_s30, 4294963200  ;;  %p4731_p6 = scmp.eq.s32.totalorder %s3556_s25, 0 }
  0x48   : > { %3467 = dma.done.wait (%p4731_p6), [#allocation6], 512   ;;  %p4732_p8 = pmov %p4731_p6 }
  0x49   : > { %v3496_v0 = vmov 0   ;;  %v346_v1 = vld [vmem:[%s3657_s19 + $0x68] sm:$0xff]  ;;  %v348_v2 = vld [vmem:[%s3657_s19 + $0x78] sm:$0xff]  ;;  %v345_v6 = vld [vmem:[%s3657_s19 + $0x60] sm:$0xff]  ;;  %vm397_vm0 = vcmask 523264   ;;  %s4543_s11 = scalar_lea.vmem [#allocation7], %s2914_s26 }
  0x4a   : > { %3469 = vsyncadd (%p4732_p8), [#allocation6], 4294966784  ;;  %442 = vmatprep.mubr.bf16.mxu0 %v3496_v0  ;;  %548 = vmatprep.mubr.bf16.mxu1 %v3496_v0  ;;  %v2934_v3 = vld [vmem:[%s3657_s19 + $0xe8] sm:$0xff]  ;;  %v356_v4 = vpack.c.bf16 %v348_v2, %v346_v1  ;;  %v2936_v5 = vld [vmem:[%s3657_s19 + $0xf8] sm:$0xff]  ;;  %s3010_s26 = sshll.u32 %s3556_s25, 12  ;;  %s2822_s13 = sshll.u32 %s4543_s11, 4  ;;  %s4666_s13 = int_to_ptr.vmem [resolvable:$true] %s2822_s13 }
  0x4b   : > { %3084 = vset.pattern.permute.xlu0 %v3496_v0  ;;  %3085 = vset.pattern.permute.xlu1 %v3496_v0  ;;  %v347_v7 = vld [vmem:[%s3657_s19 + $0x70] sm:$0xff]  ;;  %v515_v8 = vpack.c.bf16 %v2936_v5, %v2934_v3  ;;  %v2933_v10 = vld [vmem:[%s3657_s19 + $0xe0] sm:$0xff]  ;;  %v342_v12 = vld [vmem:[%s3657_s19 + $0x48] sm:$0xff]  ;;  %s4664_s15 = scalar_lea.hbm %s4717_s6, %s3010_s26  ;;  %s3420_s14 = scalar_lea.vmem %s4666_s13, 4096 }
  0x4c   : > { %v355_v9 = vpack.c.bf16 %v347_v7, %v345_v6  ;;  %v2935_v11 = vld [vmem:[%s3657_s19 + $0xf0] sm:$0xff]  ;;  %418 = vmatprep.subr.bf16.mxu0 %v356_v4  ;;  %v344_v14 = vld [vmem:[%s3657_s19 + $0x58] sm:$0xff]  ;;  %v2930_v15 = vld [vmem:[%s3657_s19 + $0xc8] sm:$0xff]  ;;  %p3421_p3 = scmp.ne.s32.totalorder %s4666_s13, %s3420_s14  ;;  %p4733_p11 = scmp.ne.s32.totalorder %s4727_s18, 0 }
  0x4d   : > { %v514_v13 = vpack.c.bf16 %v2935_v11, %v2933_v10  ;;  %v2932_v16 = vld [vmem:[%s3657_s19 + $0xd8] sm:$0xff]  ;;  %524 = vmatprep.subr.bf16.mxu1 %v515_v8  ;;  %v354_v17 = vpack.c.bf16 %v344_v14, %v342_v12  ;;  %v341_v19 = vld [vmem:[%s3657_s19 + $0x40] sm:$0xff]  ;;  %v343_v20 = vld [vmem:[%s3657_s19 + $0x50] sm:$0xff]  ;;  %s3497_s25 = smov [#allocation7]  }
  0x4e   : > { %419 = vmatpush1.bf16.msra.mxu0 %v355_v9  ;;  %v513_v18 = vpack.c.bf16 %v2932_v16, %v2930_v15  ;;  %v2929_v21 = vld [vmem:[%s3657_s19 + $0xc0] sm:$0xff]  ;;  %v353_v22 = vpack.c.bf16 %v343_v20, %v341_v19  ;;  %v2931_v23 = vld [vmem:[%s3657_s19 + $0xd0] sm:$0xff]  ;;  %v338_v24 = vld [vmem:[%s3657_s19 + $0x28] sm:$0xff]  ;;  %p3422_p7 = pnand %p3421_p3, %p4733_p11  ;;  %s3424_s16 = sshll.u32 %s3497_s25, 4  ;;  %s3425_s16 = int_to_ptr.vmem [resolvable:$false] %s3424_s16 }
  0x4f   : > { %525 = vmatpush1.bf16.msra.mxu1 %v514_v13  ;;  %v340_v25 = vld [vmem:[%s3657_s19 + $0x38] sm:$0xff]  ;;  %420 = vmatprep.subr.bf16.mxu0 %v354_v17  ;;  %v512_v26 = vpack.c.bf16 %v2931_v23, %v2929_v21  ;;  %v2926_v28 = vld [vmem:[%s3657_s19 + $0xa8] sm:$0xff]  ;;  %v337_v30 = vld [vmem:[%s3657_s19 + $0x20] sm:$0xff]  ;;  %s3426_s30 = scalar_lea.vmem %s3425_s16, 8192  ;;  %p3427_p10 = scmp.lt.s32.totalorder %s4666_s13, %s3425_s16 }
  0x50   : > { %526 = vmatprep.subr.bf16.mxu1 %v513_v18  ;;  %v352_v27 = vpack.c.bf16 %v340_v25, %v338_v24  ;;  %v2928_v29 = vld [vmem:[%s3657_s19 + $0xb8] sm:$0xff]  ;;  %v339_v32 = vld [vmem:[%s3657_s19 + $0x30] sm:$0xff]  ;;  %v2925_v33 = vld [vmem:[%s3657_s19 + $0xa0] sm:$0xff]  ;;  %p3423_p12 = pneg %p3422_p7  ;;  %p3428_p2 = scmp.lt.s32.totalorder %s3426_s30, %s3420_s14 }
  0x51   : > { %v511_v31 = vpack.c.bf16 %v2928_v29, %v2926_v28  ;;  %v2927_v34 = vld [vmem:[%s3657_s19 + $0xb0] sm:$0xff]  ;;  %v351_v35 = vpack.c.bf16 %v339_v32, %v337_v30  ;;  %v334_v36 = vld [vmem:[%s3657_s19 + $0x8] sm:$0xff]  ;;  %v336_v37 = vld [vmem:[%s3657_s19 + $0x18] sm:$0xff] }
  0x52   : > { %421 = vmatpush1.bf16.msra.mxu0 %v353_v22  ;;  %v2922_v38 = vld [vmem:[%s3657_s19 + $0x88] sm:$0xff]  ;;  %v510_v39 = vpack.c.bf16 %v2927_v34, %v2925_v33  ;;  %v350_v40 = vpack.c.bf16 %v336_v37, %v334_v36  ;;  %v2924_v41 = vld [vmem:[%s3657_s19 + $0x98] sm:$0xff]  ;;  %v333_v42 = vld [vmem:[%s3657_s19] sm:$0xff]  ;;  %p3429_p13 = por %p3428_p2, %p3427_p10 }
  0x53   : > { %527 = vmatpush1.bf16.msra.mxu1 %v512_v26  ;;  %422 = vmatprep.subr.bf16.mxu0 %v352_v27  ;;  %v335_v43 = vld [vmem:[%s3657_s19 + $0x10] sm:$0xff]  ;;  %v509_v44 = vpack.c.bf16 %v2924_v41, %v2922_v38  ;;  %v2921_v45 = vld [vmem:[%s3657_s19 + $0x80] sm:$0xff]  ;;  %v290_v49 = vld [vmem:[%s4712_s1 + $0x8] sm:$0xff] }
  0x54   : > { %528 = vmatprep.subr.bf16.mxu1 %v511_v31  ;;  %v2923_v46 = vld [vmem:[%s3657_s19 + $0x90] sm:$0xff]  ;;  %v349_v47 = vpack.c.bf16 %v335_v43, %v333_v42  ;;  %v289_v48 = vld [vmem:[%s4712_s1] sm:$0xff]  ;;  %v320_v54 = vld [vmem:[%s4713_s2 + $0x38] sm:$0xff]  ;;  %p3430_p0 = pnand %p3429_p13, %p3423_p12 }
  0x55   : > { %v508_v50 = vpack.c.bf16 %v2923_v46, %v2921_v45  ;;  %v319_v51 = vld [vmem:[%s4713_s2 + $0x30] sm:$0xff]  ;;  %v317_v52 = vld [vmem:[%s4713_s2 + $0x20] sm:$0xff]  ;;  %v297_v53 = vpack.c.bf16 %v290_v49, %v289_v48  ;;  %v318_v55 = vld [vmem:[%s4713_s2 + $0x28] sm:$0xff] }
  0x56   : > { %423 = vmatpush1.bf16.msra.mxu0 %v351_v35  ;;  %389 = vperm.xlu0 %3084, %v319_v51   ;;  %v315_v56 = vld [vmem:[%s4713_s2 + $0x10] sm:$0xff]  ;;  %v292_v58 = vld [vmem:[%s4712_s1 + $0x18] sm:$0xff]  ;;  %v313_v61 = vld [vmem:[%s4713_s2] sm:$0xff] }
  0x57   : > { %529 = vmatpush1.bf16.msra.mxu1 %v510_v39  ;;  %424 = vmatprep.subr.bf16.mxu0 %v350_v40  ;;  %v291_v57 = vld [vmem:[%s4712_s1 + $0x10] sm:$0xff]  ;;  %v316_v59 = vld [vmem:[%s4713_s2 + $0x18] sm:$0xff]  ;;  %v314_v62 = vld [vmem:[%s4713_s2 + $0x8] sm:$0xff] }
  0x58   : > { %530 = vmatprep.subr.bf16.mxu1 %v509_v44  ;;  %379 = vperm.xlu1 %3085, %v317_v52   ;;  %v298_v60 = vpack.c.bf16 %v292_v58, %v291_v57  ;;  %v293_v63 = vld [vmem:[%s4712_s1 + $0x20] sm:$0xff]  ;;  %v294_v1 = vld [vmem:[%s4712_s1 + $0x28] sm:$0xff]  ;;  %v295_v3 = vld [vmem:[%s4712_s1 + $0x30] sm:$0xff] }
  0x59   : > { %v299_v2 = vpack.c.bf16 %v294_v1, %v293_v63  ;;  %v296_v4 = vld [vmem:[%s4712_s1 + $0x38] sm:$0xff] }
  0x5a   : > { %425 = vmatpush1.bf16.msra.mxu0 %v349_v47  ;;  %394 = vperm.xlu0 %3084, %v320_v54   ;;  %v300_v5 = vpack.c.bf16 %v296_v4, %v295_v3 }
  0x5b   : > { %531 = vmatpush1.bf16.msra.mxu1 %v508_v50 }
  0x5c   : > { %384 = vperm.xlu1 %3085, %v318_v55  }
  0x5d   : > { %2917 = vmatmul.mubr.msk.bf16.vlgmr.msra.gmra.mxu0 %vm397_vm0, %v297_v53 }
  0x5e   : > { %2937 = vmatmul.mubr.msk.bf16.vlgmr.msra.gmra.mxu1 %vm397_vm0, %v297_v53  ;;  %452 = vmatprep.mubr.bf16.mxu0 %v3496_v0 }
  0x5f   : > { %558 = vmatprep.mubr.bf16.mxu1 %v3496_v0  ;;  %369 = vperm.xlu0 %3084, %v315_v56  }
  0x60   : > { %374 = vperm.xlu1 %3085, %v316_v59  }
  0x63   : > { %359 = vperm.xlu0 %3084, %v313_v61  }
  0x64   : > { %364 = vperm.xlu1 %3085, %v314_v62  }
  0x65   : > { %2918 = vmatmul.mubr.msk.bf16.gmra.mxu0 %vm397_vm0, %v298_v60 }
  0x66   : > { %2938 = vmatmul.mubr.msk.bf16.gmra.mxu1 %vm397_vm0, %v298_v60  ;;  %462 = vmatprep.mubr.bf16.mxu0 %v3496_v0 }
  0x67   : > { %568 = vmatprep.mubr.bf16.mxu1 %v3496_v0 }
  0x6d   : > { %2919 = vmatmul.mubr.msk.bf16.gmra.mxu0 %vm397_vm0, %v299_v2 }
  0x6e   : > { %2939 = vmatmul.mubr.msk.bf16.gmra.mxu1 %vm397_vm0, %v299_v2  ;;  %472 = vmatprep.mubr.bf16.mxu0 %v3496_v0 }
  0x6f   : > { %578 = vmatprep.mubr.bf16.mxu1 %v3496_v0 }
  0x75   : > { %2920 = vmatmul.mubr.msk.bf16.gmra.mxu0 %vm397_vm0, %v300_v5 }
  0x76   : > { %2940 = vmatmul.mubr.msk.bf16.gmra.mxu1 %vm397_vm0, %v300_v5  ;;  %637 = vmatprep.mubr.bf16.mxu0 %v3496_v0 }
  0xd1   : > { %v3792_v28 = vpop.permute.xlu0 %389 }
  0xd3   : > { %v3790_v26 = vpop.permute.xlu1 %379 }
  0xd5   : > { %v395_v35 = vpop.permute.xlu0 %394 }
  0xd7   : > { %v385_v33 = vpop.permute.xlu1 %384 }
  0xda   : > { %v370_v48 = vpop.permute.xlu0 %369 }
  0xdb   : > { %v3797_v43 = vpop.permute.xlu1 %374 }
  0xde   : > { %v360_v61 = vpop.permute.xlu0 %359 }
  0xdf   : > { %v365_v56 = vpop.permute.xlu1 %364 }
 0x11d   : > { %v3766_v6 = vpop.f32.mrf.mxu0 }
 0x11e   : > { %v3768_v7 = vpop.f32.mrf.mxu1 }
 0x11f   : > { %v3770_v8 = vpop.f32.mrf.mxu0 }
 0x120   : > { %v3772_v9 = vpop.f32.mrf.mxu1  ;;  %v447_v1 = vadd.f32 %v3770_v8, %v360_v61 }
 0x121   : > { %v3774_v10 = vpop.f32.mrf.mxu0 }
 0x122   : > { %v3776_v11 = vpop.f32.mrf.mxu1  ;;  %v449_v2 = vadd.f32 %v3774_v10, %v365_v56 }
 0x123   : > { %v450_v12 = vpop.f32.mrf.mxu0 }
 0x124   : > { %v3778_v13 = vpop.f32.mrf.mxu1  ;;  %v451_v59 = vadd.f32 %v450_v12, %v365_v56  ;;  %v445_v12 = vadd.f32 %v3766_v6, %v360_v61 }
 0x125   : > { %v454_v14 = vpop.f32.mrf.mxu0 }
 0x126   : > { %v3780_v15 = vpop.f32.mrf.mxu1  ;;  %v455_v62 = vadd.f32 %v454_v14, %v370_v48  ;;  %v3826_v4 = vpack.c.bf16 %v451_v59, %v447_v1  ;;  %v329_v14 = vld [vmem:[#allocation5] sm:$0xff]  ;;  %v3834_v8 = vpack.c.bf16 %v449_v2, %v445_v12 }
 0x127   : > { %v456_v16 = vpop.f32.mrf.mxu0 }
 0x128   : > { %v3782_v17 = vpop.f32.mrf.mxu1  ;;  %v457_v55 = vadd.f32 %v456_v16, %v370_v48  ;;  %v330_v16 = vld [vmem:[#allocation5 + $0x8] sm:$0xff] }
 0x129   : > { %v458_v18 = vpop.f32.mrf.mxu0  ;;  %v597_v6 = vpack.c.bf16 %v330_v16, %v329_v14 }
 0x12a   : > { %v3784_v19 = vpop.f32.mrf.mxu1  ;;  %v459_v57 = vadd.f32 %v458_v18, %v3797_v43 }
 0x12b   : > { %v460_v20 = vpop.f32.mrf.mxu0 }
 0x12c   : > { %v3786_v21 = vpop.f32.mrf.mxu1  ;;  %v461_v51 = vadd.f32 %v460_v20, %v3797_v43  ;;  %v3824_v3 = vpack.c.bf16 %v459_v57, %v455_v62 }
 0x12d   : > { %v464_v22 = vpop.f32.mrf.mxu0 }
 0x12e   : > { %v3788_v23 = vpop.f32.mrf.mxu1  ;;  %v465_v53 = vadd.f32 %v464_v22, %v3790_v26  ;;  %v3818_v60 = vpack.c.bf16 %v461_v51, %v457_v55 }
 0x12f   : > { %v466_v24 = vpop.f32.mrf.mxu0 }
 0x130   : > { %v572_v25 = vpop.f32.mrf.mxu1  ;;  %v467_v46 = vadd.f32 %v466_v24, %v3790_v26 }
 0x131   : > { %v468_v27 = vpop.f32.mrf.mxu0  ;;  %v573_v20 = vadd.f32 %v572_v25, %v3790_v26  ;;  %v567_v25 = vadd.f32 %v3786_v21, %v3797_v43 }
 0x132   : > { %v3794_v29 = vpop.f32.mrf.mxu1  ;;  %v469_v49 = vadd.f32 %v468_v27, %v385_v33 }
 0x133   : > { %v470_v30 = vpop.f32.mrf.mxu0 }
 0x134   : > { %v576_v31 = vpop.f32.mrf.mxu1  ;;  %v471_v40 = vadd.f32 %v470_v30, %v385_v33  ;;  %v3816_v58 = vpack.c.bf16 %v469_v49, %v465_v53  ;;  %v571_v30 = vadd.f32 %v3788_v23, %v3790_v26  ;;  %v561_v23 = vadd.f32 %v3780_v15, %v370_v48 }
 0x135   : > { %v474_v32 = vpop.f32.mrf.mxu0  ;;  %v577_v22 = vadd.f32 %v576_v31, %v385_v33  ;;  %v553_v26 = vadd.f32 %v3772_v9, %v360_v61  ;;  %v551_v15 = vadd.f32 %v3768_v7, %v360_v61 }
 0x136   : > { %v580_v36 = vpop.f32.mrf.mxu1  ;;  %v475_v44 = vadd.f32 %v474_v32, %v3792_v28  ;;  %v3806_v52 = vpack.c.bf16 %v471_v40, %v467_v46  ;;  %v575_v32 = vadd.f32 %v3794_v29, %v385_v33  ;;  %v557_v29 = vadd.f32 %v3778_v13, %v365_v56 }
 0x137   : > { %v476_v34 = vpop.f32.mrf.mxu0  ;;  %v581_v27 = vadd.f32 %v580_v36, %v3792_v28  ;;  %v3850_v31 = vpack.c.bf16 %v577_v22, %v573_v20  ;;  %v332_v36 = vld [vmem:[#allocation5 + $0x18] sm:$0xff] }
 0x138   : > { %v477_v41 = vadd.f32 %v476_v34, %v3792_v28  ;;  %v582_v45 = vpop.f32.mrf.mxu1  ;;  %v3860_v21 = vpack.c.bf16 %v575_v32, %v571_v30 }
 0x139   : > { %v478_v37 = vpop.f32.mrf.mxu0  ;;  %v583_v18 = vadd.f32 %v582_v45, %v3792_v28  ;;  %v331_v28 = vld [vmem:[#allocation5 + $0x10] sm:$0xff] }
 0x13a   : > { %v479_v38 = vadd.f32 %v478_v37, %v395_v35  ;;  %v584_v54 = vpop.f32.mrf.mxu1  ;;  %v598_v37 = vpack.c.bf16 %v332_v36, %v331_v28 }
 0x13b   : > { %v480_v39 = vpop.f32.mrf.mxu0  ;;  %v585_v10 = vadd.f32 %v584_v54, %v395_v35 }
 0x13c   : > { %v481_v42 = vadd.f32 %v480_v39, %v395_v35  ;;  %v3803_v50 = vpack.c.bf16 %v479_v38, %v475_v44  ;;  %v586_v63 = vpop.f32.mrf.mxu1  ;;  %v555_v38 = vadd.f32 %v3776_v11, %v365_v56  ;;  %v3873_v39 = vpack.c.bf16 %v557_v29, %v553_v26 }
 0x13d   : > { %v587_v5 = vadd.f32 %v586_v63, %v395_v35  ;;  %v3845_v34 = vpack.c.bf16 %v585_v10, %v581_v27  ;;  %v563_v35 = vadd.f32 %v3782_v17, %v370_v48  ;;  %v565_v17 = vadd.f32 %v3784_v19, %v3797_v43 }
 0x13e   : > { %v3801_v47 = vpack.c.bf16 %v481_v42, %v477_v41  ;;  %v3880_v9 = vpack.c.bf16 %v555_v38, %v551_v15 }
 0x13f   : > { %v3837_v24 = vpack.c.bf16 %v587_v5, %v583_v18  ;;  %v3865_v33 = vpack.c.bf16 %v567_v25, %v563_v35  ;;  %v3871_v19 = vpack.c.bf16 %v565_v17, %v561_v23 }
 0x140   : > { %613 = vmatprep.subr.bf16.mxu0 %v3801_v47  ;;  %768 = vmatprep.subr.bf16.mxu1 %v3801_v47 }
 0x141   : > { %614 = vmatpush1.bf16.msra.mxu0 %v3803_v50  ;;  %769 = vmatpush1.bf16.xpose.msra.mxu1 %v3803_v50 }
 0x142   : > { %615 = vmatprep.subr.bf16.mxu0 %v3806_v52  ;;  %770 = vmatprep.subr.bf16.mxu1 %v3806_v52 }
 0x145   : > { %616 = vmatpush1.bf16.msra.mxu0 %v3816_v58 }
 0x146   : > { %617 = vmatprep.subr.bf16.mxu0 %v3818_v60 }
 0x149   : > { %618 = vmatpush1.bf16.msra.mxu0 %v3824_v3  ;;  %771 = vmatpush1.bf16.xpose.msra.mxu1 %v3816_v58 }
 0x14a   : > { %619 = vmatprep.subr.bf16.mxu0 %v3826_v4  ;;  %772 = vmatprep.subr.bf16.mxu1 %v3818_v60 }
 0x14d   : > { %620 = vmatpush1.bf16.msra.mxu0 %v3834_v8 }
 0x14e   : > { %873 = vmatprep.subr.bf16.mxu0 %v3837_v24 }
 0x150   : > { %2941 = vmatmul.mubr.msk.bf16.vlgmr.msra.gmra.mxu0 %vm397_vm0, %v597_v6 }
 0x151   : > { %773 = vmatpush1.bf16.xpose.msra.mxu1 %v3824_v3  ;;  %874 = vmatpush1.bf16.msra.mxu0 %v3845_v34 }
 0x152   : > { %774 = vmatprep.subr.bf16.mxu1 %v3826_v4  ;;  %875 = vmatprep.subr.bf16.mxu0 %v3850_v31 }
 0x153   : > { %647 = vmatprep.mubr.bf16.mxu0 %v3496_v0 }
 0x155   : > { %876 = vmatpush1.bf16.msra.mxu0 %v3860_v21 }
 0x156   : > { %877 = vmatprep.subr.bf16.mxu0 %v3865_v33 }
 0x158   : > { %2942 = vmatmul.mubr.msk.bf16.gmra.mxu0 %vm397_vm0, %v598_v37 }
 0x159   : > { %775 = vmatpush1.bf16.xpose.msra.mxu1 %v3834_v8  ;;  %878 = vmatpush1.bf16.msra.mxu0 %v3871_v19 }
 0x15a   : > { %879 = vmatprep.subr.bf16.mxu0 %v3873_v39  ;;  %1028 = vmatprep.subr.bf16.mxu1 %v3837_v24 }
 0x15b   : > { %897 = vmatprep.mubr.bf16.mxu0 %v3496_v0 }
 0x15d   : > { %880 = vmatpush1.bf16.msra.mxu0 %v3880_v9 }
 0x15e   : > { %1141 = vmatprep.subr.bf16.mxu0 %v3801_v47 }
 0x160   : > { %2943 = vmatmul.mubr.msk.bf16.vlgmr.msra.gmra.mxu0 %vm397_vm0, %v597_v6 }
 0x161   : > { %1142 = vmatpush1.bf16.msra.mxu0 %v3803_v50  ;;  %907 = vmatprep.mubr.bf16.mxu0 %v3496_v0 }
 0x162   : > { %1143 = vmatprep.subr.bf16.mxu0 %v3806_v52 }
 0x165   : > { %1144 = vmatpush1.bf16.msra.mxu0 %v3816_v58 }
 0x166   : > { %1145 = vmatprep.subr.bf16.mxu0 %v3818_v60 }
 0x168   : > { %2944 = vmatmul.mubr.msk.bf16.gmra.mxu0 %vm397_vm0, %v598_v37 }
 0x169   : > { %1146 = vmatpush1.bf16.msra.mxu0 %v3824_v3  ;;  %1165 = vmatprep.mubr.bf16.mxu0 %v3496_v0 }
 0x16a   : > { %1147 = vmatprep.subr.bf16.mxu0 %v3826_v4 }
 0x16d   : > { %1148 = vmatpush1.bf16.msra.mxu0 %v3834_v8 }
 0x16e   : > { %1296 = vmatprep.subr.bf16.mxu0 %v3801_v47 }
 0x210   : > { %v639_v7 = vpop.f32.mrf.mxu0 }
 0x212   : > { %v641_v11 = vpop.f32.mrf.mxu0 }
 0x214   : > { %v643_v13 = vpop.f32.mrf.mxu0 }
 0x216   : > { %v645_v40 = vpop.f32.mrf.mxu0 }
 0x218   : > { %v649_v41 = vpop.f32.mrf.mxu0 }
 0x219   : > { %v658_v44 = vmax.f32 %v639_v7, %v649_v41 }
 0x21a   : > { %v651_v42 = vpop.f32.mrf.mxu0 }
 0x21b   : > { %v667_v48 = vmax.f32 %v641_v11, %v651_v42 }
 0x21c   : > { %v653_v43 = vpop.f32.mrf.mxu0 }
 0x21d   : > { %v659_v45 = vmax.f32 %v643_v13, %v653_v43 }
 0x21e   : > { %v655_v46 = vpop.f32.mrf.mxu0 }
 0x21f   : > { %v660_v49 = vmax.f32 %v658_v44, %v659_v45  ;;  %v668_v51 = vmax.f32 %v645_v40, %v655_v46 }
 0x220   : > { %v3897_v53 = vpop.f32.mrf.mxu0 }
 0x221   : > { %v661_v54 = vrot.slane %v660_v49, 4  ;;  %v669_v55 = vmax.f32 %v667_v48, %v668_v51 }
 0x222   : > { %v3899_v56 = vpop.f32.mrf.mxu0 }
 0x223   : > { %v662_v57 = vmax.f32 %v660_v49, %v661_v54  ;;  %v670_v59 = vrot.slane %v669_v55, 4 }
 0x224   : > { %v3901_v61 = vpop.f32.mrf.mxu0 }
 0x225   : > { %v663_v62 = vrot.slane %v662_v57, 2  ;;  %v671_v63 = vmax.f32 %v669_v55, %v670_v59 }
 0x226   : > { %v3903_v1 = vpop.f32.mrf.mxu0 }
 0x227   : > { %v664_v2 = vmax.f32 %v662_v57, %v663_v62  ;;  %v672_v5 = vrot.slane %v671_v63, 2 }
 0x228   : > { %v3905_v12 = vpop.f32.mrf.mxu0 }
 0x229   : > { %v665_v14 = vrot.slane %v664_v2, 1  ;;  %v673_v16 = vmax.f32 %v671_v63, %v672_v5  ;;  %v918_v22 = vmax.f32 %v3897_v53, %v3905_v12 }
 0x22a   : > { %v3907_v18 = vpop.f32.mrf.mxu0 }
 0x22b   : > { %v666_v10 = vmax.f32 %v664_v2, %v665_v14  ;;  %v674_v20 = vrot.slane %v673_v16, 1  ;;  %v927_v6 = vmax.f32 %v3899_v56, %v3907_v18 }
 0x22c   : > { %v913_v27 = vpop.f32.mrf.mxu0 }
 0x22d   : > { %v676_v30 = vsub.f32 %v639_v7, %v666_v10  ;;  %v678_v32 = vsub.f32 %v643_v13, %v666_v10  ;;  %v680_v35 = vsub.f32 %v649_v41, %v666_v10  ;;  %v682_v25 = vsub.f32 %v653_v43, %v666_v10 }
 0x22e   : > { %v675_v28 = vmax.f32 %v673_v16, %v674_v20  ;;  %v919_v36 = vmax.f32 %v3901_v61, %v913_v27  ;;  %v3914_v23 = vpop.f32.mrf.mxu0 }
 0x22f   : > { %v684_v17 = vmul.f32 1.442695, %v676_v30  ;;  %v688_v26 = vmul.f32 1.442695, %v678_v32  ;;  %v692_v29 = vmul.f32 1.442695, %v680_v35  ;;  %v928_v37 = vmax.f32 %v3903_v1, %v3914_v23 }
 0x230   : > { %v696_v15 = vmul.f32 1.442695, %v682_v25  ;;  %v677_v38 = vsub.f32 %v641_v11, %v675_v28  ;;  %v679_v44 = vsub.f32 %v645_v40, %v675_v28  ;;  %v681_v45 = vsub.f32 %v651_v42, %v675_v28 }
 0x231   : > { %3086 = vpow2.f32 %v684_v17  ;;  %v920_v7 = vmax.f32 %v918_v22, %v919_v36  ;;  %v929_v13 = vmax.f32 %v927_v6, %v928_v37  ;;  %v683_v41 = vsub.f32 %v655_v46, %v675_v28 }
 0x232   : > { %3088 = vpow2.f32 %v688_v26  ;;  %v686_v43 = vmul.f32 1.442695, %v677_v38  ;;  %v690_v48 = vmul.f32 1.442695, %v679_v44  ;;  %v694_v54 = vmul.f32 1.442695, %v681_v45 }
 0x233   : > { %3090 = vpow2.f32 %v692_v29  ;;  %v921_v49 = vrot.slane %v920_v7, 4  ;;  %v930_v51 = vrot.slane %v929_v13, 4  ;;  %v698_v59 = vmul.f32 1.442695, %v683_v41 }
 0x234   : > { %3092 = vpow2.f32 %v696_v15 }
 0x235   : > { %3094 = vpow2.f32 %v686_v43  ;;  %v922_v55 = vmax.f32 %v920_v7, %v921_v49  ;;  %v931_v57 = vmax.f32 %v929_v13, %v930_v51 }
 0x236   : > { %3096 = vpow2.f32 %v690_v48 }
 0x237   : > { %v923_v11 = vrot.slane %v922_v55, 2  ;;  %v932_v40 = vrot.slane %v931_v57, 2  ;;  %3098 = vpow2.f32 %v694_v54 }
 0x238   : > { %3100 = vpow2.f32 %v698_v59 }
 0x239   : > { %v924_v42 = vmax.f32 %v922_v55, %v923_v11  ;;  %v933_v62 = vmax.f32 %v931_v57, %v932_v40 }
 0x23b   : > { %v925_v63 = vrot.slane %v924_v42, 1  ;;  %v934_v46 = vrot.slane %v933_v62, 1 }
 0x23d   : > { %v926_v2 = vmax.f32 %v924_v42, %v925_v63  ;;  %v935_v5 = vmax.f32 %v933_v62, %v934_v46 }
 0x23e   : > { %v3918_v14 = vpop.eup %3086 }
 0x23f   : > { %v3920_v16 = vpop.eup %3088  ;;  %v936_v10 = vsub.f32 %v3897_v53, %v926_v2  ;;  %v938_v20 = vsub.f32 %v3901_v61, %v926_v2  ;;  %v940_v22 = vsub.f32 %v3905_v12, %v926_v2  ;;  %v942_v6 = vsub.f32 %v913_v27, %v926_v2 }
 0x240   : > { %v3925_v30 = vpop.eup %3090  ;;  %v700_v32 = vadd.f32 %v3920_v16, %v3918_v14  ;;  %v937_v35 = vsub.f32 %v3899_v56, %v935_v5  ;;  %v939_v25 = vsub.f32 %v3903_v1, %v935_v5  ;;  %v941_v53 = vsub.f32 %v3907_v18, %v935_v5 }
 0x241   : > { %v3931_v28 = vpop.eup %3092  ;;  %v944_v36 = vmul.f32 1.442695, %v936_v10  ;;  %v948_v17 = vmul.f32 1.442695, %v938_v20  ;;  %v952_v26 = vmul.f32 1.442695, %v940_v22  ;;  %v943_v29 = vsub.f32 %v3914_v23, %v935_v5 }
 0x242   : > { %v3934_v61 = vpop.eup %3094  ;;  %v701_v12 = vadd.f32 %v3925_v30, %v700_v32  ;;  %v956_v27 = vmul.f32 1.442695, %v942_v6  ;;  %v946_v56 = vmul.f32 1.442695, %v937_v35  ;;  %v950_v38 = vmul.f32 1.442695, %v939_v25 }
 0x243   : > { %v3938_v37 = vpop.eup %3096  ;;  %3102 = vpow2.f32 %v944_v36  ;;  %v954_v18 = vmul.f32 1.442695, %v941_v53  ;;  %v958_v13 = vmul.f32 1.442695, %v943_v29 }
 0x244   : > { %v702_v1 = vadd.f32 %v3931_v28, %v701_v12  ;;  %v709_v15 = vadd.f32 %v3938_v37, %v3934_v61  ;;  %3104 = vpow2.f32 %v948_v17  ;;  %v3099_v44 = vpop.eup %3098 }
 0x245   : > { %3106 = vpow2.f32 %v952_v26  ;;  %v3101_v41 = vpop.eup %3100 }
 0x246   : > { %v703_v45 = vrot.slane %v702_v1, 4  ;;  %v710_v7 = vadd.f32 %v3099_v44, %v709_v15  ;;  %3108 = vpow2.f32 %v956_v27 }
 0x247   : > { %3110 = vpow2.f32 %v946_v56 }
 0x248   : > { %v704_v23 = vadd.f32 %v703_v45, %v702_v1  ;;  %v711_v43 = vadd.f32 %v3101_v41, %v710_v7  ;;  %3112 = vpow2.f32 %v950_v38 }
 0x249   : > { %3114 = vpow2.f32 %v954_v18 }
 0x24a   : > { %v705_v48 = vrot.slane %v704_v23, 2  ;;  %v712_v49 = vrot.slane %v711_v43, 4  ;;  %3116 = vpow2.f32 %v958_v13 }
 0x24c   : > { %v706_v51 = vadd.f32 %v705_v48, %v704_v23  ;;  %v713_v54 = vadd.f32 %v712_v49, %v711_v43 }
 0x24e   : > { %v707_v55 = vrot.slane %v706_v51, 1  ;;  %v714_v57 = vrot.slane %v713_v54, 2 }
 0x250   : > { %v3103_v59 = vpop.eup %3102  ;;  %v708_v11 = vadd.f32 %v707_v55, %v706_v51  ;;  %v715_v40 = vadd.f32 %v714_v57, %v713_v54 }
 0x251   : > { %v3105_v42 = vpop.eup %3104 }
 0x252   : > { %v3107_v62 = vpop.eup %3106  ;;  %v716_v63 = vrot.slane %v715_v40, 1  ;;  %v960_v46 = vadd.f32 %v3105_v42, %v3103_v59  ;;  %3118 = vrcp.f32 %v708_v11 }
 0x253   : > { %v3109_v2 = vpop.eup %3108 }
 0x254   : > { %v3111_v5 = vpop.eup %3110  ;;  %v717_v10 = vadd.f32 %v716_v63, %v715_v40  ;;  %v961_v20 = vadd.f32 %v3107_v62, %v960_v46 }
 0x255   : > { %v3113_v22 = vpop.eup %3112 }
 0x256   : > { %v3115_v6 = vpop.eup %3114  ;;  %3120 = vrcp.f32 %v717_v10  ;;  %v962_v32 = vadd.f32 %v3109_v2, %v961_v20  ;;  %v969_v35 = vadd.f32 %v3113_v22, %v3111_v5 }
 0x257   : > { %v3117_v25 = vpop.eup %3116 }
 0x258   : > { %v963_v36 = vrot.slane %v962_v32, 4  ;;  %v970_v17 = vadd.f32 %v3115_v6, %v969_v35 }
 0x25a   : > { %v964_v26 = vadd.f32 %v963_v36, %v962_v32  ;;  %v971_v53 = vadd.f32 %v3117_v25, %v970_v17 }
 0x25c   : > { %v965_v12 = vrot.slane %v964_v26, 2  ;;  %v972_v27 = vrot.slane %v971_v53, 4 }
 0x25e   : > { %v966_v29 = vadd.f32 %v965_v12, %v964_v26  ;;  %v973_v56 = vadd.f32 %v972_v27, %v971_v53 }
 0x25f   : > { %v3119_v1 = vpop.eup %3118 }
 0x260   : > { %v967_v15 = vrot.slane %v966_v29, 1  ;;  %v974_v38 = vrot.slane %v973_v56, 2  ;;  %v722_v13 = vmul.f32 %v3119_v1, %v3920_v16  ;;  %v720_v23 = vmul.f32 %v3119_v1, %v3918_v14 }
 0x261   : > { %v724_v11 = vmul.f32 %v3119_v1, %v3925_v30  ;;  %v726_v14 = vmul.f32 %v3119_v1, %v3931_v28 }
 0x262   : > { %v968_v18 = vadd.f32 %v967_v15, %v966_v29  ;;  %v975_v45 = vadd.f32 %v974_v38, %v973_v56 }
 0x263   : > { %v3121_v7 = vpop.eup %3120 }
 0x264   : > { %3122 = vrcp.f32 %v968_v18  ;;  %v976_v43 = vrot.slane %v975_v45, 1  ;;  %v723_v48 = vmul.f32 %v3121_v7, %v3938_v37  ;;  %v721_v49 = vmul.f32 %v3121_v7, %v3934_v61 }
 0x265   : > { %v725_v57 = vmul.f32 %v3121_v7, %v3099_v44  ;;  %v727_v63 = vmul.f32 %v3121_v7, %v3101_v41 }
 0x266   : > { %v977_v51 = vadd.f32 %v976_v43, %v975_v45  ;;  %v731_v54 = vadd.f32 %v723_v48, %v722_v13  ;;  %v728_v55 = vadd.f32 %v721_v49, %v720_v23 }
 0x267   : > { %v734_v40 = vadd.f32 %v725_v57, %v724_v11  ;;  %v737_v16 = vadd.f32 %v727_v63, %v726_v14 }
 0x268   : > { %3124 = vrcp.f32 %v977_v51  ;;  %732 = vadd.xlane.f32.xlu1 %v731_v54  ;;  %729 = vadd.xlane.f32.xlu0 %v728_v55 }
 0x26c   : > { %735 = vadd.xlane.f32.xlu0 %v734_v40 }
 0x270   : > { %738 = vadd.xlane.f32.xlu0 %v737_v16 }
 0x271   : > { %v3123_v46 = vpop.eup %3122 }
 0x272   : > { %v3949_v37 = vmul.f32 %v3123_v46, %v3103_v59  ;;  %v3951_v61 = vmul.f32 %v3123_v46, %v3105_v42  ;;  %v3953_v20 = vmul.f32 %v3123_v46, %v3107_v62  ;;  %v3955_v44 = vmul.f32 %v3123_v46, %v3109_v2 }
 0x275   : > { %v3125_v10 = vpop.eup %3124 }
 0x276   : > { %v981_v32 = vmul.f32 %v3125_v10, %v3111_v5  ;;  %v983_v35 = vmul.f32 %v3125_v10, %v3113_v22  ;;  %v3957_v30 = vmul.f32 %v3125_v10, %v3115_v6  ;;  %v3959_v41 = vmul.f32 %v3125_v10, %v3117_v25 }
 0x278   : > { %v988_v28 = vadd.f32 %v981_v32, %v3949_v37  ;;  %v991_v36 = vadd.f32 %v983_v35, %v3951_v61  ;;  %v994_v59 = vadd.f32 %v3957_v30, %v3953_v20  ;;  %v997_v42 = vadd.f32 %v3959_v41, %v3955_v44 }
 0x27a   : > { %989 = vadd.xlane.f32.xlu1 %v988_v28  ;;  %992 = vadd.xlane.f32.xlu0 %v991_v36 }
 0x27e   : > { %995 = vadd.xlane.f32.xlu1 %v994_v59  ;;  %998 = vadd.xlane.f32.xlu0 %v997_v42 }
 0x2f1   : > { %v733_v62 = vpop.xlane.xlu1 %732  ;;  %v730_v2 = vpop.xlane.xlu0 %729 }
 0x2f2   : > { %v741_v5 = vadd.f32 1e-06, %v733_v62  ;;  %v740_v22 = vadd.f32 1e-06, %v730_v2 }
 0x2f4   : > { %3126 = vrcp.f32 %v741_v5 }
 0x2f5   : > { %3128 = vrcp.f32 %v740_v22  ;;  %v736_v6 = vpop.xlane.xlu0 %735 }
 0x2f6   : > { %v742_v25 = vadd.f32 1e-06, %v736_v6 }
 0x2f8   : > { %3130 = vrcp.f32 %v742_v25 }
 0x2f9   : > { %v739_v17 = vpop.xlane.xlu0 %738 }
 0x2fa   : > { %v743_v26 = vadd.f32 1e-06, %v739_v17 }
 0x2fc   : > { %3132 = vrcp.f32 %v743_v26 }
 0x301   : > { %v3127_v53 = vpop.eup %3126 }
 0x302   : > { %v3129_v12 = vpop.eup %3128  ;;  %v751_v27 = vmul.f32 %v3127_v53, %v723_v48  ;;  %v750_v29 = vmul.f32 %v3127_v53, %v722_v13 }
 0x303   : > { %v749_v56 = vmul.f32 %v3129_v12, %v721_v49  ;;  %v748_v1 = vmul.f32 %v3129_v12, %v720_v23  ;;  %v990_v15 = vpop.xlane.xlu1 %989  ;;  %v993_v38 = vpop.xlane.xlu0 %992 }
 0x304   : > { %v1000_v18 = vadd.f32 1e-06, %v990_v15  ;;  %v1001_v45 = vadd.f32 1e-06, %v993_v38 }
 0x305   : > { %v757_v7 = vpack.c.bf16 %v751_v27, %v749_v56  ;;  %v756_v43 = vpack.c.bf16 %v750_v29, %v748_v1  ;;  %v3131_v51 = vpop.eup %3130 }
 0x306   : > { %3134 = vrcp.f32 %v1000_v18  ;;  %v753_v13 = vmul.f32 %v3131_v51, %v725_v57  ;;  %v752_v23 = vmul.f32 %v3131_v51, %v724_v11 }
 0x307   : > { %792 = vmatprep.mubr.bf16.mxu1 %v757_v7  ;;  %3136 = vrcp.f32 %v1001_v45  ;;  %v996_v55 = vpop.xlane.xlu1 %995  ;;  %v999_v40 = vpop.xlane.xlu0 %998 }
 0x308   : > { %793 = vmatmul.mubr.bf16.vlgmr.msra.gmra.mxu1 %v756_v43  ;;  %v1002_v10 = vadd.f32 1e-06, %v996_v55  ;;  %v1003_v28 = vadd.f32 1e-06, %v999_v40 }
 0x309   : > { %v3133_v54 = vpop.eup %3132  ;;  %1029 = vmatpush1.bf16.xpose.msra.mxu1 %v3845_v34 }
 0x30a   : > { %1030 = vmatprep.subr.bf16.mxu1 %v3850_v31  ;;  %v755_v48 = vmul.f32 %v3133_v54, %v727_v63  ;;  %v754_v49 = vmul.f32 %v3133_v54, %v726_v14  ;;  %3138 = vrcp.f32 %v1002_v10 }
 0x30b   : > { %3140 = vrcp.f32 %v1003_v28 }
 0x30c   : > { %v759_v16 = vpack.c.bf16 %v755_v48, %v753_v13  ;;  %v758_v46 = vpack.c.bf16 %v754_v49, %v752_v23 }
 0x30e   : > { %800 = vmatprep.mubr.bf16.mxu1 %v759_v16 }
 0x310   : > { %801 = vmatmul.mubr.bf16.gmra.mxu1 %v758_v46 }
 0x311   : > { %1031 = vmatpush1.bf16.xpose.msra.mxu1 %v3860_v21 }
 0x312   : > { %1032 = vmatprep.subr.bf16.mxu1 %v3865_v33 }
 0x313   : > { %v3135_v36 = vpop.eup %3134 }
 0x314   : > { %v3137_v59 = vpop.eup %3136  ;;  %v1009_v42 = vmul.f32 %v3135_v36, %v981_v32  ;;  %v1008_v62 = vmul.f32 %v3135_v36, %v3949_v37 }
 0x315   : > { %v1011_v57 = vmul.f32 %v3137_v59, %v983_v35  ;;  %v1010_v2 = vmul.f32 %v3137_v59, %v3951_v61 }
 0x317   : > { %v1017_v63 = vpack.c.bf16 %v1011_v57, %v1009_v42  ;;  %v3139_v11 = vpop.eup %3138  ;;  %v1016_v32 = vpack.c.bf16 %v1010_v2, %v1008_v62 }
 0x318   : > { %v3141_v14 = vpop.eup %3140  ;;  %v1013_v5 = vmul.f32 %v3139_v11, %v3957_v30  ;;  %v1012_v6 = vmul.f32 %v3139_v11, %v3953_v20 }
 0x319   : > { %1033 = vmatpush1.bf16.xpose.msra.mxu1 %v3871_v19  ;;  %1052 = vmatprep.mubr.bf16.mxu1 %v1017_v63  ;;  %v1015_v22 = vmul.f32 %v3141_v14, %v3959_v41  ;;  %v1014_v25 = vmul.f32 %v3141_v14, %v3955_v44 }
 0x31a   : > { %1034 = vmatprep.subr.bf16.mxu1 %v3873_v39 }
 0x31b   : > { %v1019_v35 = vpack.c.bf16 %v1015_v22, %v1013_v5  ;;  %v1018_v37 = vpack.c.bf16 %v1014_v25, %v1012_v6 }
 0x321   : > { %1035 = vmatpush1.bf16.xpose.msra.mxu1 %v3880_v9 }
 0x322   : > { %1409 = vmatprep.subr.bf16.mxu1 %v3837_v24 }
 0x328   : > { %1053 = vmatmul.mubr.bf16.vlgmr.msra.gmra.mxu1 %v1016_v32 }
 0x329   : > { %1410 = vmatpush1.bf16.msra.mxu1 %v3845_v34  ;;  %1060 = vmatprep.mubr.bf16.mxu1 %v1019_v35 }
 0x32a   : > { %1411 = vmatprep.subr.bf16.mxu1 %v3850_v31 }
 0x32d   : > { %1412 = vmatpush1.bf16.msra.mxu1 %v3860_v21 }
 0x32e   : > { %1413 = vmatprep.subr.bf16.mxu1 %v3865_v33 }
 0x330   : > { %1061 = vmatmul.mubr.bf16.gmra.mxu1 %v1018_v37 }
 0x331   : > { %1414 = vmatpush1.bf16.msra.mxu1 %v3871_v19  ;;  %1433 = vmatprep.mubr.bf16.mxu1 %v3496_v0 }
 0x332   : > { %1415 = vmatprep.subr.bf16.mxu1 %v3873_v39 }
 0x335   : > { %1416 = vmatpush1.bf16.msra.mxu1 %v3880_v9 }
 0x336   : > { %1564 = vmatprep.subr.bf16.mxu1 %v3837_v24 }
 0x3c8   : > { %v3990_v61 = vpop.f32.mrf.mxu1 }
 0x3c9   : > { %v809_v20 = vmul.f32 %v3990_v61, %v3990_v61 }
 0x3ca   : > { %v796_v44 = vpop.f32.mrf.mxu1 }
 0x3cb   : > { %v813_v30 = vsel %vm397_vm0, %v809_v20, 0.0 }
 0x3cc   : > { %814 = vadd.xlane.f32.xlu1 %v813_v30  ;;  %v3995_v41 = vpop.f32.mrf.mxu1 }
 0x3cd   : > { %v810_v17 = vmul.f32 %v3995_v41, %v3995_v41 }
 0x3ce   : > { %v799_v26 = vpop.f32.mrf.mxu1 }
 0x3cf   : > { %v816_v53 = vsel %vm397_vm0, %v810_v17, 0.0 }
 0x3d0   : > { %817 = vadd.xlane.f32.xlu0 %v816_v53  ;;  %v4000_v12 = vpop.f32.mrf.mxu1 }
 0x3d1   : > { %v811_v27 = vmul.f32 %v4000_v12, %v4000_v12 }
 0x3d2   : > { %v804_v29 = vpop.f32.mrf.mxu1 }
 0x3d3   : > { %v819_v56 = vsel %vm397_vm0, %v811_v27, 0.0 }
 0x3d4   : > { %820 = vadd.xlane.f32.xlu1 %v819_v56  ;;  %v4005_v1 = vpop.f32.mrf.mxu1 }
 0x3d5   : > { %v812_v15 = vmul.f32 %v4005_v1, %v4005_v1 }
 0x3d6   : > { %v807_v38 = vpop.f32.mrf.mxu1 }
 0x3d7   : > { %v822_v18 = vsel %vm397_vm0, %v812_v15, 0.0 }
 0x3d8   : > { %823 = vadd.xlane.f32.xlu0 %v822_v18 }
 0x3e8   : > { %v4010_v45 = vpop.f32.mrf.mxu1 }
 0x3e9   : > { %v1069_v7 = vmul.f32 %v4010_v45, %v4010_v45 }
 0x3ea   : > { %v1056_v43 = vpop.f32.mrf.mxu1 }
 0x3eb   : > { %v1073_v51 = vsel %vm397_vm0, %v1069_v7, 0.0 }
 0x3ec   : > { %1074 = vadd.xlane.f32.xlu1 %v1073_v51  ;;  %v4015_v54 = vpop.f32.mrf.mxu1 }
 0x3ed   : > { %v1070_v55 = vmul.f32 %v4015_v54, %v4015_v54 }
 0x3ee   : > { %v1059_v13 = vpop.f32.mrf.mxu1 }
 0x3ef   : > { %v1076_v48 = vsel %vm397_vm0, %v1070_v55, 0.0 }
 0x3f0   : > { %1077 = vadd.xlane.f32.xlu0 %v1076_v48  ;;  %v4020_v23 = vpop.f32.mrf.mxu1 }
 0x3f1   : > { %v1071_v49 = vmul.f32 %v4020_v23, %v4020_v23 }
 0x3f2   : > { %v1064_v40 = vpop.f32.mrf.mxu1 }
 0x3f3   : > { %v1079_v16 = vsel %vm397_vm0, %v1071_v49, 0.0 }
 0x3f4   : > { %1080 = vadd.xlane.f32.xlu1 %v1079_v16  ;;  %v4025_v46 = vpop.f32.mrf.mxu1 }
 0x3f5   : > { %v1072_v10 = vmul.f32 %v4025_v46, %v4025_v46 }
 0x3f6   : > { %v1067_v28 = vpop.f32.mrf.mxu1 }
 0x3f7   : > { %v1082_v36 = vsel %vm397_vm0, %v1072_v10, 0.0 }
 0x3f8   : > { %1083 = vadd.xlane.f32.xlu0 %v1082_v36 }
 0x455   : > { %v815_v59 = vpop.xlane.xlu1 %814 }
 0x456   : > { %3142 = vrsqrt.f32 %v815_v59  ;;  %vm827_vm1 = vcmp.eq.f32.partialorder %v815_v59, inf  ;;  %v830_v62 = vand.u32 2147483648, %v815_v59  ;;  %vm829_vm2 = vcmp.eq.f32.partialorder %v815_v59, 0.0 }
 0x459   : > { %v818_v42 = vpop.xlane.xlu0 %817 }
 0x45a   : > { %3144 = vrsqrt.f32 %v818_v42  ;;  %vm834_vm3 = vcmp.eq.f32.partialorder %v818_v42, inf  ;;  %v837_v6 = vand.u32 2147483648, %v818_v42  ;;  %vm836_vm4 = vcmp.eq.f32.partialorder %v818_v42, 0.0 }
 0x45d   : > { %v821_v57 = vpop.xlane.xlu1 %820 }
 0x45e   : > { %3146 = vrsqrt.f32 %v821_v57  ;;  %vm841_vm5 = vcmp.eq.f32.partialorder %v821_v57, inf  ;;  %v844_v17 = vand.u32 2147483648, %v821_v57  ;;  %vm843_vm6 = vcmp.eq.f32.partialorder %v821_v57, 0.0 }
 0x461   : > { %v824_v63 = vpop.xlane.xlu0 %823 }
 0x462   : > { %3148 = vrsqrt.f32 %v824_v63  ;;  %vm848_vm7 = vcmp.eq.f32.partialorder %v824_v63, inf  ;;  %v851_v15 = vand.u32 2147483648, %v824_v63  ;;  %vm850_vm8 = vcmp.eq.f32.partialorder %v824_v63, 0.0 }
 0x463   : > { %v3143_v11 = vpop.eup %3142 }
 0x464   : > { %v826_v14 = vmul.f32 %v3143_v11, %v815_v59 }
 0x466   : > { %v828_v2 = vsel %vm827_vm1, %v815_v59, %v826_v14 }
 0x467   : > { %v3145_v5 = vpop.eup %3144  ;;  %v831_v22 = vsel %vm829_vm2, %v830_v62, %v828_v2 }
 0x468   : > { %v833_v32 = vmul.f32 %v3145_v5, %v818_v42  ;;  %v853_v35 = vadd.f32 1e-06, %v831_v22 }
 0x46a   : > { %v835_v25 = vsel %vm834_vm3, %v818_v42, %v833_v32  ;;  %3150 = vrcp.f32 %v853_v35 }
 0x46b   : > { %v3147_v37 = vpop.eup %3146  ;;  %v838_v20 = vsel %vm836_vm4, %v837_v6, %v835_v25 }
 0x46c   : > { %v854_v44 = vadd.f32 1e-06, %v838_v20  ;;  %v840_v30 = vmul.f32 %v3147_v37, %v821_v57 }
 0x46e   : > { %3152 = vrcp.f32 %v854_v44  ;;  %v842_v26 = vsel %vm841_vm5, %v821_v57, %v840_v30 }
 0x46f   : > { %v3149_v53 = vpop.eup %3148  ;;  %v845_v27 = vsel %vm843_vm6, %v844_v17, %v842_v26 }
 0x470   : > { %v855_v29 = vadd.f32 1e-06, %v845_v27  ;;  %v847_v56 = vmul.f32 %v3149_v53, %v824_v63 }
 0x472   : > { %v849_v38 = vsel %vm848_vm7, %v824_v63, %v847_v56  ;;  %3154 = vrcp.f32 %v855_v29 }
 0x473   : > { %v852_v18 = vsel %vm850_vm8, %v851_v15, %v849_v38 }
 0x474   : > { %v856_v7 = vadd.f32 1e-06, %v852_v18 }
 0x475   : > { %v1075_v43 = vpop.xlane.xlu1 %1074 }
 0x476   : > { %3156 = vrcp.f32 %v856_v7  ;;  %vm1087_vm9 = vcmp.eq.f32.partialorder %v1075_v43, inf  ;;  %v1090_v57 = vand.u32 2147483648, %v1075_v43  ;;  %vm1089_vm10 = vcmp.eq.f32.partialorder %v1075_v43, 0.0 }
 0x477   : > { %3158 = vrsqrt.f32 %v1075_v43  ;;  %v3151_v55 = vpop.eup %3150 }
 0x478   : > { %v861_v40 = vmul.f32 %v3151_v55, %v3990_v61 }
 0x479   : > { %v1078_v51 = vpop.xlane.xlu0 %1077 }
 0x47a   : > { %3160 = vrsqrt.f32 %v1078_v51  ;;  %vm1094_vm11 = vcmp.eq.f32.partialorder %v1078_v51, inf  ;;  %v1097_v22 = vand.u32 2147483648, %v1078_v51  ;;  %vm1096_vm12 = vcmp.eq.f32.partialorder %v1078_v51, 0.0 }
 0x47b   : > { %v3153_v13 = vpop.eup %3152 }
 0x47c   : > { %v862_v48 = vmul.f32 %v3153_v13, %v3995_v41 }
 0x47d   : > { %v1081_v49 = vpop.xlane.xlu1 %1080 }
 0x47e   : > { %3162 = vrsqrt.f32 %v1081_v49  ;;  %v1125_v16 = vpack.c.bf16 %v862_v48, %v861_v40  ;;  %vm1101_vm13 = vcmp.eq.f32.partialorder %v1081_v49, inf  ;;  %v1104_v25 = vand.u32 2147483648, %v1081_v49 }
 0x47f   : > { %v3155_v10 = vpop.eup %3154  ;;  %vm1103_vm14 = vcmp.eq.f32.partialorder %v1081_v49, 0.0 }
 0x480   : > { %2945 = vmatmul.mubr.msk.bf16.vlgmr.msra.gmra.mxu0 %vm397_vm0, %v1125_v16  ;;  %v863_v41 = vmul.f32 %v3155_v10, %v4000_v12 }
 0x481   : > { %v1084_v28 = vpop.xlane.xlu0 %1083  ;;  %1297 = vmatpush1.bf16.xpose.msra.mxu0 %v3803_v50  ;;  %1175 = vmatprep.mubr.bf16.mxu0 %v3496_v0 }
 0x482   : > { %3164 = vrsqrt.f32 %v1084_v28  ;;  %1298 = vmatprep.subr.bf16.mxu0 %v3806_v52  ;;  %vm1108_vm15 = vcmp.eq.f32.partialorder %v1084_v28, inf  ;;  %v1111_v26 = vand.u32 2147483648, %v1084_v28  ;;  %vm1110_vm1 = vcmp.eq.f32.partialorder %v1084_v28, 0.0 }
 0x483   : > { %v3157_v36 = vpop.eup %3156 }
 0x484   : > { %v3159_v59 = vpop.eup %3158  ;;  %v864_v42 = vmul.f32 %v3157_v36, %v4005_v1 }
 0x485   : > { %v1086_v61 = vmul.f32 %v3159_v59, %v1075_v43 }
 0x486   : > { %v1126_v63 = vpack.c.bf16 %v864_v42, %v863_v41 }
 0x487   : > { %v3161_v11 = vpop.eup %3160  ;;  %v1088_v14 = vsel %vm1087_vm9, %v1075_v43, %v1086_v61 }
 0x488   : > { %v1091_v62 = vsel %vm1089_vm10, %v1090_v57, %v1088_v14  ;;  %v1093_v2 = vmul.f32 %v3161_v11, %v1078_v51  ;;  %2946 = vmatmul.mubr.msk.bf16.gmra.mxu0 %vm397_vm0, %v1126_v63 }
 0x489   : > { %v1113_v5 = vadd.f32 1e-06, %v1091_v62  ;;  %1299 = vmatpush1.bf16.xpose.msra.mxu0 %v3816_v58 }
 0x48a   : > { %v1095_v32 = vsel %vm1094_vm11, %v1078_v51, %v1093_v2  ;;  %1300 = vmatprep.subr.bf16.mxu0 %v3818_v60 }
 0x48b   : > { %v3163_v12 = vpop.eup %3162  ;;  %v1098_v1 = vsel %vm1096_vm12, %v1097_v22, %v1095_v32  ;;  %3166 = vrcp.f32 %v1113_v5 }
 0x48c   : > { %v1114_v35 = vadd.f32 1e-06, %v1098_v1  ;;  %v1100_v6 = vmul.f32 %v3163_v12, %v1081_v49 }
 0x48e   : > { %3168 = vrcp.f32 %v1114_v35  ;;  %v1102_v37 = vsel %vm1101_vm13, %v1081_v49, %v1100_v6 }
 0x48f   : > { %v3165_v20 = vpop.eup %3164  ;;  %v1105_v44 = vsel %vm1103_vm14, %v1104_v25, %v1102_v37 }
 0x490   : > { %v1115_v30 = vadd.f32 1e-06, %v1105_v44  ;;  %v1107_v17 = vmul.f32 %v3165_v20, %v1084_v28 }
 0x491   : > { %1301 = vmatpush1.bf16.xpose.msra.mxu0 %v3824_v3 }
 0x492   : > { %v1109_v53 = vsel %vm1108_vm15, %v1084_v28, %v1107_v17  ;;  %1302 = vmatprep.subr.bf16.mxu0 %v3826_v4  ;;  %3170 = vrcp.f32 %v1115_v30 }
 0x493   : > { %v1112_v27 = vsel %vm1110_vm1, %v1111_v26, %v1109_v53 }
 0x494   : > { %v1116_v29 = vadd.f32 1e-06, %v1112_v27 }
 0x496   : > { %3172 = vrcp.f32 %v1116_v29 }
 0x498   : > { %v3167_v56 = vpop.eup %3166 }
 0x499   : > { %1303 = vmatpush1.bf16.xpose.msra.mxu0 %v3834_v8  ;;  %v1121_v38 = vmul.f32 %v3167_v56, %v4010_v45 }
 0x49a   : > { %1677 = vmatprep.subr.bf16.mxu0 %v3801_v47 }
 0x49b   : > { %v3169_v15 = vpop.eup %3168 }
 0x49c   : > { %v1122_v18 = vmul.f32 %v3169_v15, %v4015_v54 }
 0x49e   : > { %v1393_v7 = vpack.c.bf16 %v1122_v18, %v1121_v38 }
 0x49f   : > { %v3171_v43 = vpop.eup %3170 }
 0x4a0   : > { %2947 = vmatmul.mubr.msk.bf16.vlgmr.msra.gmra.mxu1 %vm397_vm0, %v1393_v7  ;;  %v1123_v55 = vmul.f32 %v3171_v43, %v4020_v23 }
 0x4a1   : > { %1565 = vmatpush1.bf16.xpose.msra.mxu1 %v3845_v34  ;;  %1443 = vmatprep.mubr.bf16.mxu1 %v3496_v0 }
 0x4a2   : > { %1566 = vmatprep.subr.bf16.mxu1 %v3850_v31 }
 0x4a3   : > { %v3173_v51 = vpop.eup %3172 }
 0x4a4   : > { %v1124_v13 = vmul.f32 %v3173_v51, %v4025_v46 }
 0x4a6   : > { %v1394_v48 = vpack.c.bf16 %v1124_v13, %v1123_v55 }
 0x4a8   : > { %2948 = vmatmul.mubr.msk.bf16.gmra.mxu1 %vm397_vm0, %v1394_v48 }
 0x4a9   : > { %1567 = vmatpush1.bf16.xpose.msra.mxu1 %v3860_v21 }
 0x4aa   : > { %1568 = vmatprep.subr.bf16.mxu1 %v3865_v33 }
 0x4b1   : > { %1569 = vmatpush1.bf16.xpose.msra.mxu1 %v3871_v19 }
 0x4b2   : > { %1570 = vmatprep.subr.bf16.mxu1 %v3873_v39 }
 0x4b9   : > { %1571 = vmatpush1.bf16.xpose.msra.mxu1 %v3880_v9 }
 0x4ba   : > { %1945 = vmatprep.subr.bf16.mxu1 %v3837_v24 }
 0x540   : > { %v1167_v45 = vpop.f32.mrf.mxu0 }
 0x542   : > { %v1169_v54 = vpop.f32.mrf.mxu0 }
 0x544   : > { %v1171_v23 = vpop.f32.mrf.mxu0 }
 0x546   : > { %v1173_v49 = vpop.f32.mrf.mxu0 }
 0x548   : > { %v1177_v46 = vpop.f32.mrf.mxu0 }
 0x549   : > { %v1186_v10 = vmax.f32 %v1167_v45, %v1177_v46 }
 0x54a   : > { %v1179_v40 = vpop.f32.mrf.mxu0 }
 0x54b   : > { %v1195_v59 = vmax.f32 %v1169_v54, %v1179_v40 }
 0x54c   : > { %v1181_v16 = vpop.f32.mrf.mxu0 }
 0x54d   : > { %v1187_v28 = vmax.f32 %v1171_v23, %v1181_v16 }
 0x54e   : > { %v1183_v36 = vpop.f32.mrf.mxu0 }
 0x54f   : > { %v1188_v41 = vmax.f32 %v1186_v10, %v1187_v28  ;;  %v1196_v42 = vmax.f32 %v1173_v49, %v1183_v36 }
 0x551   : > { %v1189_v61 = vrot.slane %v1188_v41, 4  ;;  %v1197_v57 = vmax.f32 %v1195_v59, %v1196_v42 }
 0x553   : > { %v1190_v63 = vmax.f32 %v1188_v41, %v1189_v61  ;;  %v1198_v11 = vrot.slane %v1197_v57, 4 }
 0x555   : > { %v1191_v14 = vrot.slane %v1190_v63, 2  ;;  %v1199_v62 = vmax.f32 %v1197_v57, %v1198_v11 }
 0x557   : > { %v1192_v2 = vmax.f32 %v1190_v63, %v1191_v14  ;;  %v1200_v5 = vrot.slane %v1199_v62, 2 }
 0x559   : > { %v1193_v22 = vrot.slane %v1192_v2, 1  ;;  %v1201_v32 = vmax.f32 %v1199_v62, %v1200_v5 }
 0x55b   : > { %v1194_v12 = vmax.f32 %v1192_v2, %v1193_v22  ;;  %v1202_v1 = vrot.slane %v1201_v32, 1 }
 0x55d   : > { %v1204_v35 = vsub.f32 %v1167_v45, %v1194_v12  ;;  %v1206_v6 = vsub.f32 %v1171_v23, %v1194_v12  ;;  %v1208_v25 = vsub.f32 %v1177_v46, %v1194_v12  ;;  %v1210_v37 = vsub.f32 %v1181_v16, %v1194_v12 }
 0x55e   : > { %v1203_v20 = vmax.f32 %v1201_v32, %v1202_v1 }
 0x55f   : > { %v1212_v44 = vmul.f32 1.442695, %v1204_v35  ;;  %v1216_v30 = vmul.f32 1.442695, %v1206_v6  ;;  %v1220_v17 = vmul.f32 1.442695, %v1208_v25 }
 0x560   : > { %v4060_v26 = vpop.f32.mrf.mxu1  ;;  %v1224_v53 = vmul.f32 1.442695, %v1210_v37  ;;  %v1205_v27 = vsub.f32 %v1169_v54, %v1203_v20  ;;  %v1207_v29 = vsub.f32 %v1173_v49, %v1203_v20  ;;  %v1209_v56 = vsub.f32 %v1179_v40, %v1203_v20 }
 0x561   : > { %3174 = vpow2.f32 %v1212_v44  ;;  %v1211_v38 = vsub.f32 %v1183_v36, %v1203_v20 }
 0x562   : > { %v4062_v15 = vpop.f32.mrf.mxu1  ;;  %3176 = vpow2.f32 %v1216_v30  ;;  %v1214_v18 = vmul.f32 1.442695, %v1205_v27  ;;  %v1218_v7 = vmul.f32 1.442695, %v1207_v29  ;;  %v1222_v51 = vmul.f32 1.442695, %v1209_v56 }
 0x563   : > { %3178 = vpow2.f32 %v1220_v17  ;;  %v1226_v13 = vmul.f32 1.442695, %v1211_v38 }
 0x564   : > { %v1439_v43 = vpop.f32.mrf.mxu1  ;;  %3180 = vpow2.f32 %v1224_v53 }
 0x565   : > { %3182 = vpow2.f32 %v1214_v18 }
 0x566   : > { %v4064_v55 = vpop.f32.mrf.mxu1  ;;  %3184 = vpow2.f32 %v1218_v7 }
 0x567   : > { %3186 = vpow2.f32 %v1222_v51 }
 0x568   : > { %v1445_v48 = vpop.f32.mrf.mxu1  ;;  %3188 = vpow2.f32 %v1226_v13 }
 0x569   : > { %v1454_v23 = vmax.f32 %v4060_v26, %v1445_v48 }
 0x56a   : > { %v4066_v45 = vpop.f32.mrf.mxu1 }
 0x56b   : > { %v1463_v16 = vmax.f32 %v4062_v15, %v4066_v45 }
 0x56c   : > { %v1449_v54 = vpop.f32.mrf.mxu1 }
 0x56d   : > { %v1455_v49 = vmax.f32 %v1439_v43, %v1449_v54 }
 0x56e   : > { %v4069_v46 = vpop.f32.mrf.mxu1  ;;  %v4071_v40 = vpop.eup %3174 }
 0x56f   : > { %v1456_v10 = vmax.f32 %v1454_v23, %v1455_v49  ;;  %v1464_v28 = vmax.f32 %v4064_v55, %v4069_v46  ;;  %v4077_v36 = vpop.eup %3176 }
 0x570   : > { %v4079_v59 = vpop.eup %3178  ;;  %v1228_v41 = vadd.f32 %v4077_v36, %v4071_v40 }
 0x571   : > { %v1457_v42 = vrot.slane %v1456_v10, 4  ;;  %v1465_v61 = vmax.f32 %v1463_v16, %v1464_v28  ;;  %v4083_v57 = vpop.eup %3180 }
 0x572   : > { %v4085_v63 = vpop.eup %3182  ;;  %v1229_v11 = vadd.f32 %v4079_v59, %v1228_v41 }
 0x573   : > { %v1458_v14 = vmax.f32 %v1456_v10, %v1457_v42  ;;  %v1466_v62 = vrot.slane %v1465_v61, 4  ;;  %v4088_v2 = vpop.eup %3184 }
 0x574   : > { %v1230_v5 = vadd.f32 %v4083_v57, %v1229_v11  ;;  %v1237_v22 = vadd.f32 %v4088_v2, %v4085_v63  ;;  %v4093_v1 = vpop.eup %3186 }
 0x575   : > { %v1459_v32 = vrot.slane %v1458_v14, 2  ;;  %v1467_v12 = vmax.f32 %v1465_v61, %v1466_v62  ;;  %v4096_v20 = vpop.eup %3188 }
 0x576   : > { %v1231_v35 = vrot.slane %v1230_v5, 4  ;;  %v1238_v6 = vadd.f32 %v4093_v1, %v1237_v22 }
 0x577   : > { %v1460_v25 = vmax.f32 %v1458_v14, %v1459_v32  ;;  %v1468_v37 = vrot.slane %v1467_v12, 2 }
 0x578   : > { %v1232_v44 = vadd.f32 %v1231_v35, %v1230_v5  ;;  %v1239_v30 = vadd.f32 %v4096_v20, %v1238_v6 }
 0x579   : > { %v1461_v17 = vrot.slane %v1460_v25, 1  ;;  %v1469_v53 = vmax.f32 %v1467_v12, %v1468_v37 }
 0x57a   : > { %v1233_v27 = vrot.slane %v1232_v44, 2  ;;  %v1240_v29 = vrot.slane %v1239_v30, 4 }
 0x57b   : > { %v1462_v56 = vmax.f32 %v1460_v25, %v1461_v17  ;;  %v1470_v38 = vrot.slane %v1469_v53, 1 }
 0x57c   : > { %v1234_v18 = vadd.f32 %v1233_v27, %v1232_v44  ;;  %v1241_v7 = vadd.f32 %v1240_v29, %v1239_v30 }
 0x57d   : > { %v1472_v51 = vsub.f32 %v4060_v26, %v1462_v56  ;;  %v1474_v13 = vsub.f32 %v1439_v43, %v1462_v56  ;;  %v1476_v23 = vsub.f32 %v1445_v48, %v1462_v56  ;;  %v1478_v49 = vsub.f32 %v1449_v54, %v1462_v56 }
 0x57e   : > { %v1471_v16 = vmax.f32 %v1469_v53, %v1470_v38  ;;  %v1235_v10 = vrot.slane %v1234_v18, 1  ;;  %v1242_v28 = vrot.slane %v1241_v7, 2 }
 0x57f   : > { %v1480_v41 = vmul.f32 1.442695, %v1472_v51  ;;  %v1484_v42 = vmul.f32 1.442695, %v1474_v13  ;;  %v1488_v61 = vmul.f32 1.442695, %v1476_v23 }
 0x580   : > { %v1473_v11 = vsub.f32 %v4062_v15, %v1471_v16  ;;  %v1475_v14 = vsub.f32 %v4064_v55, %v1471_v16  ;;  %v1236_v62 = vadd.f32 %v1235_v10, %v1234_v18  ;;  %v1243_v5 = vadd.f32 %v1242_v28, %v1241_v7 }
 0x581   : > { %3190 = vpow2.f32 %v1480_v41  ;;  %v1492_v22 = vmul.f32 1.442695, %v1478_v49  ;;  %v1477_v26 = vsub.f32 %v4066_v45, %v1471_v16  ;;  %v1479_v54 = vsub.f32 %v4069_v46, %v1471_v16 }
 0x582   : > { %3192 = vpow2.f32 %v1484_v42  ;;  %v1482_v43 = vmul.f32 1.442695, %v1473_v11  ;;  %v1244_v48 = vrot.slane %v1243_v5, 1  ;;  %v1486_v32 = vmul.f32 1.442695, %v1475_v14 }
 0x583   : > { %3194 = vrcp.f32 %v1236_v62  ;;  %v1490_v15 = vmul.f32 1.442695, %v1477_v26  ;;  %v1494_v55 = vmul.f32 1.442695, %v1479_v54 }
 0x584   : > { %3196 = vpow2.f32 %v1488_v61  ;;  %v1245_v12 = vadd.f32 %v1244_v48, %v1243_v5 }
 0x585   : > { %3198 = vpow2.f32 %v1492_v22 }
 0x586   : > { %3200 = vpow2.f32 %v1482_v43 }
 0x587   : > { %3202 = vrcp.f32 %v1245_v12 }
 0x588   : > { %3204 = vpow2.f32 %v1486_v32 }
 0x589   : > { %3206 = vpow2.f32 %v1490_v15 }
 0x58a   : > { %3208 = vpow2.f32 %v1494_v55 }
 0x58e   : > { %v3191_v35 = vpop.eup %3190 }
 0x58f   : > { %v3193_v6 = vpop.eup %3192 }
 0x590   : > { %v3195_v25 = vpop.eup %3194  ;;  %v1496_v45 = vadd.f32 %v3193_v6, %v3191_v35 }
 0x591   : > { %v3197_v37 = vpop.eup %3196  ;;  %v4105_v29 = vmul.f32 %v3195_v25, %v4077_v36  ;;  %v4111_v38 = vmul.f32 %v3195_v25, %v4071_v40  ;;  %v4130_v28 = vmul.f32 %v3195_v25, %v4079_v59 }
 0x592   : > { %v3199_v44 = vpop.eup %3198  ;;  %v1497_v30 = vadd.f32 %v3197_v37, %v1496_v45 }
 0x593   : > { %v3201_v17 = vpop.eup %3200 }
 0x594   : > { %v3203_v53 = vpop.eup %3202  ;;  %v1498_v46 = vadd.f32 %v3199_v44, %v1497_v30 }
 0x595   : > { %v3205_v27 = vpop.eup %3204  ;;  %v4108_v56 = vmul.f32 %v3203_v53, %v4088_v2  ;;  %v4114_v18 = vmul.f32 %v3203_v53, %v4085_v63  ;;  %v4121_v36 = vmul.f32 %v3203_v53, %v4096_v20  ;;  %v4124_v2 = vmul.f32 %v3203_v53, %v4093_v1 }
 0x596   : > { %v1499_v7 = vrot.slane %v1498_v46, 4  ;;  %v1505_v51 = vadd.f32 %v3205_v27, %v3201_v17  ;;  %v3207_v13 = vpop.eup %3206  ;;  %v4127_v63 = vmul.f32 %v3195_v25, %v4083_v57 }
 0x597   : > { %v1259_v23 = vadd.f32 %v4108_v56, %v4105_v29  ;;  %v1256_v49 = vadd.f32 %v4114_v18, %v4111_v38  ;;  %v3209_v10 = vpop.eup %3208  ;;  %v1262_v1 = vadd.f32 %v4124_v2, %v4130_v28 }
 0x598   : > { %v1500_v40 = vadd.f32 %v1499_v7, %v1498_v46  ;;  %v1506_v16 = vadd.f32 %v3207_v13, %v1505_v51  ;;  %v1265_v20 = vadd.f32 %v4121_v36, %v4127_v63 }
 0x599   : > { %1260 = vadd.xlane.f32.xlu0 %v1259_v23  ;;  %1257 = vadd.xlane.f32.xlu1 %v1256_v49 }
 0x59a   : > { %v1501_v41 = vrot.slane %v1500_v40, 2  ;;  %v1507_v42 = vadd.f32 %v3209_v10, %v1506_v16 }
 0x59c   : > { %v1502_v61 = vadd.f32 %v1501_v41, %v1500_v40  ;;  %v1508_v11 = vrot.slane %v1507_v42, 4 }
 0x59d   : > { %1266 = vadd.xlane.f32.xlu0 %v1265_v20  ;;  %1263 = vadd.xlane.f32.xlu1 %v1262_v1 }
 0x59e   : > { %v1503_v14 = vrot.slane %v1502_v61, 1  ;;  %v1509_v62 = vadd.f32 %v1508_v11, %v1507_v42 }
 0x5a0   : > { %v1510_v5 = vrot.slane %v1509_v62, 2  ;;  %v1504_v57 = vadd.f32 %v1503_v14, %v1502_v61 }
 0x5a2   : > { %v1511_v22 = vadd.f32 %v1510_v5, %v1509_v62  ;;  %3210 = vrcp.f32 %v1504_v57 }
 0x5a4   : > { %v1512_v26 = vrot.slane %v1511_v22, 1 }
 0x5a6   : > { %v1513_v59 = vadd.f32 %v1512_v26, %v1511_v22 }
 0x5a8   : > { %3212 = vrcp.f32 %v1513_v59 }
 0x5af   : > { %v3211_v43 = vpop.eup %3210 }
 0x5b0   : > { %v4136_v54 = vmul.f32 %v3211_v43, %v3193_v6  ;;  %v4140_v12 = vmul.f32 %v3211_v43, %v3191_v35  ;;  %v4152_v6 = vmul.f32 %v3211_v43, %v3199_v44  ;;  %v4154_v53 = vmul.f32 %v3211_v43, %v3197_v37 }
 0x5b5   : > { %v3213_v48 = vpop.eup %3212 }
 0x5b6   : > { %v4138_v32 = vmul.f32 %v3213_v48, %v3205_v27  ;;  %v4142_v15 = vmul.f32 %v3213_v48, %v3201_v17  ;;  %v4148_v45 = vmul.f32 %v3213_v48, %v3209_v10  ;;  %v4150_v30 = vmul.f32 %v3213_v48, %v3207_v13 }
 0x5b8   : > { %v1527_v55 = vadd.f32 %v4138_v32, %v4136_v54  ;;  %v1524_v25 = vadd.f32 %v4142_v15, %v4140_v12  ;;  %v1533_v35 = vadd.f32 %v4148_v45, %v4152_v6  ;;  %v1530_v17 = vadd.f32 %v4150_v30, %v4154_v53 }
 0x5ba   : > { %1528 = vadd.xlane.f32.xlu0 %v1527_v55  ;;  %1525 = vadd.xlane.f32.xlu1 %v1524_v25 }
 0x5be   : > { %1534 = vadd.xlane.f32.xlu0 %v1533_v35  ;;  %1531 = vadd.xlane.f32.xlu1 %v1530_v17 }
 0x622   : > { %v1258_v46 = vpop.xlane.xlu1 %1257  ;;  %v1261_v27 = vpop.xlane.xlu0 %1260 }
 0x623   : > { %v1268_v7 = vadd.f32 1e-06, %v1258_v46  ;;  %v1269_v51 = vadd.f32 1e-06, %v1261_v27 }
 0x625   : > { %3214 = vrcp.f32 %v1268_v7 }
 0x626   : > { %3216 = vrcp.f32 %v1269_v51  ;;  %v1264_v13 = vpop.xlane.xlu1 %1263  ;;  %v1267_v23 = vpop.xlane.xlu0 %1266 }
 0x627   : > { %v1270_v44 = vadd.f32 1e-06, %v1264_v13  ;;  %v1271_v49 = vadd.f32 1e-06, %v1267_v23 }
 0x629   : > { %3218 = vrcp.f32 %v1270_v44 }
 0x62a   : > { %3220 = vrcp.f32 %v1271_v49 }
 0x632   : > { %v3215_v37 = vpop.eup %3214 }
 0x633   : > { %v3217_v40 = vpop.eup %3216  ;;  %v1277_v16 = vmul.f32 %v3215_v37, %v4114_v18  ;;  %v1276_v10 = vmul.f32 %v3215_v37, %v4111_v38 }
 0x634   : > { %v1279_v41 = vmul.f32 %v3217_v40, %v4108_v56  ;;  %v1278_v42 = vmul.f32 %v3217_v40, %v4105_v29 }
 0x636   : > { %v3219_v20 = vpop.eup %3218  ;;  %v1285_v1 = vpack.c.bf16 %v1279_v41, %v1277_v16  ;;  %v1284_v61 = vpack.c.bf16 %v1278_v42, %v1276_v10 }
 0x637   : > { %v3221_v11 = vpop.eup %3220  ;;  %v1281_v14 = vmul.f32 %v3219_v20, %v4124_v2  ;;  %v1280_v38 = vmul.f32 %v3219_v20, %v4130_v28 }
 0x638   : > { %1320 = vmatprep.mubr.bf16.mxu0 %v1285_v1  ;;  %v1283_v62 = vmul.f32 %v3221_v11, %v4121_v36  ;;  %v1282_v56 = vmul.f32 %v3221_v11, %v4127_v63 }
 0x639   : > { %1321 = vmatmul.mubr.bf16.vlgmr.msra.gmra.mxu0 %v1284_v61 }
 0x63a   : > { %1678 = vmatpush1.bf16.msra.mxu0 %v3803_v50  ;;  %v1287_v5 = vpack.c.bf16 %v1283_v62, %v1281_v14  ;;  %v1286_v29 = vpack.c.bf16 %v1282_v56, %v1280_v38 }
 0x63b   : > { %1679 = vmatprep.subr.bf16.mxu0 %v3806_v52 }
 0x63c   : > { %1328 = vmatprep.mubr.bf16.mxu0 %v1287_v5 }
 0x63e   : > { %1680 = vmatpush1.bf16.msra.mxu0 %v3816_v58 }
 0x63f   : > { %1681 = vmatprep.subr.bf16.mxu0 %v3818_v60 }
 0x641   : > { %1329 = vmatmul.mubr.bf16.gmra.mxu0 %v1286_v29 }
 0x642   : > { %1682 = vmatpush1.bf16.msra.mxu0 %v3824_v3  ;;  %1701 = vmatprep.mubr.bf16.mxu0 %v3496_v0 }
 0x643   : > { %v1526_v18 = vpop.xlane.xlu1 %1525  ;;  %1683 = vmatprep.subr.bf16.mxu0 %v3826_v4  ;;  %v1529_v36 = vpop.xlane.xlu0 %1528 }
 0x644   : > { %v1536_v2 = vadd.f32 1e-06, %v1526_v18  ;;  %v1537_v57 = vadd.f32 1e-06, %v1529_v36 }
 0x646   : > { %3222 = vrcp.f32 %v1536_v2  ;;  %1684 = vmatpush1.bf16.msra.mxu0 %v3834_v8 }
 0x647   : > { %3224 = vrcp.f32 %v1537_v57  ;;  %v1532_v63 = vpop.xlane.xlu1 %1531  ;;  %1832 = vmatprep.subr.bf16.mxu0 %v3801_v47  ;;  %v1535_v28 = vpop.xlane.xlu0 %1534 }
 0x648   : > { %v1538_v22 = vadd.f32 1e-06, %v1532_v63  ;;  %v1539_v26 = vadd.f32 1e-06, %v1535_v28 }
 0x64a   : > { %3226 = vrcp.f32 %v1538_v22 }
 0x64b   : > { %3228 = vrcp.f32 %v1539_v26 }
 0x653   : > { %v3223_v59 = vpop.eup %3222 }
 0x654   : > { %v3225_v43 = vpop.eup %3224  ;;  %v1545_v48 = vmul.f32 %v3223_v59, %v4142_v15  ;;  %v1544_v55 = vmul.f32 %v3223_v59, %v4140_v12 }
 0x655   : > { %v1547_v25 = vmul.f32 %v3225_v43, %v4138_v32  ;;  %v1546_v35 = vmul.f32 %v3225_v43, %v4136_v54 }
 0x657   : > { %v3227_v17 = vpop.eup %3226  ;;  %v1553_v46 = vpack.c.bf16 %v1547_v25, %v1545_v48  ;;  %v1552_v27 = vpack.c.bf16 %v1546_v35, %v1544_v55 }
 0x658   : > { %v3229_v7 = vpop.eup %3228  ;;  %v1549_v47 = vmul.f32 %v3227_v17, %v4150_v30  ;;  %v1548_v12 = vmul.f32 %v3227_v17, %v4154_v53 }
 0x659   : > { %1588 = vmatprep.mubr.bf16.mxu1 %v1553_v46  ;;  %v1551_v51 = vmul.f32 %v3229_v7, %v4148_v45  ;;  %v1550_v32 = vmul.f32 %v3229_v7, %v4152_v6 }
 0x65a   : > { %1589 = vmatmul.mubr.bf16.vlgmr.msra.gmra.mxu1 %v1552_v27 }
 0x65b   : > { %1946 = vmatpush1.bf16.msra.mxu1 %v3845_v34  ;;  %v1555_v13 = vpack.c.bf16 %v1551_v51, %v1549_v47  ;;  %v1554_v54 = vpack.c.bf16 %v1550_v32, %v1548_v12 }
 0x65c   : > { %1947 = vmatprep.subr.bf16.mxu1 %v3850_v31 }
 0x65d   : > { %1596 = vmatprep.mubr.bf16.mxu1 %v1555_v13 }
 0x65f   : > { %1948 = vmatpush1.bf16.msra.mxu1 %v3860_v21 }
 0x660   : > { %1949 = vmatprep.subr.bf16.mxu1 %v3865_v33 }
 0x662   : > { %1597 = vmatmul.mubr.bf16.gmra.mxu1 %v1554_v54 }
 0x663   : > { %1950 = vmatpush1.bf16.msra.mxu1 %v3871_v19  ;;  %1969 = vmatprep.mubr.bf16.mxu1 %v3496_v0 }
 0x664   : > { %1951 = vmatprep.subr.bf16.mxu1 %v3873_v39 }
 0x667   : > { %1952 = vmatpush1.bf16.msra.mxu1 %v3880_v9 }
 0x668   : > { %2100 = vmatprep.subr.bf16.mxu1 %v3837_v24 }
 0x6f9   : > { %v4194_v15 = vpop.f32.mrf.mxu0 }
 0x6fa   : > { %v1337_v45 = vmul.f32 %v4194_v15, %v4194_v15 }
 0x6fb   : > { %v1324_v30 = vpop.f32.mrf.mxu0 }
 0x6fc   : > { %v1341_v6 = vsel %vm397_vm0, %v1337_v45, 0.0 }
 0x6fd   : > { %1342 = vadd.xlane.f32.xlu1 %v1341_v6  ;;  %v4199_v53 = vpop.f32.mrf.mxu0 }
 0x6fe   : > { %v1338_v23 = vmul.f32 %v4199_v53, %v4199_v53 }
 0x6ff   : > { %v1327_v44 = vpop.f32.mrf.mxu0 }
 0x700   : > { %v1344_v49 = vsel %vm397_vm0, %v1338_v23, 0.0 }
 0x701   : > { %1345 = vadd.xlane.f32.xlu0 %v1344_v49  ;;  %v4204_v37 = vpop.f32.mrf.mxu0 }
 0x702   : > { %v1339_v24 = vmul.f32 %v4204_v37, %v4204_v37 }
 0x703   : > { %v1332_v40 = vpop.f32.mrf.mxu0 }
 0x704   : > { %v1347_v16 = vsel %vm397_vm0, %v1339_v24, 0.0 }
 0x705   : > { %1348 = vadd.xlane.f32.xlu1 %v1347_v16  ;;  %v4209_v10 = vpop.f32.mrf.mxu0 }
 0x706   : > { %v1340_v41 = vmul.f32 %v4209_v10, %v4209_v10 }
 0x707   : > { %v1335_v42 = vpop.f32.mrf.mxu0 }
 0x708   : > { %v1350_v20 = vsel %vm397_vm0, %v1340_v41, 0.0 }
 0x709   : > { %1351 = vadd.xlane.f32.xlu0 %v1350_v20 }
 0x71a   : > { %v4214_v1 = vpop.f32.mrf.mxu1 }
 0x71b   : > { %v1605_v61 = vmul.f32 %v4214_v1, %v4214_v1 }
 0x71c   : > { %v1592_v11 = vpop.f32.mrf.mxu1 }
 0x71d   : > { %v1609_v14 = vsel %vm397_vm0, %v1605_v61, 0.0 }
 0x71e   : > { %1610 = vadd.xlane.f32.xlu1 %v1609_v14  ;;  %v4219_v62 = vpop.f32.mrf.mxu1 }
 0x71f   : > { %v1606_v5 = vmul.f32 %v4219_v62, %v4219_v62 }
 0x720   : > { %v1595_v38 = vpop.f32.mrf.mxu1 }
 0x721   : > { %v1612_v56 = vsel %vm397_vm0, %v1606_v5, 0.0 }
 0x722   : > { %1613 = vadd.xlane.f32.xlu0 %v1612_v56  ;;  %v4224_v29 = vpop.f32.mrf.mxu1 }
 0x723   : > { %v1607_v18 = vmul.f32 %v4224_v29, %v4224_v29 }
 0x724   : > { %v1600_v36 = vpop.f32.mrf.mxu1 }
 0x725   : > { %v1615_v2 = vsel %vm397_vm0, %v1607_v18, 0.0 }
 0x726   : > { %1616 = vadd.xlane.f32.xlu1 %v1615_v2  ;;  %v4229_v57 = vpop.f32.mrf.mxu1 }
 0x727   : > { %v1608_v63 = vmul.f32 %v4229_v57, %v4229_v57 }
 0x728   : > { %v1603_v28 = vpop.f32.mrf.mxu1 }
 0x729   : > { %v1618_v22 = vsel %vm397_vm0, %v1608_v63, 0.0 }
 0x72a   : > { %1619 = vadd.xlane.f32.xlu0 %v1618_v22 }
 0x786   : > { %v1343_v26 = vpop.xlane.xlu1 %1342 }
 0x787   : > { %3230 = vrsqrt.f32 %v1343_v26  ;;  %vm1355_vm2 = vcmp.eq.f32.partialorder %v1343_v26, inf  ;;  %v1358_v35 = vand.u32 2147483648, %v1343_v26  ;;  %vm1357_vm3 = vcmp.eq.f32.partialorder %v1343_v26, 0.0 }
 0x78a   : > { %v1346_v59 = vpop.xlane.xlu0 %1345 }
 0x78b   : > { %3232 = vrsqrt.f32 %v1346_v59  ;;  %vm1362_vm4 = vcmp.eq.f32.partialorder %v1346_v59, inf  ;;  %v1365_v51 = vand.u32 2147483648, %v1346_v59  ;;  %vm1364_vm5 = vcmp.eq.f32.partialorder %v1346_v59, 0.0 }
 0x78e   : > { %v1349_v43 = vpop.xlane.xlu1 %1348 }
 0x78f   : > { %3234 = vrsqrt.f32 %v1349_v43  ;;  %vm1369_vm6 = vcmp.eq.f32.partialorder %v1349_v43, inf  ;;  %v1372_v30 = vand.u32 2147483648, %v1349_v43  ;;  %vm1371_vm7 = vcmp.eq.f32.partialorder %v1349_v43, 0.0 }
 0x792   : > { %v1352_v48 = vpop.xlane.xlu0 %1351 }
 0x793   : > { %3236 = vrsqrt.f32 %v1352_v48  ;;  %vm1376_vm8 = vcmp.eq.f32.partialorder %v1352_v48, inf  ;;  %v1379_v40 = vand.u32 2147483648, %v1352_v48  ;;  %vm1378_vm9 = vcmp.eq.f32.partialorder %v1352_v48, 0.0 }
 0x794   : > { %v3231_v55 = vpop.eup %3230 }
 0x795   : > { %v1354_v25 = vmul.f32 %v3231_v55, %v1343_v26 }
 0x797   : > { %v1356_v17 = vsel %vm1355_vm2, %v1343_v26, %v1354_v25 }
 0x798   : > { %v3233_v46 = vpop.eup %3232  ;;  %v1359_v27 = vsel %vm1357_vm3, %v1358_v35, %v1356_v17 }
 0x799   : > { %v1381_v7 = vadd.f32 1e-06, %v1359_v27  ;;  %v1361_v47 = vmul.f32 %v3233_v46, %v1346_v59 }
 0x79b   : > { %v1363_v13 = vsel %vm1362_vm4, %v1346_v59, %v1361_v47  ;;  %3238 = vrcp.f32 %v1381_v7 }
 0x79c   : > { %v3235_v12 = vpop.eup %3234  ;;  %v1366_v32 = vsel %vm1364_vm5, %v1365_v51, %v1363_v13 }
 0x79d   : > { %v1382_v54 = vadd.f32 1e-06, %v1366_v32  ;;  %v1368_v45 = vmul.f32 %v3235_v12, %v1349_v43 }
 0x79f   : > { %3240 = vrcp.f32 %v1382_v54  ;;  %v1370_v6 = vsel %vm1369_vm6, %v1349_v43, %v1368_v45 }
 0x7a0   : > { %v3237_v23 = vpop.eup %3236  ;;  %v1373_v44 = vsel %vm1371_vm7, %v1372_v30, %v1370_v6 }
 0x7a1   : > { %v1383_v49 = vadd.f32 1e-06, %v1373_v44  ;;  %v1375_v24 = vmul.f32 %v3237_v23, %v1352_v48 }
 0x7a3   : > { %v1377_v16 = vsel %vm1376_vm8, %v1352_v48, %v1375_v24  ;;  %3242 = vrcp.f32 %v1383_v49 }
 0x7a4   : > { %v1380_v41 = vsel %vm1378_vm9, %v1379_v40, %v1377_v16 }
 0x7a5   : > { %v1384_v42 = vadd.f32 1e-06, %v1380_v41 }
 0x7a7   : > { %3244 = vrcp.f32 %v1384_v42  ;;  %v1611_v20 = vpop.xlane.xlu1 %1610 }
 0x7a8   : > { %3246 = vrsqrt.f32 %v1611_v20  ;;  %v3239_v61 = vpop.eup %3238  ;;  %vm1623_vm10 = vcmp.eq.f32.partialorder %v1611_v20, inf  ;;  %v1626_v26 = vand.u32 2147483648, %v1611_v20  ;;  %vm1625_vm11 = vcmp.eq.f32.partialorder %v1611_v20, 0.0 }
 0x7a9   : > { %v1389_v5 = vmul.f32 %v3239_v61, %v4194_v15 }
 0x7ab   : > { %v1614_v11 = vpop.xlane.xlu0 %1613 }
 0x7ac   : > { %v3241_v14 = vpop.eup %3240  ;;  %3248 = vrsqrt.f32 %v1614_v11  ;;  %vm1630_vm12 = vcmp.eq.f32.partialorder %v1614_v11, inf  ;;  %vm1632_vm13 = vcmp.eq.f32.partialorder %v1614_v11, 0.0 }
 0x7ad   : > { %v1390_v38 = vmul.f32 %v3241_v14, %v4199_v53 }
 0x7af   : > { %v1617_v56 = vpop.xlane.xlu1 %1616  ;;  %v1661_v18 = vpack.c.bf16 %v1390_v38, %v1389_v5 }
 0x7b0   : > { %3250 = vrsqrt.f32 %v1617_v56  ;;  %v3243_v36 = vpop.eup %3242  ;;  %vm1637_vm14 = vcmp.eq.f32.partialorder %v1617_v56, inf  ;;  %v1640_v27 = vand.u32 2147483648, %v1617_v56  ;;  %vm1639_vm15 = vcmp.eq.f32.partialorder %v1617_v56, 0.0 }
 0x7b1   : > { %2949 = vmatmul.mubr.msk.bf16.vlgmr.msra.gmra.mxu0 %vm397_vm0, %v1661_v18  ;;  %v1391_v15 = vmul.f32 %v3243_v36, %v4204_v37 }
 0x7b2   : > { %1833 = vmatpush1.bf16.xpose.msra.mxu0 %v3803_v50  ;;  %1711 = vmatprep.mubr.bf16.mxu0 %v3496_v0 }
 0x7b3   : > { %v1620_v2 = vpop.xlane.xlu0 %1619  ;;  %1834 = vmatprep.subr.bf16.mxu0 %v3806_v52  ;;  %v1633_v52 = vand.u32 2147483648, %v1614_v11 }
 0x7b4   : > { %v3245_v63 = vpop.eup %3244  ;;  %3252 = vrsqrt.f32 %v1620_v2  ;;  %vm1644_vm1 = vcmp.eq.f32.partialorder %v1620_v2, inf  ;;  %vm1646_vm2 = vcmp.eq.f32.partialorder %v1620_v2, 0.0 }
 0x7b5   : > { %v3247_v28 = vpop.eup %3246  ;;  %v1392_v53 = vmul.f32 %v3245_v63, %v4209_v10 }
 0x7b6   : > { %v1622_v22 = vmul.f32 %v3247_v28, %v1611_v20 }
 0x7b7   : > { %v1662_v59 = vpack.c.bf16 %v1392_v53, %v1391_v15 }
 0x7b8   : > { %v1624_v43 = vsel %vm1623_vm10, %v1611_v20, %v1622_v22 }
 0x7b9   : > { %v3249_v48 = vpop.eup %3248  ;;  %v1627_v50 = vsel %vm1625_vm11, %v1626_v26, %v1624_v43  ;;  %2950 = vmatmul.mubr.msk.bf16.gmra.mxu0 %vm397_vm0, %v1662_v59 }
 0x7ba   : > { %v1649_v55 = vadd.f32 1e-06, %v1627_v50  ;;  %v1629_v25 = vmul.f32 %v3249_v48, %v1614_v11  ;;  %1835 = vmatpush1.bf16.xpose.msra.mxu0 %v3816_v58 }
 0x7bb   : > { %1836 = vmatprep.subr.bf16.mxu0 %v3818_v60  ;;  %v1647_v60 = vand.u32 2147483648, %v1620_v2 }
 0x7bc   : > { %v1631_v37 = vsel %vm1630_vm12, %v1614_v11, %v1629_v25  ;;  %3254 = vrcp.f32 %v1649_v55 }
 0x7bd   : > { %v3251_v10 = vpop.eup %3250  ;;  %v1634_v35 = vsel %vm1632_vm13, %v1633_v52, %v1631_v37 }
 0x7be   : > { %v1650_v17 = vadd.f32 1e-06, %v1634_v35  ;;  %v1636_v46 = vmul.f32 %v3251_v10, %v1617_v56 }
 0x7c0   : > { %3256 = vrcp.f32 %v1650_v17  ;;  %v1638_v7 = vsel %vm1637_vm14, %v1617_v56, %v1636_v46 }
 0x7c1   : > { %v3253_v47 = vpop.eup %3252  ;;  %v1641_v51 = vsel %vm1639_vm15, %v1640_v27, %v1638_v7 }
 0x7c2   : > { %v1651_v13 = vadd.f32 1e-06, %v1641_v51  ;;  %v1643_v58 = vmul.f32 %v3253_v47, %v1620_v2  ;;  %1837 = vmatpush1.bf16.xpose.msra.mxu0 %v3824_v3 }
 0x7c3   : > { %1838 = vmatprep.subr.bf16.mxu0 %v3826_v4 }
 0x7c4   : > { %v1645_v12 = vsel %vm1644_vm1, %v1620_v2, %v1643_v58  ;;  %3258 = vrcp.f32 %v1651_v13 }
 0x7c5   : > { %v1648_v32 = vsel %vm1646_vm2, %v1647_v60, %v1645_v12 }
 0x7c6   : > { %v1652_v54 = vadd.f32 1e-06, %v1648_v32 }
 0x7c8   : > { %3260 = vrcp.f32 %v1652_v54 }
 0x7c9   : > { %v3255_v45 = vpop.eup %3254 }
 0x7ca   : > { %1839 = vmatpush1.bf16.xpose.msra.mxu0 %v3834_v8  ;;  %v1657_v6 = vmul.f32 %v3255_v45, %v4214_v1 }
 0x7cd   : > { %v3257_v30 = vpop.eup %3256 }
 0x7ce   : > { %v1658_v23 = vmul.f32 %v3257_v30, %v4219_v62 }
 0x7d0   : > { %v1929_v44 = vpack.c.bf16 %v1658_v23, %v1657_v6 }
 0x7d1   : > { %v3259_v3 = vpop.eup %3258 }
 0x7d2   : > { %2951 = vmatmul.mubr.msk.bf16.vlgmr.msra.gmra.mxu1 %vm397_vm0, %v1929_v44  ;;  %v1659_v49 = vmul.f32 %v3259_v3, %v4224_v29 }
 0x7d3   : > { %2101 = vmatpush1.bf16.xpose.msra.mxu1 %v3845_v34  ;;  %1979 = vmatprep.mubr.bf16.mxu1 %v3496_v0 }
 0x7d4   : > { %2102 = vmatprep.subr.bf16.mxu1 %v3850_v31 }
 0x7d5   : > { %v3261_v4 = vpop.eup %3260 }
 0x7d6   : > { %v1660_v8 = vmul.f32 %v3261_v4, %v4229_v57 }
 0x7d8   : > { %v1930_v24 = vpack.c.bf16 %v1660_v8, %v1659_v49 }
 0x7da   : > { %2952 = vmatmul.mubr.msk.bf16.gmra.mxu1 %vm397_vm0, %v1930_v24 }
 0x7db   : > { %2103 = vmatpush1.bf16.xpose.msra.mxu1 %v3860_v21 }
 0x7dc   : > { %2104 = vmatprep.subr.bf16.mxu1 %v3865_v33 }
 0x7e3   : > { %2105 = vmatpush1.bf16.xpose.msra.mxu1 %v3871_v19 }
 0x7e4   : > { %2106 = vmatprep.subr.bf16.mxu1 %v3873_v39 }
 0x7eb   : > { %2107 = vmatpush1.bf16.xpose.msra.mxu1 %v3880_v9 }
 0x871   : > { %v1703_v34 = vpop.f32.mrf.mxu0 }
 0x873   : > { %v1705_v31 = vpop.f32.mrf.mxu0 }
 0x875   : > { %v1707_v1 = vpop.f32.mrf.mxu0 }
 0x877   : > { %v1709_v62 = vpop.f32.mrf.mxu0 }
 0x879   : > { %v1713_v29 = vpop.f32.mrf.mxu0 }
 0x87a   : > { %v1722_v16 = vmax.f32 %v1703_v34, %v1713_v29 }
 0x87b   : > { %v1715_v40 = vpop.f32.mrf.mxu0 }
 0x87c   : > { %v1731_v20 = vmax.f32 %v1705_v31, %v1715_v40 }
 0x87d   : > { %v1717_v57 = vpop.f32.mrf.mxu0 }
 0x87e   : > { %v1723_v41 = vmax.f32 %v1707_v1, %v1717_v57 }
 0x87f   : > { %v1719_v42 = vpop.f32.mrf.mxu0 }
 0x880   : > { %v1724_v21 = vmax.f32 %v1722_v16, %v1723_v41  ;;  %v1732_v61 = vmax.f32 %v1709_v62, %v1719_v42 }
 0x882   : > { %v1725_v33 = vrot.slane %v1724_v21, 4  ;;  %v1733_v11 = vmax.f32 %v1731_v20, %v1732_v61 }
 0x884   : > { %v1726_v19 = vmax.f32 %v1724_v21, %v1725_v33  ;;  %v1734_v14 = vrot.slane %v1733_v11, 4 }
 0x886   : > { %v1727_v39 = vrot.slane %v1726_v19, 2  ;;  %v1735_v5 = vmax.f32 %v1733_v11, %v1734_v14 }
 0x888   : > { %v1728_v9 = vmax.f32 %v1726_v19, %v1727_v39  ;;  %v1736_v38 = vrot.slane %v1735_v5, 2 }
 0x88a   : > { %v1729_v56 = vrot.slane %v1728_v9, 1  ;;  %v1737_v18 = vmax.f32 %v1735_v5, %v1736_v38 }
 0x88c   : > { %v1730_v36 = vmax.f32 %v1728_v9, %v1729_v56  ;;  %v1738_v2 = vrot.slane %v1737_v18, 1 }
 0x88e   : > { %v1740_v63 = vsub.f32 %v1703_v34, %v1730_v36  ;;  %v1742_v28 = vsub.f32 %v1707_v1, %v1730_v36  ;;  %v1744_v15 = vsub.f32 %v1713_v29, %v1730_v36  ;;  %v1746_v53 = vsub.f32 %v1717_v57, %v1730_v36 }
 0x88f   : > { %v1739_v22 = vmax.f32 %v1737_v18, %v1738_v2 }
 0x890   : > { %v1748_v26 = vmul.f32 1.442695, %v1740_v63  ;;  %v1752_v59 = vmul.f32 1.442695, %v1742_v28  ;;  %v1756_v43 = vmul.f32 1.442695, %v1744_v15 }
 0x891   : > { %v1760_v48 = vmul.f32 1.442695, %v1746_v53  ;;  %v1741_v50 = vsub.f32 %v1705_v31, %v1739_v22  ;;  %v1743_v55 = vsub.f32 %v1709_v62, %v1739_v22  ;;  %v1745_v25 = vsub.f32 %v1715_v40, %v1739_v22 }
 0x892   : > { %3262 = vpow2.f32 %v1748_v26  ;;  %v4262_v52 = vpop.f32.mrf.mxu1  ;;  %v1747_v37 = vsub.f32 %v1719_v42, %v1739_v22 }
 0x893   : > { %3264 = vpow2.f32 %v1752_v59  ;;  %v1750_v10 = vmul.f32 1.442695, %v1741_v50  ;;  %v1754_v35 = vmul.f32 1.442695, %v1743_v55  ;;  %v1758_v46 = vmul.f32 1.442695, %v1745_v25 }
 0x894   : > { %3266 = vpow2.f32 %v1756_v43  ;;  %v4264_v17 = vpop.f32.mrf.mxu1  ;;  %v1762_v7 = vmul.f32 1.442695, %v1747_v37 }
 0x895   : > { %3268 = vpow2.f32 %v1760_v48 }
 0x896   : > { %3270 = vpow2.f32 %v1750_v10  ;;  %v1975_v27 = vpop.f32.mrf.mxu1 }
 0x897   : > { %3272 = vpow2.f32 %v1754_v35 }
 0x898   : > { %v4266_v47 = vpop.f32.mrf.mxu1  ;;  %3274 = vpow2.f32 %v1758_v46 }
 0x899   : > { %3276 = vpow2.f32 %v1762_v7 }
 0x89a   : > { %v1981_v51 = vpop.f32.mrf.mxu1 }
 0x89b   : > { %v1990_v12 = vmax.f32 %v4262_v52, %v1981_v51 }
 0x89c   : > { %v4268_v13 = vpop.f32.mrf.mxu1 }
 0x89d   : > { %v1999_v23 = vmax.f32 %v4264_v17, %v4268_v13 }
 0x89e   : > { %v1985_v58 = vpop.f32.mrf.mxu1 }
 0x89f   : > { %v4270_v60 = vpop.eup %3262  ;;  %v1991_v32 = vmax.f32 %v1975_v27, %v1985_v58 }
 0x8a0   : > { %v4273_v54 = vpop.eup %3264  ;;  %v4275_v45 = vpop.f32.mrf.mxu1 }
 0x8a1   : > { %v4277_v30 = vpop.eup %3266  ;;  %v1764_v6 = vadd.f32 %v4273_v54, %v4270_v60  ;;  %v1992_v44 = vmax.f32 %v1990_v12, %v1991_v32  ;;  %v2000_v3 = vmax.f32 %v4266_v47, %v4275_v45 }
 0x8a2   : > { %v4285_v4 = vpop.eup %3268 }
 0x8a3   : > { %v4287_v49 = vpop.eup %3270  ;;  %v1765_v8 = vadd.f32 %v4277_v30, %v1764_v6  ;;  %v1993_v24 = vrot.slane %v1992_v44, 4  ;;  %v2001_v34 = vmax.f32 %v1999_v23, %v2000_v3 }
 0x8a4   : > { %v4290_v31 = vpop.eup %3272 }
 0x8a5   : > { %v1766_v1 = vadd.f32 %v4285_v4, %v1765_v8  ;;  %v1773_v62 = vadd.f32 %v4290_v31, %v4287_v49  ;;  %v1994_v29 = vmax.f32 %v1992_v44, %v1993_v24  ;;  %v2002_v40 = vrot.slane %v2001_v34, 4  ;;  %v3275_v57 = vpop.eup %3274 }
 0x8a6   : > { %v3277_v21 = vpop.eup %3276 }
 0x8a7   : > { %v1767_v16 = vrot.slane %v1766_v1, 4  ;;  %v1774_v41 = vadd.f32 %v3275_v57, %v1773_v62  ;;  %v1995_v42 = vrot.slane %v1994_v29, 2  ;;  %v2003_v20 = vmax.f32 %v2001_v34, %v2002_v40 }
 0x8a9   : > { %v1768_v61 = vadd.f32 %v1767_v16, %v1766_v1  ;;  %v1775_v33 = vadd.f32 %v3277_v21, %v1774_v41  ;;  %v1996_v11 = vmax.f32 %v1994_v29, %v1995_v42  ;;  %v2004_v19 = vrot.slane %v2003_v20, 2 }
 0x8ab   : > { %v1769_v14 = vrot.slane %v1768_v61, 2  ;;  %v1776_v39 = vrot.slane %v1775_v33, 4  ;;  %v1997_v5 = vrot.slane %v1996_v11, 1  ;;  %v2005_v9 = vmax.f32 %v2003_v20, %v2004_v19 }
 0x8ad   : > { %v1770_v38 = vadd.f32 %v1769_v14, %v1768_v61  ;;  %v1777_v56 = vadd.f32 %v1776_v39, %v1775_v33  ;;  %v1998_v18 = vmax.f32 %v1996_v11, %v1997_v5  ;;  %v2006_v36 = vrot.slane %v2005_v9, 1 }
 0x8af   : > { %v1771_v2 = vrot.slane %v1770_v38, 1  ;;  %v1778_v63 = vrot.slane %v1777_v56, 2  ;;  %v2008_v28 = vsub.f32 %v4262_v52, %v1998_v18  ;;  %v2010_v15 = vsub.f32 %v1975_v27, %v1998_v18 }
 0x8b0   : > { %v2012_v53 = vsub.f32 %v1981_v51, %v1998_v18  ;;  %v2014_v22 = vsub.f32 %v1985_v58, %v1998_v18  ;;  %v2007_v26 = vmax.f32 %v2005_v9, %v2006_v36 }
 0x8b1   : > { %v1772_v59 = vadd.f32 %v1771_v2, %v1770_v38  ;;  %v1779_v43 = vadd.f32 %v1778_v63, %v1777_v56  ;;  %v2016_v48 = vmul.f32 1.442695, %v2008_v28  ;;  %v2020_v50 = vmul.f32 1.442695, %v2010_v15 }
 0x8b2   : > { %v2024_v55 = vmul.f32 1.442695, %v2012_v53  ;;  %v2009_v25 = vsub.f32 %v4264_v17, %v2007_v26  ;;  %v2011_v37 = vsub.f32 %v4266_v47, %v2007_v26  ;;  %v2028_v35 = vmul.f32 1.442695, %v2014_v22 }
 0x8b3   : > { %3278 = vrcp.f32 %v1772_v59  ;;  %v1780_v10 = vrot.slane %v1779_v43, 1  ;;  %v2013_v46 = vsub.f32 %v4268_v13, %v2007_v26  ;;  %v2015_v7 = vsub.f32 %v4275_v45, %v2007_v26 }
 0x8b4   : > { %3280 = vpow2.f32 %v2016_v48  ;;  %v2018_v27 = vmul.f32 1.442695, %v2009_v25  ;;  %v2022_v51 = vmul.f32 1.442695, %v2011_v37 }
 0x8b5   : > { %v1781_v52 = vadd.f32 %v1780_v10, %v1779_v43  ;;  %3282 = vpow2.f32 %v2020_v50  ;;  %v2026_v58 = vmul.f32 1.442695, %v2013_v46  ;;  %v2030_v17 = vmul.f32 1.442695, %v2015_v7 }
 0x8b6   : > { %3284 = vpow2.f32 %v2024_v55 }
 0x8b7   : > { %3286 = vrcp.f32 %v1781_v52 }
 0x8b8   : > { %3288 = vpow2.f32 %v2028_v35 }
 0x8b9   : > { %3290 = vpow2.f32 %v2018_v27 }
 0x8ba   : > { %3292 = vpow2.f32 %v2022_v51 }
 0x8bb   : > { %3294 = vpow2.f32 %v2026_v58 }
 0x8bc   : > { %3296 = vpow2.f32 %v2030_v17 }
 0x8c0   : > { %v3279_v47 = vpop.eup %3278 }
 0x8c1   : > { %v3281_v12 = vpop.eup %3280  ;;  %v4301_v44 = vmul.f32 %v3279_v47, %v4273_v54  ;;  %v4311_v62 = vmul.f32 %v3279_v47, %v4270_v60  ;;  %v4323_v60 = vmul.f32 %v3279_v47, %v4285_v4 }
 0x8c2   : > { %v3283_v32 = vpop.eup %3282 }
 0x8c3   : > { %v3285_v6 = vpop.eup %3284  ;;  %v2032_v13 = vadd.f32 %v3283_v32, %v3281_v12 }
 0x8c4   : > { %v3287_v23 = vpop.eup %3286 }
 0x8c5   : > { %v3289_v3 = vpop.eup %3288  ;;  %v2033_v45 = vadd.f32 %v3285_v6, %v2032_v13  ;;  %v4303_v8 = vmul.f32 %v3287_v23, %v3275_v57  ;;  %v4305_v24 = vmul.f32 %v3287_v23, %v3277_v21  ;;  %v4308_v34 = vmul.f32 %v3287_v23, %v4290_v31 }
 0x8c6   : > { %v3291_v1 = vpop.eup %3290  ;;  %v4314_v29 = vmul.f32 %v3287_v23, %v4287_v49  ;;  %v4326_v21 = vmul.f32 %v3279_v47, %v4277_v30 }
 0x8c7   : > { %v3293_v40 = vpop.eup %3292  ;;  %v2034_v16 = vadd.f32 %v3289_v3, %v2033_v45  ;;  %v2236_v54 = vpack.c.bf16 %v4305_v24, %v4303_v8  ;;  %v1795_v57 = vadd.f32 %v4308_v34, %v4301_v44  ;;  %v1801_v11 = vadd.f32 %v4305_v24, %v4323_v60 }
 0x8c8   : > { %v2041_v41 = vadd.f32 %v3293_v40, %v3291_v1  ;;  %v1792_v31 = vadd.f32 %v4314_v29, %v4311_v62  ;;  %v3295_v42 = vpop.eup %3294  ;;  %v1798_v14 = vadd.f32 %v4303_v8, %v4326_v21 }
 0x8c9   : > { %v2035_v20 = vrot.slane %v2034_v16, 4  ;;  %2262 = vmatprep.subr.bf16.mxu0 %v2236_v54  ;;  %1796 = vadd.xlane.f32.xlu0 %v1795_v57  ;;  %v3297_v61 = vpop.eup %3296  ;;  %v2235_v54 = vpack.c.bf16 %v4323_v60, %v4326_v21 }
 0x8ca   : > { %v2042_v49 = vadd.f32 %v3295_v42, %v2041_v41  ;;  %1793 = vadd.xlane.f32.xlu1 %v1792_v31  ;;  %v2234_v41 = vpack.c.bf16 %v4308_v34, %v4314_v29 }
 0x8cb   : > { %v2036_v33 = vadd.f32 %v2035_v20, %v2034_v16 }
 0x8cc   : > { %v2043_v19 = vadd.f32 %v3297_v61, %v2042_v49 }
 0x8cd   : > { %v2037_v39 = vrot.slane %v2036_v33, 2  ;;  %1802 = vadd.xlane.f32.xlu0 %v1801_v11 }
 0x8ce   : > { %v2044_v5 = vrot.slane %v2043_v19, 4  ;;  %1799 = vadd.xlane.f32.xlu1 %v1798_v14 }
 0x8cf   : > { %v2038_v4 = vadd.f32 %v2037_v39, %v2036_v33 }
 0x8d0   : > { %v2045_v9 = vadd.f32 %v2044_v5, %v2043_v19 }
 0x8d1   : > { %v2039_v38 = vrot.slane %v2038_v4, 1 }
 0x8d2   : > { %v2046_v56 = vrot.slane %v2045_v9, 2 }
 0x8d3   : > { %v2040_v18 = vadd.f32 %v2039_v38, %v2038_v4 }
 0x8d4   : > { %v2047_v30 = vadd.f32 %v2046_v56, %v2045_v9 }
 0x8d5   : > { %3298 = vrcp.f32 %v2040_v18 }
 0x8d6   : > { %v2048_v36 = vrot.slane %v2047_v30, 1 }
 0x8d8   : > { %v2049_v2 = vadd.f32 %v2048_v36, %v2047_v30 }
 0x8da   : > { %3300 = vrcp.f32 %v2049_v2 }
 0x8e2   : > { %v3299_v63 = vpop.eup %3298 }
 0x8e3   : > { %v4332_v15 = vmul.f32 %v3299_v63, %v3283_v32  ;;  %v4336_v22 = vmul.f32 %v3299_v63, %v3281_v12  ;;  %v4348_v55 = vmul.f32 %v3299_v63, %v3289_v3  ;;  %v4350_v25 = vmul.f32 %v3299_v63, %v3285_v6 }
 0x8e7   : > { %v3301_v28 = vpop.eup %3300 }
 0x8e8   : > { %v4334_v53 = vmul.f32 %v3301_v28, %v3293_v40  ;;  %v4338_v26 = vmul.f32 %v3301_v28, %v3291_v1  ;;  %v4344_v48 = vmul.f32 %v3301_v28, %v3297_v61  ;;  %v4346_v50 = vmul.f32 %v3301_v28, %v3295_v42 }
 0x8ea   : > { %v2063_v59 = vadd.f32 %v4334_v53, %v4332_v15  ;;  %v2060_v43 = vadd.f32 %v4338_v26, %v4336_v22  ;;  %v2069_v37 = vadd.f32 %v4344_v48, %v4348_v55  ;;  %v2066_v10 = vadd.f32 %v4346_v50, %v4350_v25 }
 0x8ec   : > { %2064 = vadd.xlane.f32.xlu0 %v2063_v59  ;;  %2061 = vadd.xlane.f32.xlu1 %v2060_v43 }
 0x8f0   : > { %2070 = vadd.xlane.f32.xlu0 %v2069_v37  ;;  %2067 = vadd.xlane.f32.xlu1 %v2066_v10 }
 0x952   : > { %v1797_v35 = vpop.xlane.xlu0 %1796 }
 0x953   : > { %v1794_v46 = vpop.xlane.xlu1 %1793  ;;  %v1805_v52 = vadd.f32 1e-06, %v1797_v35 }
 0x954   : > { %v1804_v27 = vadd.f32 1e-06, %v1794_v46 }
 0x955   : > { %3302 = vrcp.f32 %v1805_v52 }
 0x956   : > { %3304 = vrcp.f32 %v1804_v27  ;;  %v1803_v7 = vpop.xlane.xlu0 %1802 }
 0x957   : > { %v1800_v51 = vpop.xlane.xlu1 %1799  ;;  %v1807_v58 = vadd.f32 1e-06, %v1803_v7 }
 0x958   : > { %v1806_v17 = vadd.f32 1e-06, %v1800_v51 }
 0x959   : > { %3306 = vrcp.f32 %v1807_v58 }
 0x95a   : > { %3308 = vrcp.f32 %v1806_v17 }
 0x962   : > { %v3303_v47 = vpop.eup %3302 }
 0x963   : > { %v3305_v12 = vpop.eup %3304  ;;  %v1815_v32 = vmul.f32 %v3303_v47, %v4308_v34  ;;  %v1814_v6 = vmul.f32 %v3303_v47, %v4301_v44 }
 0x964   : > { %v1813_v13 = vmul.f32 %v3305_v12, %v4314_v29  ;;  %v1812_v23 = vmul.f32 %v3305_v12, %v4311_v62 }
 0x966   : > { %v3307_v3 = vpop.eup %3306  ;;  %v1821_v45 = vpack.c.bf16 %v1815_v32, %v1813_v13  ;;  %v1820_v1 = vpack.c.bf16 %v1814_v6, %v1812_v23 }
 0x967   : > { %v3309_v40 = vpop.eup %3308  ;;  %v1819_v16 = vmul.f32 %v3307_v3, %v4305_v24  ;;  %v1818_v20 = vmul.f32 %v3307_v3, %v4323_v60  ;;  %v2233_v24 = vpack.c.bf16 %v4301_v44, %v4311_v62 }
 0x968   : > { %1856 = vmatprep.mubr.bf16.mxu0 %v1821_v45  ;;  %v1817_v57 = vmul.f32 %v3309_v40, %v4303_v8  ;;  %v1816_v42 = vmul.f32 %v3309_v40, %v4326_v21 }
 0x969   : > { %1857 = vmatmul.mubr.bf16.vlgmr.msra.gmra.mxu0 %v1820_v1 }
 0x96a   : > { %2263 = vmatpush1.bf16.msra.mxu0 %v2235_v54  ;;  %v1823_v31 = vpack.c.bf16 %v1819_v16, %v1817_v57  ;;  %v1822_v49 = vpack.c.bf16 %v1818_v20, %v1816_v42 }
 0x96b   : > { %2264 = vmatprep.subr.bf16.mxu0 %v2234_v41 }
 0x96c   : > { %1864 = vmatprep.mubr.bf16.mxu0 %v1823_v31 }
 0x96e   : > { %2265 = vmatpush1.bf16.msra.mxu0 %v2233_v24 }
 0x971   : > { %1865 = vmatmul.mubr.bf16.gmra.mxu0 %v1822_v49 }
 0x972   : > { %2282 = vmatprep.mubr.bf16.mxu0 %v3496_v0 }
 0x975   : > { %v2062_v8 = vpop.xlane.xlu1 %2061  ;;  %v2065_v61 = vpop.xlane.xlu0 %2064 }
 0x976   : > { %v2072_v33 = vadd.f32 1e-06, %v2062_v8  ;;  %v2073_v34 = vadd.f32 1e-06, %v2065_v61 }
 0x978   : > { %3310 = vrcp.f32 %v2072_v33 }
 0x979   : > { %3312 = vrcp.f32 %v2073_v34  ;;  %v2068_v29 = vpop.xlane.xlu1 %2067  ;;  %v2071_v11 = vpop.xlane.xlu0 %2070 }
 0x97a   : > { %v2074_v21 = vadd.f32 1e-06, %v2068_v29  ;;  %v2075_v19 = vadd.f32 1e-06, %v2071_v11 }
 0x97c   : > { %3314 = vrcp.f32 %v2074_v21 }
 0x97d   : > { %3316 = vrcp.f32 %v2075_v19 }
 0x985   : > { %v3311_v60 = vpop.eup %3310 }
 0x986   : > { %v3313_v14 = vpop.eup %3312  ;;  %v2081_v44 = vmul.f32 %v3311_v60, %v4338_v26  ;;  %v2080_v62 = vmul.f32 %v3311_v60, %v4336_v22 }
 0x987   : > { %v2083_v39 = vmul.f32 %v3313_v14, %v4334_v53  ;;  %v2082_v5 = vmul.f32 %v3313_v14, %v4332_v15 }
 0x989   : > { %v3315_v4 = vpop.eup %3314  ;;  %v2089_v9 = vpack.c.bf16 %v2083_v39, %v2081_v44  ;;  %v2088_v38 = vpack.c.bf16 %v2082_v5, %v2080_v62 }
 0x98a   : > { %v3317_v56 = vpop.eup %3316  ;;  %v2085_v18 = vmul.f32 %v3315_v4, %v4346_v50  ;;  %v2084_v2 = vmul.f32 %v3315_v4, %v4350_v25 }
 0x98b   : > { %2124 = vmatprep.mubr.bf16.mxu1 %v2089_v9  ;;  %v2087_v30 = vmul.f32 %v3317_v56, %v4344_v48  ;;  %v2086_v63 = vmul.f32 %v3317_v56, %v4348_v55 }
 0x98c   : > { %2125 = vmatmul.mubr.bf16.vlgmr.msra.gmra.mxu1 %v2088_v38 }
 0x98d   : > { %v2091_v36 = vpack.c.bf16 %v2087_v30, %v2085_v18  ;;  %v2090_v28 = vpack.c.bf16 %v2086_v63, %v2084_v2 }
 0x98f   : > { %2132 = vmatprep.mubr.bf16.mxu1 %v2091_v36 }
 0x994   : > { %2133 = vmatmul.mubr.bf16.gmra.mxu1 %v2090_v28 }
 0x995   : > { %2441 = vmatprep.mubr.bf16.mxu1 %v3496_v0 }
 0xa29   : > { %v4380_v59 = vpop.f32.mrf.mxu0 }
 0xa2a   : > { %v1873_v43 = vmul.f32 %v4380_v59, %v4380_v59 }
 0xa2b   : > { %v1860_v37 = vpop.f32.mrf.mxu0 }
 0xa2c   : > { %v1877_v10 = vsel %vm397_vm0, %v1873_v43, 0.0 }
 0xa2d   : > { %1878 = vadd.xlane.f32.xlu1 %v1877_v10  ;;  %v4385_v35 = vpop.f32.mrf.mxu0 }
 0xa2e   : > { %v1874_v46 = vmul.f32 %v4385_v35, %v4385_v35 }
 0xa2f   : > { %v1863_v52 = vpop.f32.mrf.mxu0 }
 0xa30   : > { %v1880_v27 = vsel %vm397_vm0, %v1874_v46, 0.0 }
 0xa31   : > { %1881 = vadd.xlane.f32.xlu0 %v1880_v27  ;;  %v4390_v7 = vpop.f32.mrf.mxu0 }
 0xa32   : > { %v1875_v51 = vmul.f32 %v4390_v7, %v4390_v7 }
 0xa33   : > { %v1868_v58 = vpop.f32.mrf.mxu0 }
 0xa34   : > { %v1883_v17 = vsel %vm397_vm0, %v1875_v51, 0.0 }
 0xa35   : > { %1884 = vadd.xlane.f32.xlu1 %v1883_v17  ;;  %v4395_v47 = vpop.f32.mrf.mxu0 }
 0xa36   : > { %v1876_v12 = vmul.f32 %v4395_v47, %v4395_v47 }
 0xa37   : > { %v1871_v32 = vpop.f32.mrf.mxu0 }
 0xa38   : > { %v1886_v6 = vsel %vm397_vm0, %v1876_v12, 0.0 }
 0xa39   : > { %1887 = vadd.xlane.f32.xlu0 %v1886_v6 }
 0xa4c   : > { %v4400_v13 = vpop.f32.mrf.mxu1 }
 0xa4d   : > { %v2141_v23 = vmul.f32 %v4400_v13, %v4400_v13 }
 0xa4e   : > { %v2128_v3 = vpop.f32.mrf.mxu1 }
 0xa4f   : > { %v2145_v45 = vsel %vm397_vm0, %v2141_v23, 0.0 }
 0xa50   : > { %2146 = vadd.xlane.f32.xlu0 %v2145_v45  ;;  %v4405_v1 = vpop.f32.mrf.mxu1 }
 0xa51   : > { %v2142_v40 = vmul.f32 %v4405_v1, %v4405_v1 }
 0xa52   : > { %v2131_v16 = vpop.f32.mrf.mxu1 }
 0xa53   : > { %v2148_v54 = vsel %vm397_vm0, %v2142_v40, 0.0 }
 0xa54   : > { %2149 = vadd.xlane.f32.xlu0 %v2148_v54  ;;  %v4410_v57 = vpop.f32.mrf.mxu1 }
 0xa55   : > { %v2143_v41 = vmul.f32 %v4410_v57, %v4410_v57 }
 0xa56   : > { %v2136_v31 = vpop.f32.mrf.mxu1 }
 0xa57   : > { %v2151_v42 = vsel %vm397_vm0, %v2143_v41, 0.0 }
 0xa58   : > { %2152 = vadd.xlane.f32.xlu0 %v2151_v42  ;;  %v4415_v20 = vpop.f32.mrf.mxu1 }
 0xa59   : > { %v2144_v24 = vmul.f32 %v4415_v20, %v4415_v20 }
 0xa5a   : > { %v2139_v49 = vpop.f32.mrf.mxu1 }
 0xa5b   : > { %v2154_v8 = vsel %vm397_vm0, %v2144_v24, 0.0 }
 0xa5c   : > { %2155 = vadd.xlane.f32.xlu0 %v2154_v8 }
 0xab6   : > { %v1879_v61 = vpop.xlane.xlu1 %1878 }
 0xab7   : > { %3318 = vrsqrt.f32 %v1879_v61  ;;  %vm1891_vm3 = vcmp.eq.f32.partialorder %v1879_v61, inf  ;;  %v1894_v19 = vand.u32 2147483648, %v1879_v61  ;;  %vm1893_vm4 = vcmp.eq.f32.partialorder %v1879_v61, 0.0 }
 0xaba   : > { %v1882_v33 = vpop.xlane.xlu0 %1881 }
 0xabb   : > { %3320 = vrsqrt.f32 %v1882_v33  ;;  %vm1898_vm5 = vcmp.eq.f32.partialorder %v1882_v33, inf  ;;  %v1901_v5 = vand.u32 2147483648, %v1882_v33  ;;  %vm1900_vm6 = vcmp.eq.f32.partialorder %v1882_v33, 0.0 }
 0xabe   : > { %v1885_v34 = vpop.xlane.xlu1 %1884 }
 0xabf   : > { %3322 = vrsqrt.f32 %v1885_v34  ;;  %vm1905_vm7 = vcmp.eq.f32.partialorder %v1885_v34, inf  ;;  %v1908_v30 = vand.u32 2147483648, %v1885_v34  ;;  %vm1907_vm8 = vcmp.eq.f32.partialorder %v1885_v34, 0.0 }
 0xac2   : > { %v1888_v29 = vpop.xlane.xlu0 %1887 }
 0xac3   : > { %3324 = vrsqrt.f32 %v1888_v29  ;;  %vm1912_vm9 = vcmp.eq.f32.partialorder %v1888_v29, inf  ;;  %v1915_v37 = vand.u32 2147483648, %v1888_v29  ;;  %vm1914_vm10 = vcmp.eq.f32.partialorder %v1888_v29, 0.0 }
 0xac4   : > { %v3319_v11 = vpop.eup %3318 }
 0xac5   : > { %v1890_v21 = vmul.f32 %v3319_v11, %v1879_v61 }
 0xac7   : > { %v1892_v60 = vsel %vm1891_vm3, %v1879_v61, %v1890_v21 }
 0xac8   : > { %v3321_v14 = vpop.eup %3320  ;;  %v1895_v44 = vsel %vm1893_vm4, %v1894_v19, %v1892_v60  ;;  %vm2237_vm4 = vcmask 261120  }
 0xac9   : > { %v1917_v62 = vadd.f32 1e-06, %v1895_v44  ;;  %v1897_v39 = vmul.f32 %v3321_v14, %v1882_v33 }
 0xacb   : > { %3326 = vrcp.f32 %v1917_v62  ;;  %v1899_v4 = vsel %vm1898_vm5, %v1882_v33, %v1897_v39 }
 0xacc   : > { %v3323_v9 = vpop.eup %3322  ;;  %v1902_v38 = vsel %vm1900_vm6, %v1901_v5, %v1899_v4 }
 0xacd   : > { %v1918_v56 = vadd.f32 1e-06, %v1902_v38  ;;  %v1904_v18 = vmul.f32 %v3323_v9, %v1885_v34 }
 0xacf   : > { %3328 = vrcp.f32 %v1918_v56  ;;  %v1906_v36 = vsel %vm1905_vm7, %v1885_v34, %v1904_v18 }
 0xad0   : > { %v3325_v2 = vpop.eup %3324  ;;  %v1909_v63 = vsel %vm1907_vm8, %v1908_v30, %v1906_v36 }
 0xad1   : > { %v1919_v28 = vadd.f32 1e-06, %v1909_v63  ;;  %v1911_v43 = vmul.f32 %v3325_v2, %v1888_v29  ;;  %v321_v63 = vld [vmem:[%s4716_s5] sm:$0xff] }
 0xad3   : > { %3330 = vrcp.f32 %v1919_v28  ;;  %v1913_v10 = vsel %vm1912_vm9, %v1888_v29, %v1911_v43  ;;  %v327_v28 = vld [vmem:[%s4716_s5 + $0x30] sm:$0xff]  ;;  %v328_v43 = vld [vmem:[%s4716_s5 + $0x38] sm:$0xff] }
 0xad4   : > { %v1916_v46 = vsel %vm1914_vm10, %v1915_v37, %v1913_v10  ;;  %v322_v37 = vld [vmem:[%s4716_s5 + $0x8] sm:$0xff] }
 0xad5   : > { %v1920_v52 = vadd.f32 1e-06, %v1916_v46 }
 0xad7   : > { %3332 = vrcp.f32 %v1920_v52 }
 0xad8   : > { %v3327_v27 = vpop.eup %3326 }
 0xad9   : > { %v2147_v51 = vpop.xlane.xlu0 %2146  ;;  %v1925_v58 = vmul.f32 %v3327_v27, %v4380_v59 }
 0xada   : > { %3334 = vrsqrt.f32 %v2147_v51  ;;  %vm2159_vm11 = vcmp.eq.f32.partialorder %v2147_v51, inf  ;;  %v2162_v41 = vand.u32 2147483648, %v2147_v51  ;;  %vm2161_vm12 = vcmp.eq.f32.partialorder %v2147_v51, 0.0 }
 0xadb   : > { %2197 = vxpose.xlu1.b32.start [1/4] (short) (narrow) %v1925_v58, 64 }
 0xadc   : > { %v3329_v17 = vpop.eup %3328 }
 0xadd   : > { %v2150_v12 = vpop.xlane.xlu0 %2149  ;;  %v1926_v32 = vmul.f32 %v3329_v17, %v4385_v35 }
 0xade   : > { %3336 = vrsqrt.f32 %v2150_v12  ;;  %vm2166_vm13 = vcmp.eq.f32.partialorder %v2150_v12, inf  ;;  %vm2168_vm14 = vcmp.eq.f32.partialorder %v2150_v12, 0.0 }
 0xadf   : > { %2198 = vxpose.xlu1.b32.cont [2/4] (short) (narrow) %v1926_v32, 64 }
 0xae0   : > { %v3331_v6 = vpop.eup %3330 }
 0xae1   : > { %v2153_v23 = vpop.xlane.xlu0 %2152  ;;  %v1927_v3 = vmul.f32 %v3331_v6, %v4390_v7  ;;  %v2169_v7 = vand.u32 2147483648, %v2150_v12 }
 0xae2   : > { %3338 = vrsqrt.f32 %v2153_v23  ;;  %vm2173_vm15 = vcmp.eq.f32.partialorder %v2153_v23, inf  ;;  %v2176_v29 = vand.u32 2147483648, %v2153_v23  ;;  %vm2175_vm1 = vcmp.eq.f32.partialorder %v2153_v23, 0.0 }
 0xae3   : > { %2199 = vxpose.xlu1.b32.cont [3/4] (short) (narrow) %v1927_v3, 64 }
 0xae4   : > { %v3333_v45 = vpop.eup %3332 }
 0xae5   : > { %v2156_v40 = vpop.xlane.xlu0 %2155  ;;  %v1928_v16 = vmul.f32 %v3333_v45, %v4395_v47 }
 0xae6   : > { %3340 = vrsqrt.f32 %v2156_v40  ;;  %vm2180_vm2 = vcmp.eq.f32.partialorder %v2156_v40, inf  ;;  %v2183_v44 = vand.u32 2147483648, %v2156_v40  ;;  %vm2182_vm3 = vcmp.eq.f32.partialorder %v2156_v40, 0.0 }
 0xae7   : > { %v3335_v59 = vpop.eup %3334  ;;  %2200 = vxpose.xlu1.b32.end [4/4] (short) (narrow) %v1928_v16, 64 }
 0xae8   : > { %v2158_v54 = vmul.f32 %v3335_v59, %v2147_v51 }
 0xaea   : > { %v2160_v31 = vsel %vm2159_vm11, %v2147_v51, %v2158_v54 }
 0xaeb   : > { %v3337_v35 = vpop.eup %3336  ;;  %v2163_v42 = vsel %vm2161_vm12, %v2162_v41, %v2160_v31 }
 0xaec   : > { %v2185_v24 = vadd.f32 1e-06, %v2163_v42  ;;  %v2165_v49 = vmul.f32 %v3337_v35, %v2150_v12 }
 0xaee   : > { %3342 = vrcp.f32 %v2185_v24  ;;  %v2167_v8 = vsel %vm2166_vm13, %v2150_v12, %v2165_v49 }
 0xaef   : > { %v3339_v61 = vpop.eup %3338  ;;  %v2170_v33 = vsel %vm2168_vm14, %v2169_v7, %v2167_v8 }
 0xaf0   : > { %v2186_v47 = vadd.f32 1e-06, %v2170_v33  ;;  %v2172_v34 = vmul.f32 %v3339_v61, %v2153_v23 }
 0xaf2   : > { %3344 = vrcp.f32 %v2186_v47  ;;  %v2174_v11 = vsel %vm2173_vm15, %v2153_v23, %v2172_v34 }
 0xaf3   : > { %v3341_v21 = vpop.eup %3340  ;;  %v2177_v19 = vsel %vm2175_vm1, %v2176_v29, %v2174_v11 }
 0xaf4   : > { %v2187_v60 = vadd.f32 1e-06, %v2177_v19  ;;  %v2179_v14 = vmul.f32 %v3341_v21, %v2156_v40 }
 0xaf6   : > { %3346 = vrcp.f32 %v2187_v60  ;;  %v2181_v62 = vsel %vm2180_vm2, %v2156_v40, %v2179_v14 }
 0xaf7   : > { %v2184_v39 = vsel %vm2182_vm3, %v2183_v44, %v2181_v62 }
 0xaf8   : > { %v2188_v5 = vadd.f32 1e-06, %v2184_v39 }
 0xafa   : > { %3348 = vrcp.f32 %v2188_v5 }
 0xafb   : > { %v3343_v4 = vpop.eup %3342 }
 0xafc   : > { %v2193_v9 = vmul.f32 %v3343_v4, %v4400_v13  ;;  %v323_v13 = vld [vmem:[%s4716_s5 + $0x10] sm:$0xff] }
 0xafe   : > { %2520 = vxpose.xlu0.b32.start [1/4] (short) (narrow) %v2193_v9, 64 }
 0xaff   : > { %v3345_v38 = vpop.eup %3344 }
 0xb00   : > { %v2194_v56 = vmul.f32 %v3345_v38, %v4405_v1  ;;  %v324_v1 = vld [vmem:[%s4716_s5 + $0x18] sm:$0xff] }
 0xb02   : > { %2521 = vxpose.xlu0.b32.cont [2/4] (short) (narrow) %v2194_v56, 64 }
 0xb03   : > { %v3347_v18 = vpop.eup %3346 }
 0xb04   : > { %v2195_v30 = vmul.f32 %v3347_v18, %v4410_v57  ;;  %v325_v57 = vld [vmem:[%s4716_s5 + $0x20] sm:$0xff] }
 0xb06   : > { %2522 = vxpose.xlu0.b32.cont [3/4] (short) (narrow) %v2195_v30, 64 }
 0xb07   : > { %v3349_v36 = vpop.eup %3348 }
 0xb08   : > { %v2196_v2 = vmul.f32 %v3349_v36, %v4415_v20  ;;  %v326_v20 = vld [vmem:[%s4716_s5 + $0x28] sm:$0xff] }
 0xb0a   : > { %2523 = vxpose.xlu0.b32.end [4/4] (short) (narrow) %v2196_v2, 64 }
 0xb15   : > { %2349 = vperm.xlu1 %3085, %v321_v63  }
 0xb19   : > { %2359 = vperm.xlu1 %3085, %v323_v13  }
 0xb1d   : > { %2364 = vperm.xlu1 %3085, %v324_v1  }
 0xb21   : > { %2369 = vperm.xlu1 %3085, %v325_v57  }
 0xb25   : > { %2374 = vperm.xlu1 %3085, %v326_v20   ;;  %v301_v20 = vld [vmem:[%s4715_s4] sm:$0xff] }
 0xb29   : > { %2379 = vperm.xlu1 %3085, %v327_v28  }
 0xb2d   : > { %2384 = vperm.xlu1 %3085, %v328_v43  }
 0xb43   : > { %2354 = vperm.xlu0 %3084, %v322_v37   ;;  %v302_v37 = vld [vmem:[%s4715_s4 + $0x8] sm:$0xff] }
 0xb57   : > { %v2213_v10 = vpop.trf.xlu1 }
 0xb5b   : > { %v2214_v46 = vpop.trf.xlu1 }
 0xb5c   : > { %v2229_v52 = vpack.c.bf16 %v2214_v46, %v2213_v10  ;;  %v303_v10 = vld [vmem:[%s4715_s4 + $0x10] sm:$0xff]  ;;  %v304_v46 = vld [vmem:[%s4715_s4 + $0x18] sm:$0xff] }
 0xb5e   : > { %2953 = vmatmul.mubr.msk.bf16.vlgmr.msra.gmra.mxu0 %vm2237_vm4, %v2229_v52 }
 0xb5f   : > { %v2215_v27 = vpop.trf.xlu1  ;;  %2292 = vmatprep.mubr.bf16.mxu0 %v3496_v0 }
 0xb63   : > { %v2216_v51 = vpop.trf.xlu1 }
 0xb64   : > { %v2230_v58 = vpack.c.bf16 %v2216_v51, %v2215_v27  ;;  %v2559_v27 = vpack.c.bf16 %v4344_v48, %v4346_v50  ;;  %v4474_v51 = vpack.c.bf16 %v302_v37, %v301_v20  ;;  %v2557_v48 = vpack.c.bf16 %v4334_v53, %v4338_v26  ;;  %v305_v50 = vld [vmem:[%s4715_s4 + $0x20] sm:$0xff]  ;;  %v3354_v20 = vld [vmem:[%s3657_s19 + $0x10] sm:$0xff] }
 0xb66   : > { %2954 = vmatmul.mubr.msk.bf16.gmra.mxu0 %vm2237_vm4, %v2230_v58  ;;  %v4476_v58 = vpack.c.bf16 %v304_v46, %v303_v10 }
 0xb67   : > { %v2217_v17 = vpop.trf.xlu1  ;;  %2302 = vmatprep.mubr.bf16.mxu0 %v3496_v0 }
 0xb6b   : > { %v2218_v12 = vpop.trf.xlu1 }
 0xb6c   : > { %v2231_v32 = vpack.c.bf16 %v2218_v12, %v2217_v17  ;;  %v2558_v12 = vpack.c.bf16 %v4348_v55, %v4350_v25  ;;  %v306_v55 = vld [vmem:[%s4715_s4 + $0x28] sm:$0xff]  ;;  %v2556_v25 = vpack.c.bf16 %v4332_v15, %v4336_v22  ;;  %v308_v15 = vld [vmem:[%s4715_s4 + $0x38] sm:$0xff] }
 0xb6e   : > { %2955 = vmatmul.mubr.msk.bf16.gmra.mxu0 %vm2237_vm4, %v2231_v32  ;;  %v4496_v32 = vpack.c.bf16 %v306_v55, %v305_v50 }
 0xb6f   : > { %v2219_v6 = vpop.trf.xlu1  ;;  %2312 = vmatprep.mubr.bf16.mxu0 %v3496_v0 }
 0xb73   : > { %v2220_v23 = vpop.trf.xlu1 }
 0xb74   : > { %v2232_v3 = vpack.c.bf16 %v2220_v23, %v2219_v6  ;;  %v307_v6 = vld [vmem:[%s4715_s4 + $0x30] sm:$0xff] }
 0xb75   : > { %v4509_v23 = vpack.c.bf16 %v308_v15, %v307_v6  ;;  %v3358_v15 = vld [vmem:[%s3657_s19 + $0x40] sm:$0xff] }
 0xb76   : > { %2956 = vmatmul.mubr.msk.bf16.gmra.mxu0 %vm2237_vm4, %v2232_v3 }
 0xb77   : > { %2431 = vmatprep.mubr.bf16.mxu0 %v3496_v0 }
 0xb7a   : > { %v2536_v38 = vpop.trf.xlu0 }
 0xb7e   : > { %v2537_v28 = vpop.trf.xlu0 }
 0xb7f   : > { %v2552_v26 = vpack.c.bf16 %v2537_v28, %v2536_v38 }
 0xb82   : > { %v2538_v17 = vpop.trf.xlu0 }
 0xb86   : > { %v2539_v53 = vpop.trf.xlu0 }
 0xb87   : > { %v2553_v3 = vpack.c.bf16 %v2539_v53, %v2538_v17  ;;  %v3357_v17 = vld [vmem:[%s3657_s19 + $0x38] sm:$0xff] }
 0xb8a   : > { %v2540_v22 = vpop.trf.xlu0 }
 0xc1e   : > { %v2284_v45 = vpop.f32.mrf.mxu0 }
 0xc1f   : > { %v2323_v43 = vmax.f32 %v2284_v45, 0.0  ;;  %v2541_v45 = vpop.trf.xlu0 }
 0xc20   : > { %v2286_v40 = vpop.f32.mrf.mxu0 }
 0xc21   : > { %v2324_v63 = vmax.f32 %v2286_v40, 0.0  ;;  %v2554_v40 = vpack.c.bf16 %v2541_v45, %v2540_v22 }
 0xc22   : > { %v2288_v16 = vpop.f32.mrf.mxu0 }
 0xc23   : > { %v2325_v13 = vmax.f32 %v2288_v16, 0.0  ;;  %v2542_v16 = vpop.trf.xlu0 }
 0xc24   : > { %v2290_v59 = vpop.f32.mrf.mxu0 }
 0xc25   : > { %v2326_v30 = vmax.f32 %v2290_v59, 0.0  ;;  %v2339_v52 = vpack.c.bf16 %v2325_v13, %v2323_v43  ;;  %v3355_v43 = vld [vmem:[%s3657_s19 + $0x30] sm:$0xff] }
 0xc26   : > { %v2294_v54 = vpop.f32.mrf.mxu0 }
 0xc27   : > { %v2327_v2 = vmax.f32 %v2294_v54, 0.0  ;;  %v2340_v57 = vpack.c.bf16 %v2326_v30, %v2324_v63  ;;  %v2543_v59 = vpop.trf.xlu0 }
 0xc28   : > { %v2296_v41 = vpop.f32.mrf.mxu0  ;;  %v2555_v54 = vpack.c.bf16 %v2543_v59, %v2542_v16 }
 0xc29   : > { %v2328_v9 = vmax.f32 %v2296_v41, 0.0  ;;  %v4519_v41 = vpop.permute.xlu1 %2349 }
 0xc2a   : > { %v2298_v31 = vpop.f32.mrf.mxu0 }
 0xc2b   : > { %v2329_v56 = vmax.f32 %v2298_v31, 0.0 }
 0xc2c   : > { %v2300_v35 = vpop.f32.mrf.mxu0 }
 0xc2d   : > { %v2330_v39 = vmax.f32 %v2300_v35, 0.0  ;;  %v2341_v1 = vpack.c.bf16 %v2329_v56, %v2327_v2  ;;  %v4521_v31 = vpop.permute.xlu1 %2359 }
 0xc2e   : > { %v2304_v42 = vpop.f32.mrf.mxu0 }
 0xc2f   : > { %v2331_v4 = vmax.f32 %v2304_v42, 0.0  ;;  %v2342_v36 = vpack.c.bf16 %v2330_v39, %v2328_v9  ;;  %v3353_v9 = vld [vmem:[%s3657_s19 + $0x28] sm:$0xff] }
 0xc30   : > { %v2306_v24 = vpop.f32.mrf.mxu0 }
 0xc31   : > { %v2332_v60 = vmax.f32 %v2306_v24, 0.0  ;;  %v4523_v35 = vpop.permute.xlu1 %2364 }
 0xc32   : > { %v2308_v49 = vpop.f32.mrf.mxu0 }
 0xc33   : > { %v2333_v44 = vmax.f32 %v2308_v49, 0.0 }
 0xc34   : > { %v2310_v7 = vpop.f32.mrf.mxu0 }
 0xc35   : > { %v2334_v29 = vmax.f32 %v2310_v7, 0.0  ;;  %v2343_v18 = vpack.c.bf16 %v2333_v44, %v2331_v4  ;;  %v4525_v49 = vpop.permute.xlu1 %2369  ;;  %v4533_v44 = vpop.permute.xlu0 %2354 }
 0xc36   : > { %v2314_v8 = vpop.f32.mrf.mxu0 }
 0xc37   : > { %v2335_v19 = vmax.f32 %v2314_v8, 0.0  ;;  %v2344_v5 = vpack.c.bf16 %v2334_v29, %v2332_v60  ;;  %v3351_v29 = vld [vmem:[%s3657_s19 + $0x20] sm:$0xff] }
 0xc38   : > { %v2316_v61 = vpop.f32.mrf.mxu0 }
 0xc39   : > { %v2336_v11 = vmax.f32 %v2316_v61, 0.0  ;;  %v4539_v2 = vpop.permute.xlu1 %2374 }
 0xc3a   : > { %v2318_v33 = vpop.f32.mrf.mxu0 }
 0xc3b   : > { %v2337_v47 = vmax.f32 %v2318_v33, 0.0 }
 0xc3c   : > { %v2320_v34 = vpop.f32.mrf.mxu0 }
 0xc3d   : > { %v2338_v21 = vmax.f32 %v2320_v34, 0.0  ;;  %v2345_v62 = vpack.c.bf16 %v2337_v47, %v2335_v19  ;;  %v3350_v47 = vld [vmem:[%s3657_s19] sm:$0xff]  ;;  %v4566_v16 = vpop.permute.xlu1 %2379 }
 0xc3f   : > { %v2346_v14 = vpack.c.bf16 %v2338_v21, %v2336_v11 }
 0xc41   : > { %2407 = vmatprep.subr.bf16.mxu0 %v2346_v14  ;;  %3011 = vmatprep.subr.bf16.mxu1 %v2346_v14 }
 0xc42   : > { %2408 = vmatpush1.bf16.msra.mxu0 %v2345_v62  ;;  %3015 = vmatpush1.bf16.msra.mxu1 %v2345_v62 }
 0xc43   : > { %2409 = vmatprep.subr.bf16.mxu0 %v2344_v5  ;;  %3012 = vmatprep.subr.bf16.mxu1 %v2344_v5  ;;  %v3352_v5 = vld [vmem:[%s3657_s19 + $0x8] sm:$0xff] }
 0xc46   : > { %2410 = vmatpush1.bf16.msra.mxu0 %v2343_v18  ;;  %3016 = vmatpush1.bf16.msra.mxu1 %v2343_v18 }
 0xc47   : > { %2411 = vmatprep.subr.bf16.mxu0 %v2342_v36  ;;  %3013 = vmatprep.subr.bf16.mxu1 %v2342_v36 }
 0xc4a   : > { %2412 = vmatpush1.bf16.msra.mxu0 %v2341_v1  ;;  %3017 = vmatpush1.bf16.msra.mxu1 %v2341_v1 }
 0xc4b   : > { %2413 = vmatprep.subr.bf16.mxu0 %v2340_v57  ;;  %3014 = vmatprep.subr.bf16.mxu1 %v2340_v57 }
 0xc4e   : > { %2414 = vmatpush1.bf16.msra.mxu0 %v2339_v52  ;;  %3018 = vmatpush1.bf16.msra.mxu1 %v2339_v52  ;;  %v3356_v52 = vld [vmem:[%s3657_s19 + $0x18] sm:$0xff] }
 0xc4f   : > { %2584 = vmatprep.subr.bf16.mxu0 %v2559_v27 }
 0xc51   : > { %2957 = vmatmul.mubr.msk.bf16.vlgmr.msra.gmra.mxu0 %vm397_vm0, %v4474_v51  ;;  %2958 = vmatmul.mubr.msk.bf16.vlgmr.msra.gmra.mxu1 %vm397_vm0, %v4476_v58 }
 0xc52   : > { %2585 = vmatpush1.bf16.msra.mxu0 %v2558_v12  ;;  %2451 = vmatprep.mubr.bf16.mxu1 %v3496_v0 }
 0xc53   : > { %2586 = vmatprep.subr.bf16.mxu0 %v2557_v48  ;;  %2604 = vmatprep.mubr.bf16.mxu0 %v3496_v0 }
 0xc56   : > { %2587 = vmatpush1.bf16.msra.mxu0 %v2556_v25 }
 0xc59   : > { %2959 = vmatmul.mubr.msk.bf16.gmra.mxu1 %vm397_vm0, %v4496_v32  ;;  %2961 = vmatmul.mubr.msk.bf16.vlgmr.msra.gmra.mxu0 %vm2237_vm4, %v2552_v26 }
 0xc5a   : > { %2461 = vmatprep.mubr.bf16.mxu1 %v3496_v0  ;;  %2614 = vmatprep.mubr.bf16.mxu0 %v3496_v0 }
 0xc61   : > { %2960 = vmatmul.mubr.msk.bf16.gmra.mxu1 %vm397_vm0, %v4509_v23  ;;  %2962 = vmatmul.mubr.msk.bf16.gmra.mxu0 %vm2237_vm4, %v2553_v3 }
 0xc62   : > { %2624 = vmatprep.mubr.bf16.mxu0 %v3496_v0  ;;  %2701 = vmatprep.mubr.bf16.mxu1 %v3496_v0 }
 0xc69   : > { %2963 = vmatmul.mubr.msk.bf16.gmra.mxu0 %vm2237_vm4, %v2554_v40 }
 0xc6a   : > { %2634 = vmatprep.mubr.bf16.mxu0 %v3496_v0 }
 0xc71   : > { %2964 = vmatmul.mubr.msk.bf16.gmra.mxu0 %vm2237_vm4, %v2555_v54  ;;  %v3359_v54 = vld [vmem:[%s3657_s19 + $0x48] sm:$0xff] }
 0xd11   : > { %v2433_v42 = vpop.f32.mrf.mxu0  ;;  %v2443_v24 = vpop.f32.mrf.mxu1 }
 0xd12   : > { %v2434_v7 = vadd.f32 %v2433_v42, %v4519_v41  ;;  %v2444_v8 = vadd.f32 %v2443_v24, %v4521_v31 }
 0xd13   : > { %v2435_v61 = vpop.f32.mrf.mxu0  ;;  %v2445_v33 = vpop.f32.mrf.mxu1 }
 0xd14   : > { %v2472_v34 = vadd.f32 %v3350_v47, %v2434_v7  ;;  %v2476_v11 = vadd.f32 %v3351_v29, %v2444_v8  ;;  %v2436_v21 = vadd.f32 %v2435_v61, %v4519_v41  ;;  %v2446_v19 = vadd.f32 %v2445_v33, %v4521_v31  ;;  %v3360_v33 = vld [vmem:[%s3657_s19 + $0x50] sm:$0xff] }
 0xd15   : > { %v2437_v60 = vpop.f32.mrf.mxu0  ;;  %v2447_v14 = vpop.f32.mrf.mxu1 }
 0xd16   : > { %v2488_v62 = vmax.f32 %v2472_v34, 0.0  ;;  %v2492_v39 = vmax.f32 %v2476_v11, 0.0  ;;  %v2473_v4 = vadd.f32 %v3352_v5, %v2436_v21  ;;  %v2477_v38 = vadd.f32 %v3353_v9, %v2446_v19  ;;  %v3361_v19 = vld [vmem:[%s3657_s19 + $0x58] sm:$0xff]  ;;  %v4582_v5 = vpop.permute.xlu1 %2384  ;;  %v3362_v9 = vld [vmem:[%s3657_s19 + $0x60] sm:$0xff] }
 0xd17   : > { %v2438_v56 = vadd.f32 %v2437_v60, %v4533_v44  ;;  %v2448_v18 = vadd.f32 %v2447_v14, %v4523_v35  ;;  %v2439_v30 = vpop.f32.mrf.mxu0  ;;  %v2449_v36 = vpop.f32.mrf.mxu1 }
 0xd18   : > { %2504 = vst [vmem:[%s4543_s11] sm:$0xff] %v2488_v62  ;;  %2508 = vst [vmem:[%s4543_s11 + $0x20] sm:$0xff] %v2492_v39  ;;  %v2489_v63 = vmax.f32 %v2473_v4, 0.0  ;;  %v2493_v13 = vmax.f32 %v2477_v38, 0.0  ;;  %v2440_v1 = vadd.f32 %v2439_v30, %v4533_v44  ;;  %v2450_v57 = vadd.f32 %v2449_v36, %v4523_v35 }
 0xd19   : > { %v2474_v28 = vadd.f32 %v3354_v20, %v2438_v56  ;;  %v2478_v37 = vadd.f32 %v3355_v43, %v2448_v18  ;;  %v2453_v10 = vpop.f32.mrf.mxu1  ;;  %v4551_v46 = vpop.f32.mrf.mxu0  ;;  %v3364_v43 = vld [vmem:[%s3657_s19 + $0x70] sm:$0xff] }
 0xd1a   : > { %2505 = vst [vmem:[%s4543_s11 + $0x8] sm:$0xff] %v2489_v63  ;;  %2509 = vst [vmem:[%s4543_s11 + $0x28] sm:$0xff] %v2493_v13  ;;  %v2475_v27 = vadd.f32 %v3356_v52, %v2440_v1  ;;  %v2479_v12 = vadd.f32 %v3357_v17, %v2450_v57  ;;  %v2454_v48 = vadd.f32 %v2453_v10, %v4525_v49  ;;  %v3363_v63 = vld [vmem:[%s3657_s19 + $0x68] sm:$0xff]  ;;  %v3365_v17 = vld [vmem:[%s3657_s19 + $0x78] sm:$0xff] }
 0xd1b   : > { %v2490_v50 = vmax.f32 %v2474_v28, 0.0  ;;  %v2494_v55 = vmax.f32 %v2478_v37, 0.0  ;;  %v2455_v25 = vpop.f32.mrf.mxu1  ;;  %v4558_v53 = vpop.f32.mrf.mxu0 }
 0xd1c   : > { %v2491_v26 = vmax.f32 %v2475_v27, 0.0  ;;  %v2495_v6 = vmax.f32 %v2479_v12, 0.0  ;;  %v2480_v22 = vadd.f32 %v3358_v15, %v2454_v48  ;;  %v2456_v3 = vadd.f32 %v2455_v25, %v4525_v49 }
 0xd1d   : > { %2506 = vst [vmem:[%s4543_s11 + $0x10] sm:$0xff] %v2490_v50  ;;  %2510 = vst [vmem:[%s4543_s11 + $0x30] sm:$0xff] %v2494_v55  ;;  %v2457_v45 = vpop.f32.mrf.mxu1  ;;  %v4564_v40 = vpop.f32.mrf.mxu0 }
 0xd1e   : > { %2507 = vst [vmem:[%s4543_s11 + $0x18] sm:$0xff] %v2491_v26  ;;  %2511 = vst [vmem:[%s4543_s11 + $0x38] sm:$0xff] %v2495_v6  ;;  %v2496_v59 = vmax.f32 %v2480_v22, 0.0  ;;  %v2481_v42 = vadd.f32 %v3359_v54, %v2456_v3  ;;  %v2458_v24 = vadd.f32 %v2457_v45, %v4539_v2 }
 0xd1f   : > { %v2459_v7 = vpop.f32.mrf.mxu1  ;;  %v4572_v8 = vpop.f32.mrf.mxu0 }
 0xd20   : > { %2512 = vst [vmem:[%s4543_s11 + $0x40] sm:$0xff] %v2496_v59  ;;  %v2497_v61 = vmax.f32 %v2481_v42, 0.0  ;;  %v2482_v47 = vadd.f32 %v3360_v33, %v2458_v24  ;;  %v2460_v34 = vadd.f32 %v2459_v7, %v4539_v2 }
 0xd21   : > { %v2463_v29 = vpop.f32.mrf.mxu1  ;;  %v4577_v11 = vpop.f32.mrf.mxu0 }
 0xd22   : > { %2513 = vst [vmem:[%s4543_s11 + $0x48] sm:$0xff] %v2497_v61  ;;  %v2498_v21 = vmax.f32 %v2482_v47, 0.0  ;;  %v2483_v60 = vadd.f32 %v3361_v19, %v2460_v34  ;;  %v2464_v14 = vadd.f32 %v2463_v29, %v4566_v16 }
 0xd23   : > { %v2465_v62 = vpop.f32.mrf.mxu1  ;;  %v2618_v39 = vpop.f32.mrf.mxu0 }
 0xd24   : > { %2514 = vst [vmem:[%s4543_s11 + $0x50] sm:$0xff] %v2498_v21  ;;  %v2499_v4 = vmax.f32 %v2483_v60, 0.0  ;;  %v2484_v38 = vadd.f32 %v3362_v9, %v2464_v14  ;;  %v2466_v56 = vadd.f32 %v2465_v62, %v4566_v16  ;;  %v2650_v21 = vmax.f32 %v2618_v39, 0.0 }
 0xd25   : > { %v2467_v18 = vpop.f32.mrf.mxu1  ;;  %v2620_v30 = vpop.f32.mrf.mxu0  ;;  %v2648_v14 = vmax.f32 %v4572_v8, 0.0  ;;  %v2646_v9 = vmax.f32 %v4558_v53, 0.0  ;;  %v2969_v53 = vld [vmem:[%s3657_s19 + $0x80] sm:$0xff]  ;;  %v2970_v8 = vld [vmem:[%s3657_s19 + $0x88] sm:$0xff] }
 0xd26   : > { %2515 = vst [vmem:[%s4543_s11 + $0x58] sm:$0xff] %v2499_v4  ;;  %v2500_v36 = vmax.f32 %v2484_v38, 0.0  ;;  %v2485_v13 = vadd.f32 %v3363_v63, %v2466_v56  ;;  %v2468_v1 = vadd.f32 %v2467_v18, %v4582_v5  ;;  %v2651_v19 = vmax.f32 %v2620_v30, 0.0 }
 0xd27   : > { %v2469_v57 = vpop.f32.mrf.mxu1  ;;  %v2622_v20 = vpop.f32.mrf.mxu0  ;;  %v2649_v4 = vmax.f32 %v4577_v11, 0.0  ;;  %v2647_v38 = vmax.f32 %v4564_v40, 0.0  ;;  %v2662_v18 = vpack.c.bf16 %v2648_v14, %v2646_v9 }
 0xd28   : > { %2516 = vst [vmem:[%s4543_s11 + $0x60] sm:$0xff] %v2500_v36  ;;  %v2501_v28 = vmax.f32 %v2485_v13, 0.0  ;;  %v2486_v37 = vadd.f32 %v3364_v43, %v2468_v1  ;;  %v2470_v10 = vadd.f32 %v2469_v57, %v4582_v5  ;;  %v2652_v47 = vmax.f32 %v2622_v20, 0.0  ;;  %v2972_v1 = vld [vmem:[%s3657_s19 + $0x98] sm:$0xff] }
 0xd29   : > { %v2626_v52 = vpop.f32.mrf.mxu0  ;;  %v2663_v56 = vpack.c.bf16 %v2651_v19, %v2649_v4  ;;  %v2645_v36 = vmax.f32 %v4551_v46, 0.0  ;;  %v2980_v4 = vld [vmem:[%s3657_s19 + $0xd8] sm:$0xff] }
 0xd2a   : > { %2517 = vst [vmem:[%s4543_s11 + $0x68] sm:$0xff] %v2501_v28  ;;  %v2502_v27 = vmax.f32 %v2486_v37, 0.0  ;;  %v2487_v12 = vadd.f32 %v3365_v17, %v2470_v10  ;;  %v2653_v29 = vmax.f32 %v2626_v52, 0.0  ;;  %v2664_v62 = vpack.c.bf16 %v2652_v47, %v2650_v21  ;;  %v2973_v37 = vld [vmem:[%s3657_s19 + $0xa0] sm:$0xff]  ;;  %v2974_v17 = vld [vmem:[%s3657_s19 + $0xa8] sm:$0xff] }
 0xd2b   : > { %v2628_v48 = vpop.f32.mrf.mxu0  ;;  %v2661_v39 = vpack.c.bf16 %v2647_v38, %v2645_v36 }
 0xd2c   : > { %2518 = vst [vmem:[%s4543_s11 + $0x70] sm:$0xff] %v2502_v27  ;;  %v2503_v50 = vmax.f32 %v2487_v12, 0.0  ;;  %v2654_v24 = vmax.f32 %v2628_v48, 0.0 }
 0xd2d   : > { %v2630_v55 = vpop.f32.mrf.mxu0 }
 0xd2e   : > { %2519 = vst [vmem:[%s4543_s11 + $0x78] sm:$0xff] %v2503_v50  ;;  %v2655_v61 = vmax.f32 %v2630_v55, 0.0 }
 0xd2f   : > { %v2632_v25 = vpop.f32.mrf.mxu0 }
 0xd30   : > { %v2656_v45 = vmax.f32 %v2632_v25, 0.0  ;;  %v2665_v60 = vpack.c.bf16 %v2655_v61, %v2653_v29 }
 0xd31   : > { %v2636_v26 = vpop.f32.mrf.mxu0 }
 0xd32   : > { %v2657_v42 = vmax.f32 %v2636_v26, 0.0  ;;  %v2666_v34 = vpack.c.bf16 %v2656_v45, %v2654_v24 }
 0xd33   : > { %v2638_v6 = vpop.f32.mrf.mxu0 }
 0xd34   : > { %v2658_v59 = vmax.f32 %v2638_v6, 0.0 }
 0xd35   : > { %v2640_v15 = vpop.f32.mrf.mxu0 }
 0xd36   : > { %v2659_v22 = vmax.f32 %v2640_v15, 0.0 }
 0xd37   : > { %v2642_v3 = vpop.f32.mrf.mxu0 }
 0xd38   : > { %v2660_v54 = vmax.f32 %v2642_v3, 0.0  ;;  %v2667_v33 = vpack.c.bf16 %v2659_v22, %v2657_v42  ;;  %v2976_v22 = vld [vmem:[%s3657_s19 + $0xb8] sm:$0xff] }
 0xd3a   : > { %v2668_v7 = vpack.c.bf16 %v2660_v54, %v2658_v59 }
 0xd3c   : > { %2677 = vmatprep.subr.bf16.mxu1 %v2668_v7 }
 0xd3d   : > { %2678 = vmatpush1.bf16.msra.mxu1 %v2667_v33  ;;  %v2978_v33 = vld [vmem:[%s3657_s19 + $0xc8] sm:$0xff] }
 0xd3e   : > { %2679 = vmatprep.subr.bf16.mxu1 %v2666_v34 }
 0xd41   : > { %2680 = vmatpush1.bf16.msra.mxu1 %v2665_v60 }
 0xd42   : > { %2681 = vmatprep.subr.bf16.mxu1 %v2664_v62 }
 0xd45   : > { %2682 = vmatpush1.bf16.msra.mxu1 %v2663_v56 }
 0xd46   : > { %2683 = vmatprep.subr.bf16.mxu1 %v2662_v18 }
 0xd49   : > { %2684 = vmatpush1.bf16.msra.mxu1 %v2661_v39 }
 0xd4c   : > { %2965 = vmatmul.mubr.msk.bf16.vlgmr.msra.gmra.mxu1 %vm397_vm0, %v4474_v51 }
 0xd4d   : > { %2711 = vmatprep.mubr.bf16.mxu1 %v3496_v0 }
 0xd54   : > { %2966 = vmatmul.mubr.msk.bf16.gmra.mxu1 %vm397_vm0, %v4476_v58 }
 0xd55   : > { %2721 = vmatprep.mubr.bf16.mxu1 %v3496_v0 }
 0xd5c   : > { %2967 = vmatmul.mubr.msk.bf16.gmra.mxu1 %vm397_vm0, %v4496_v32  ;;  %v2971_v32 = vld [vmem:[%s3657_s19 + $0x90] sm:$0xff] }
 0xd5d   : > { %2731 = vmatprep.mubr.bf16.mxu1 %v3496_v0 }
 0xd64   : > { %2968 = vmatmul.mubr.msk.bf16.gmra.mxu1 %vm397_vm0, %v4509_v23 }
 0xe0c   : > { %v2703_v46 = vpop.f32.mrf.mxu1 }
 0xe0d   : > { %v2704_v51 = vadd.f32 %v2703_v46, %v4519_v41 }
 0xe0e   : > { %v2705_v40 = vpop.f32.mrf.mxu1 }
 0xe0f   : > { %v2758_v58 = vadd.f32 %v2969_v53, %v2704_v51  ;;  %v2706_v11 = vadd.f32 %v2705_v40, %v4519_v41  ;;  %v2982_v51 = vld [vmem:[%s3657_s19 + $0xe8] sm:$0xff] }
 0xe10   : > { %v2707_v30 = vpop.f32.mrf.mxu1 }
 0xe11   : > { %v2774_v63 = vmax.f32 %v2758_v58, 0.0  ;;  %v2759_v0 = vadd.f32 %v2970_v8, %v2706_v11  ;;  %v2708_v13 = vadd.f32 %v2707_v30, %v4533_v44  ;;  %v2983_v11 = vld [vmem:[%s3657_s19 + $0xf0] sm:$0xff] }
 0xe12   : > { %v2709_v23 = vpop.f32.mrf.mxu1 }
 0xe13   : > { %2985 = vst [vmem:[%s4543_s11 + $0x80] sm:$0xff] %v2774_v63  ;;  %v2775_v57 = vmax.f32 %v2759_v0, 0.0  ;;  %v2760_v20 = vadd.f32 %v2971_v32, %v2708_v13  ;;  %v2710_v28 = vadd.f32 %v2709_v23, %v4533_v44  ;;  %v2975_v44 = vld [vmem:[%s3657_s19 + $0xb0] sm:$0xff]  ;;  %v2984_v13 = vld [vmem:[%s3657_s19 + $0xf8] sm:$0xff] }
 0xe14   : > { %v2713_v43 = vpop.f32.mrf.mxu1 }
 0xe15   : > { %2986 = vst [vmem:[%s4543_s11 + $0x88] sm:$0xff] %v2775_v57  ;;  %v2776_v41 = vmax.f32 %v2760_v20, 0.0  ;;  %v2761_v10 = vadd.f32 %v2972_v1, %v2710_v28  ;;  %v2714_v52 = vadd.f32 %v2713_v43, %v4521_v31 }
 0xe16   : > { %v2715_v27 = vpop.f32.mrf.mxu1 }
 0xe17   : > { %2987 = vst [vmem:[%s4543_s11 + $0x90] sm:$0xff] %v2776_v41  ;;  %v2777_v12 = vmax.f32 %v2761_v10, 0.0  ;;  %v2762_v48 = vadd.f32 %v2973_v37, %v2714_v52  ;;  %v2716_v50 = vadd.f32 %v2715_v27, %v4521_v31  ;;  %v2977_v31 = vld [vmem:[%s3657_s19 + $0xc0] sm:$0xff] }
 0xe18   : > { %v2717_v55 = vpop.f32.mrf.mxu1 }
 0xe19   : > { %2988 = vst [vmem:[%s4543_s11 + $0x98] sm:$0xff] %v2777_v12  ;;  %v2778_v25 = vmax.f32 %v2762_v48, 0.0  ;;  %v2763_v26 = vadd.f32 %v2974_v17, %v2716_v50  ;;  %v2718_v6 = vadd.f32 %v2717_v55, %v4523_v35 }
 0xe1a   : > { %v2719_v15 = vpop.f32.mrf.mxu1 }
 0xe1b   : > { %2989 = vst [vmem:[%s4543_s11 + $0xa0] sm:$0xff] %v2778_v25  ;;  %v2779_v3 = vmax.f32 %v2763_v26, 0.0  ;;  %v2764_v45 = vadd.f32 %v2975_v44, %v2718_v6  ;;  %v2720_v59 = vadd.f32 %v2719_v15, %v4523_v35  ;;  %v2979_v35 = vld [vmem:[%s3657_s19 + $0xd0] sm:$0xff] }
 0xe1c   : > { %v2723_v54 = vpop.f32.mrf.mxu1 }
 0xe1d   : > { %2990 = vst [vmem:[%s4543_s11 + $0xa8] sm:$0xff] %v2779_v3  ;;  %v2780_v42 = vmax.f32 %v2764_v45, 0.0  ;;  %v2765_v24 = vadd.f32 %v2976_v22, %v2720_v59  ;;  %v2724_v7 = vadd.f32 %v2723_v54, %v4525_v49 }
 0xe1e   : > { %v2725_v61 = vpop.f32.mrf.mxu1 }
 0xe1f   : > { %2991 = vst [vmem:[%s4543_s11 + $0xb0] sm:$0xff] %v2780_v42  ;;  %v2781_v47 = vmax.f32 %v2765_v24, 0.0  ;;  %v2766_v34 = vadd.f32 %v2977_v31, %v2724_v7  ;;  %v2726_v29 = vadd.f32 %v2725_v61, %v4525_v49  ;;  %v2981_v49 = vld [vmem:[%s3657_s19 + $0xe0] sm:$0xff]  ;;  %s2808_s19 = scalar_lea.sflag [#allocation4], %s3651_s20 }
 0xe20   : > { %v2727_v21 = vpop.f32.mrf.mxu1 }
 0xe21   : > { %2992 = vst [vmem:[%s4543_s11 + $0xb8] sm:$0xff] %v2781_v47  ;;  %v2782_v19 = vmax.f32 %v2766_v34, 0.0  ;;  %v2767_v60 = vadd.f32 %v2978_v33, %v2726_v29  ;;  %v2728_v14 = vadd.f32 %v2727_v21, %v4539_v2 }
 0xe22   : > { %v2729_v62 = vpop.f32.mrf.mxu1 }
 0xe23   : > { %2993 = vst [vmem:[%s4543_s11 + $0xc0] sm:$0xff] %v2782_v19  ;;  %v2783_v9 = vmax.f32 %v2767_v60, 0.0  ;;  %v2768_v38 = vadd.f32 %v2979_v35, %v2728_v14  ;;  %v2730_v56 = vadd.f32 %v2729_v62, %v4539_v2 }
 0xe24   : > { %v2733_v18 = vpop.f32.mrf.mxu1 }
 0xe25   : > { %2994 = vst [vmem:[%s4543_s11 + $0xc8] sm:$0xff] %v2783_v9  ;;  %v2784_v36 = vmax.f32 %v2768_v38, 0.0  ;;  %v2769_v39 = vadd.f32 %v2980_v4, %v2730_v56  ;;  %v2734_v46 = vadd.f32 %v2733_v18, %v4566_v16 }
 0xe26   : > { %v2735_v53 = vpop.f32.mrf.mxu1 }
 0xe27   : > { %2995 = vst [vmem:[%s4543_s11 + $0xd0] sm:$0xff] %v2784_v36  ;;  %v2785_v40 = vmax.f32 %v2769_v39, 0.0  ;;  %v2770_v8 = vadd.f32 %v2981_v49, %v2734_v46  ;;  %v2736_v58 = vadd.f32 %v2735_v53, %v4566_v16 }
 0xe28   : > { %v2737_v2 = vpop.f32.mrf.mxu1 }
 0xe29   : > { %2996 = vst [vmem:[%s4543_s11 + $0xd8] sm:$0xff] %v2785_v40  ;;  %v2786_v30 = vmax.f32 %v2770_v8, 0.0  ;;  %v2771_v32 = vadd.f32 %v2982_v51, %v2736_v58  ;;  %v2738_v63 = vadd.f32 %v2737_v2, %v4582_v5 }
 0xe2a   : > { %v2739_v0 = vpop.f32.mrf.mxu1 }
 0xe2b   : > { %2997 = vst [vmem:[%s4543_s11 + $0xe0] sm:$0xff] %v2786_v30  ;;  %v2787_v23 = vmax.f32 %v2771_v32, 0.0  ;;  %v2772_v1 = vadd.f32 %v2983_v11, %v2738_v63  ;;  %v2740_v57 = vadd.f32 %v2739_v0, %v4582_v5 }
 0xe2d   : > { %2998 = vst [vmem:[%s4543_s11 + $0xe8] sm:$0xff] %v2787_v23  ;;  %v2788_v16 = vmax.f32 %v2772_v1, 0.0  ;;  %v2773_v20 = vadd.f32 %v2984_v13, %v2740_v57 }
 0xe2f   : > { %2999 = vst [vmem:[%s4543_s11 + $0xf0] sm:$0xff] %v2788_v16  ;;  %v2789_v28 = vmax.f32 %v2773_v20, 0.0 }
 0xe31   : > { %3000 = vst [vmem:[%s4543_s11 + $0xf8] sm:$0xff] %v2789_v28 }
 0xe32   : > { %3433 = shalt.err (!%p3430_p0)
}
 0xe33   : > { %s3434_s27 = scalar_lea.hbm %s4664_s15, 4096  ;;  %s3438_s10 = scalar_lea.hbm %s4717_s6, 8192 }
 0xe34   : > { %p3435_p5 = scmp.ne.s32.totalorder %s4664_s15, %s3434_s27  ;;  %p3439_p4 = scmp.lt.s32.totalorder %s4664_s15, %s4717_s6 }
 0xe35   : > { %p3440_p6 = scmp.lt.s32.totalorder %s3438_s10, %s3434_s27 }
 0xe36   : > { %p3436_p9 = pnand %p3435_p5, %p4733_p11 }
 0xe37   : > { %p3441_p8 = por %p3440_p6, %p3439_p4 }
 0xe38   : > { %p3437_p1 = pneg %p3436_p9 }
 0xe3a   : > { %p3442_p3 = pnand %p3441_p8, %p3437_p1 }
 0xe3c   : > { %3445 = shalt.err (!%p3442_p3)
}
 0xe3d   : > { %s3498_s8 = smov 256   ;;  %s3499_s7 = smov 16  }
 0xe3e   : > { %3025 = dma.vmem_to_hbm [thread:$0]  (%p4733_p11), %s4666_s13, 4096, %s4664_s15, %s2808_s19, %s3498_s8, %s3498_s8, %s3499_s7  }
 0xe3f PF: > { %s2837_s14 = sand.u32 1, %s3476_s21   ;;  %p4734_p7 = scmp.ne.s32.totalorder %s4723_s28, 0 }
 0xe40   : > { %p4735_p12 = scmp.ge.s32.totalorder %s3488_s24, 2  ;;  %s2838_s25 = scalar_lea.sflag [#allocation4], %s2837_s14 }
 0xe42   : > { %p3036_p10 = pnand %p4735_p12, %p4734_p7 }
 0xe44   : > { %p3037_p2 = pneg %p3036_p10 }
 0xe46   : > { %3471 = dma.done.wait (%p3037_p2), %s2838_s25, 4096  }
 0xe47   : > { %3473 = vsyncadd (%p3037_p2), %s2838_s25, 4294963200  ;;  %p20_p13 = scmp.ge.s32.totalorder %s3589_s9, 4   ;;  %s4736_s21 = smov %s3480_s22 }
 0xe48   : > { %s4737_s22 = smov %s3484_s23  ;;  %s4738_s23 = smov %s3606_s17 }
 0xe49   : > { %s4739_s24 = smov %s3589_s9  ;;  %22 = sbr.rel (!%p20_p13) target bundleno = 6 (0x6), region = 95 }
 0xe4e   :  { %2843 = vsyncpa [#allocation3], 1 }
 0xe4f   :  { %2845 = vsyncpa [#allocation3 + $0x1], 1 }
 0xe50   :  { %2846 = vsyncpa [#allocation6], 1 }
 0xe51   :  { %2847 = vsyncpa [#allocation4], 1 }
 0xe52   :  { %2849 = vsyncpa [#allocation4 + $0x1], 1 }

</bundles_post_ra>
